<compile_context>
chip_gen: v7x
topology: tpu7x:2x2x1
jax: 0.10.0
libtpu: 0.0.40
codegen_flags: <defaults>
</compile_context>

<pallas_src>
import functools

import jax
import jax.numpy as jnp
from jax.experimental import pallas as pl
from jax.experimental.pallas import tpu as pltpu

_LANE = 128   # vreg lane width
_SUB = 8      # vreg sublane count


def _round_up(n, m):
    return ((n + m - 1) // m) * m


def _sigmoid_tanh(x):
    # sigmoid(x) == 0.5 * (tanh(x/2) + 1): single EUP push instead of exp + divide.
    return 0.5 * (jnp.tanh(0.5 * x) + 1.0)


# -----------------------------------------------------------------------------
# Fused encoder kernel (wavefront-interleaved stacked LSTM recurrences)
# -----------------------------------------------------------------------------
def _make_encoder_kernel(num_layers, seq_len, batch_p, hps):
    """Build the fused multi-layer LSTM encoder kernel.

    Kernel ref layout (positional):
      inputs : x2d (S*Bp, Fp)                                   bf16
               layer 0   : wx0 (Fp, 4*hp0) bf16, wh0 (hp0, 4*hp0) bf16, b0 (1, 4*hp0) f32
               layer l>=1: wcat_l (hp_{l-1}+hp_l, 4*hp_l) bf16, b_l (1, 4*hp_l) f32
      outputs: out (Bp, hp_{L-1}) f32      -- final hidden state of the last layer
      scratch: gx0 (S*Bp, 4*hp0) f32       -- hoisted layer-0 input projection
    """
    L, S, Bp = num_layers, seq_len, batch_p
    n_w = 3 + 2 * (L - 1)

    def lstm_cell(gates, c_prev, hp):
        # Each gate owns its own 128-lane tile -> slicing is a free vreg selection.
        i_g = _sigmoid_tanh(gates[:, 0 * hp:1 * hp])
        f_g = _sigmoid_tanh(gates[:, 1 * hp:2 * hp])
        g_g = jnp.tanh(gates[:, 2 * hp:3 * hp])
        o_g = _sigmoid_tanh(gates[:, 3 * hp:4 * hp])
        c_new = f_g * c_prev + i_g * g_g
        h_new = o_g * jnp.tanh(c_new)
        return h_new, c_new

    def kernel(*refs):
        x_ref = refs[0]
        w_refs = refs[1:1 + n_w]
        out_ref = refs[1 + n_w]
        gx0_ref = refs[2 + n_w]

        wx0_ref, wh0_ref, b0_ref = w_refs[0:3]

        # Hoisted layer-0 input projection + bias: ONE MXU matmul for all timesteps,
        # entirely off the serial critical path.
        gx0_ref[...] = (
            jnp.dot(x_ref[...], wx0_ref[...], preferred_element_type=jnp.float32)
            + b0_ref[...])

        # Hoist the (small, cheap) bias broadcasts for layers >= 1 out of the loop.
        b_bcast = [None] + [
            jnp.broadcast_to(w_refs[3 + 2 * (l - 1) + 1][...], (Bp, 4 * hps[l]))
            for l in range(1, L)
        ]

        # Recurrent state, f32 accumulators. Padded lanes / padded batch rows stay
        # exactly zero through time (zero weights, zero bias, zero initial state).
        h = [jnp.zeros((Bp, hp), jnp.float32) for hp in hps]
        c = [jnp.zeros((Bp, hp), jnp.float32) for hp in hps]

        # Wavefront schedule: at global step s, layer l processes timestep t = s - l.
        # Layer l's input h^{l-1}_t was produced at wavefront step s-1, so all layer
        # steps inside one wavefront step are mutually independent and the LLO
        # scheduler can overlap their MXU / EUP latency.
        for s in range(S + L - 1):
            # Top-down so layer l consumes h[l-1] from the previous wavefront step
            # before layer l-1 overwrites it in this one.
            for l in range(L - 1, -1, -1):
                t = s - l
                if not (0 <= t < S):
                    continue
                hp = hps[l]
                if l == 0:
                    # Input projection already in gx0; only h_prev @ Wh sits on the
                    # critical path.  The weight is re-read from VMEM per step (short
                    # live range) rather than held across the unrolled loop.
                    gates = gx0_ref[pl.ds(t * Bp, Bp), :] + jnp.dot(
                        h[0].astype(jnp.bfloat16), wh0_ref[...],
                        preferred_element_type=jnp.float32)
                else:
                    wcat_ref = w_refs[3 + 2 * (l - 1)]
                    # Fused input+hidden projection: [h_below_t ; h_prev] against the
                    # packed [Wx ; Wh] weight (256-deep contraction -> one MXU pass on
                    # v6e/v7x). Concatenate native f32 (8,128) tiles, cast once.
                    lhs = jnp.concatenate([h[l - 1], h[l]], axis=1)
                    gates = jnp.dot(
                        lhs.astype(jnp.bfloat16), wcat_ref[...],
                        preferred_element_type=jnp.float32) + b_bcast[l]
                h[l], c[l] = lstm_cell(gates, c[l], hp)

        out_ref[...] = h[L - 1]

    return kernel


# -----------------------------------------------------------------------------
# Weight packing: PyTorch layout -> gate-lane-aligned kernel operands
# -----------------------------------------------------------------------------
def _pack_gate_cols(w, hp):
    """(4H, in) PyTorch weight -> (in, 4*hp) with each gate block lane-padded to hp."""
    four_h, in_dim = w.shape
    H = four_h // 4
    w4 = w.reshape(4, H, in_dim)            # gate blocks i, f, g, o
    w4 = jnp.transpose(w4, (2, 0, 1))       # (in, 4, H)
    w4 = jnp.pad(w4, ((0, 0), (0, 0), (0, hp - H)))
    return w4.reshape(in_dim, 4 * hp)


def _pack_lstm_params(p, in_rows_padded, hp):
    """Returns (wx, wh, b) in f32:
       wx: (in_rows_padded, 4*hp)  input->gates, each gate block lane-padded to hp
       wh: (hp, 4*hp)              hidden->gates
       b : (1, 4*hp)               combined bias (b_ih + b_hh)
    All padding is zero, so padded hidden lanes stay exactly zero through time.
    """
    w_ih = p["w_ih"].astype(jnp.float32)             # (4H, I)  PyTorch layout
    w_hh = p["w_hh"].astype(jnp.float32)             # (4H, H)
    b = (p["b_ih"] + p["b_hh"]).astype(jnp.float32)  # (4H,)
    H = w_hh.shape[1]
    I = w_ih.shape[1]
    wx = jnp.pad(_pack_gate_cols(w_ih, hp), ((0, in_rows_padded - I), (0, 0)))
    wh = jnp.pad(_pack_gate_cols(w_hh, hp), ((0, hp - H), (0, 0)))
    bias = jnp.pad(b.reshape(4, H), ((0, 0), (0, hp - H))).reshape(1, 4 * hp)
    return wx, wh, bias


# -----------------------------------------------------------------------------
# Forward pass (batch-first, like the PyTorch module)
# -----------------------------------------------------------------------------
@functools.partial(jax.jit, static_argnames=("embedding_dim",))
def encoder_forward(x_bf, params, embedding_dim):
    """x_bf: (batch, seq_len, n_features); params: list of PyTorch-style LSTM dicts."""
    B, S, F = x_bf.shape
    L = len(params)

    hs = [p["w_hh"].shape[1] for p in params]           # true hidden sizes per layer
    hps = [_round_up(h, _LANE) for h in hs]              # lane-padded hidden sizes
    Bp = _round_up(B, _SUB)                               # sublane-padded batch
    Fp = _round_up(F, _SUB)                               # sublane-padded features

    # batch-first -> time-major, pad batch and features, flatten time into rows so
    # every per-step view is an aligned (Bp, .) row block of a 2-D VMEM array.
    x_tm = jnp.transpose(x_bf, (1, 0, 2)).astype(jnp.float32)    # (S, B, F)
    x_tm = jnp.pad(x_tm, ((0, 0), (0, Bp - B), (0, Fp - F)))      # (S, Bp, Fp)
    x2d = x_tm.reshape(S * Bp, Fp).astype(jnp.bfloat16)

    operands = [x2d]
    # Layer 0: separate Wx (hoisted projection) and Wh (recurrence).
    wx0, wh0, b0 = _pack_lstm_params(params[0], Fp, hps[0])
    operands += [wx0.astype(jnp.bfloat16), wh0.astype(jnp.bfloat16), b0]
    # Layers >= 1: fused [Wx ; Wh] for the per-step concatenated matmul.
    for l in range(1, L):
        wx, wh, b = _pack_lstm_params(params[l], hps[l - 1], hps[l])
        wcat = jnp.concatenate([wx, wh], axis=0).astype(jnp.bfloat16)
        operands += [wcat, b]

    kernel = _make_encoder_kernel(L, S, Bp, tuple(hps))
    vmem = pl.BlockSpec(memory_space=pltpu.MemorySpace.VMEM)

    # Whole problem (<1 MiB) lives in VMEM: single call, no grid, no HBM pipelining.
    # TODO(synk): if batch grows, add a "parallel" batch-tile grid axis so v7x's
    # second TensorCore gets used; unnecessary at B=2.
    h_n = pl.pallas_call(
        kernel,
        out_shape=jax.ShapeDtypeStruct((Bp, hps[-1]), jnp.float32),
        in_specs=[vmem] * len(operands),
        out_specs=vmem,
        scratch_shapes=[pltpu.VMEM((S * Bp, 4 * hps[0]), jnp.float32)],
    )(*operands)

    hidden_n = h_n[:B, :hs[-1]]                          # drop batch / lane padding
    # torch: hidden_n.reshape((-1, 1, embedding_dim))
    return hidden_n.reshape((-1, 1, embedding_dim))


# -----------------------------------------------------------------------------
# Parameter construction (PyTorch nn.LSTM shapes) and pure-JAX reference
# -----------------------------------------------------------------------------
def init_lstm_params(key, input_size, hidden_size):
    """U(-k, k) with k = 1/sqrt(H), matching PyTorch LSTM param shapes."""
    k = 1.0 / jnp.sqrt(jnp.float32(hidden_size))
    k1, k2, k3, k4 = jax.random.split(key, 4)
    w_ih = jax.random.uniform(k1, (4 * hidden_size, input_size), jnp.float32, -k, k)
    w_hh = jax.random.uniform(k2, (4 * hidden_size, hidden_size), jnp.float32, -k, k)
    b_ih = jax.random.uniform(k3, (4 * hidden_size,), jnp.float32, -k, k)
    b_hh = jax.random.uniform(k4, (4 * hidden_size,), jnp.float32, -k, k)
    return dict(w_ih=w_ih, w_hh=w_hh, b_ih=b_ih, b_hh=b_hh)


def make_encoder_params(key, num_neurons, num_layers=2):
    """Mirrors Encoder.__init__: layers built for layer_n in range(num_layers, 0, -1)."""
    params = []
    for layer_n in range(num_layers, 0, -1):
        key, sub = jax.random.split(key)
        params.append(
            init_lstm_params(sub, num_neurons[layer_n], num_neurons[layer_n - 1]))
    return params


def _lstm_ref(x_tm, p):
    """Pure-JAX reference single-layer LSTM (time-major), PyTorch semantics."""
    _, B, _ = x_tm.shape
    H = p["w_hh"].shape[1]
    wih_t, whh_t = p["w_ih"].T, p["w_hh"].T
    b = p["b_ih"] + p["b_hh"]

    def step(carry, x_t):
        h, c = carry
        g = x_t @ wih_t + h @ whh_t + b
        i, f, gg, o = jnp.split(g, 4, axis=-1)
        c = jax.nn.sigmoid(f) * c + jax.nn.sigmoid(i) * jnp.tanh(gg)
        h = jax.nn.sigmoid(o) * jnp.tanh(c)
        return (h, c), h

    init = (jnp.zeros((B, H), jnp.float32), jnp.zeros((B, H), jnp.float32))
    _, hs = jax.lax.scan(step, init, x_tm)
    return hs


def encoder_ref(x_bf, params, embedding_dim):
    x_tm = jnp.transpose(x_bf, (1, 0, 2)).astype(jnp.float32)
    for p in params[:-1]:
        x_tm = _lstm_ref(x_tm, p)
    hs = _lstm_ref(x_tm, params[-1])
    return hs[-1].reshape((-1, 1, embedding_dim))


# -----------------------------------------------------------------------------
if __name__ == "__main__":
    seq_len = 8
    num_neurons = [32, 48, 4]          # [embedding_dim, mid_hidden, n_features]
    n_features = num_neurons[-1]
    embedding_dim = num_neurons[0]
    num_layers = 2
    batch = 2

    key = jax.random.PRNGKey(0)
    key_p, key_x = jax.random.split(key)
    params = make_encoder_params(key_p, num_neurons, num_layers=num_layers)
    x = jax.random.normal(key_x, (batch, seq_len, n_features), jnp.float32)

    out = encoder_forward(x, params, embedding_dim)
    out = jax.block_until_ready(out)

    assert out.shape == (batch, 1, embedding_dim), out.shape
    assert bool(jnp.all(jnp.isfinite(out)))

    ref = encoder_ref(x, params, embedding_dim)
    max_err = float(jnp.max(jnp.abs(out - ref)))
    # bf16 matmul operands (f32 accumulation) -> relaxed but still bug-catching tolerance.
    assert max_err < 3e-2, f"mismatch vs pure-JAX reference: {max_err}"

    print("KERNEL_OK")
</pallas_src>

<mosaic_0001>
module attributes {stable_mosaic.version = 11 : i64} {
  func.func @kernel(%arg0: memref<64x8xbf16, #tpu.memory_space<vmem>>, %arg1: memref<8x512xbf16, #tpu.memory_space<vmem>>, %arg2: memref<128x512xbf16, #tpu.memory_space<vmem>>, %arg3: memref<1x512xf32, #tpu.memory_space<vmem>>, %arg4: memref<256x512xbf16, #tpu.memory_space<vmem>>, %arg5: memref<1x512xf32, #tpu.memory_space<vmem>>, %arg6: memref<8x128xf32, #tpu.memory_space<vmem>>, %arg7: memref<64x512xf32, #tpu.memory_space<vmem>>) attributes {dimension_semantics = [], scalar_prefetch = 0 : i64, scratch_operands = 1 : i64, tpu.core_type = #tpu.core_type<tc>} {
    %c0 = arith.constant 0 : index
    %c0_0 = arith.constant 0 : index
    %0 = vector.load %arg0[%c0, %c0_0] : memref<64x8xbf16, #tpu.memory_space<vmem>>, vector<64x8xbf16>
    %c0_1 = arith.constant 0 : index
    %c0_2 = arith.constant 0 : index
    %1 = vector.load %arg1[%c0_1, %c0_2] : memref<8x512xbf16, #tpu.memory_space<vmem>>, vector<8x512xbf16>
    %cst = arith.constant dense<0.000000e+00> : vector<64x512xf32>
    %2 = tpu.matmul %0, %1, %cst {dimension_numbers = #tpu.dot_dimension_numbers<[1], [0], [0], [1], [0, 0, 1, 1], [], []>} : vector<64x8xbf16>, vector<8x512xbf16>, vector<64x512xf32> -> vector<64x512xf32>
    %c0_3 = arith.constant 0 : index
    %c0_4 = arith.constant 0 : index
    %3 = vector.load %arg3[%c0_3, %c0_4] : memref<1x512xf32, #tpu.memory_space<vmem>>, vector<1x512xf32>
    %4 = vector.broadcast %3 : vector<1x512xf32> to vector<64x512xf32>
    %5 = arith.addf %2, %4 : vector<64x512xf32>
    %c0_5 = arith.constant 0 : index
    %c0_6 = arith.constant 0 : index
    %6 = vector.load %arg7[%c0_5, %c0_6] : memref<64x512xf32, #tpu.memory_space<vmem>>, vector<64x512xf32>
    tpu.vector_store %arg7[%c0_5, %c0_6], %5 {strides = array<i32>} : memref<64x512xf32, #tpu.memory_space<vmem>>, vector<64x512xf32>,
    %c0_7 = arith.constant 0 : index
    %c0_8 = arith.constant 0 : index
    %7 = vector.load %arg5[%c0_7, %c0_8] : memref<1x512xf32, #tpu.memory_space<vmem>>, vector<1x512xf32>
    %8 = vector.shape_cast %7 : vector<1x512xf32> to vector<1x512xf32>
    %9 = vector.broadcast %8 : vector<1x512xf32> to vector<8x512xf32>
    %cst_9 = arith.constant 0.000000e+00 : f32
    %10 = vector.broadcast %cst_9 : f32 to vector<8x128xf32>
    %cst_10 = arith.constant 0.000000e+00 : f32
    %11 = vector.broadcast %cst_10 : f32 to vector<8x128xf32>
    %cst_11 = arith.constant 0.000000e+00 : f32
    %12 = vector.broadcast %cst_11 : f32 to vector<8x128xf32>
    %cst_12 = arith.constant 0.000000e+00 : f32
    %13 = vector.broadcast %cst_12 : f32 to vector<8x128xf32>
    %c0_13 = arith.constant 0 : index
    %c0_14 = arith.constant 0 : index
    %14 = vector.load %arg7[%c0_13, %c0_14] : memref<64x512xf32, #tpu.memory_space<vmem>>, vector<8x512xf32>
    %15 = arith.truncf %10 : vector<8x128xf32> to vector<8x128xbf16>
    %c0_15 = arith.constant 0 : index
    %c0_16 = arith.constant 0 : index
    %16 = vector.load %arg2[%c0_15, %c0_16] : memref<128x512xbf16, #tpu.memory_space<vmem>>, vector<128x512xbf16>
    %cst_17 = arith.constant dense<0.000000e+00> : vector<8x512xf32>
    %17 = tpu.matmul %15, %16, %cst_17 {dimension_numbers = #tpu.dot_dimension_numbers<[1], [0], [0], [1], [0, 0, 1, 1], [], []>} : vector<8x128xbf16>, vector<128x512xbf16>, vector<8x512xf32> -> vector<8x512xf32>
    %18 = arith.addf %14, %17 : vector<8x512xf32>
    %19 = vector.extract_strided_slice %18 {offsets = [0, 0], sizes = [8, 128], strides = [1, 1]} : vector<8x512xf32> to vector<8x128xf32>
    %cst_18 = arith.constant 5.000000e-01 : f32
    %20 = vector.broadcast %cst_18 : f32 to vector<8x128xf32>
    %21 = arith.mulf %20, %19 : vector<8x128xf32>
    %22 = math.tanh %21 : vector<8x128xf32>
    %cst_19 = arith.constant 1.000000e+00 : f32
    %23 = vector.broadcast %cst_19 : f32 to vector<8x128xf32>
    %24 = arith.addf %22, %23 : vector<8x128xf32>
    %cst_20 = arith.constant 5.000000e-01 : f32
    %25 = vector.broadcast %cst_20 : f32 to vector<8x128xf32>
    %26 = arith.mulf %25, %24 : vector<8x128xf32>
    %27 = vector.extract_strided_slice %18 {offsets = [0, 128], sizes = [8, 128], strides = [1, 1]} : vector<8x512xf32> to vector<8x128xf32>
    %cst_21 = arith.constant 5.000000e-01 : f32
    %28 = vector.broadcast %cst_21 : f32 to vector<8x128xf32>
    %29 = arith.mulf %28, %27 : vector<8x128xf32>
    %30 = math.tanh %29 : vector<8x128xf32>
    %cst_22 = arith.constant 1.000000e+00 : f32
    %31 = vector.broadcast %cst_22 : f32 to vector<8x128xf32>
    %32 = arith.addf %30, %31 : vector<8x128xf32>
    %cst_23 = arith.constant 5.000000e-01 : f32
    %33 = vector.broadcast %cst_23 : f32 to vector<8x128xf32>
    %34 = arith.mulf %33, %32 : vector<8x128xf32>
    %35 = vector.extract_strided_slice %18 {offsets = [0, 256], sizes = [8, 128], strides = [1, 1]} : vector<8x512xf32> to vector<8x128xf32>
    %36 = math.tanh %35 : vector<8x128xf32>
    %37 = vector.extract_strided_slice %18 {offsets = [0, 384], sizes = [8, 128], strides = [1, 1]} : vector<8x512xf32> to vector<8x128xf32>
    %cst_24 = arith.constant 5.000000e-01 : f32
    %38 = vector.broadcast %cst_24 : f32 to vector<8x128xf32>
    %39 = arith.mulf %38, %37 : vector<8x128xf32>
    %40 = math.tanh %39 : vector<8x128xf32>
    %cst_25 = arith.constant 1.000000e+00 : f32
    %41 = vector.broadcast %cst_25 : f32 to vector<8x128xf32>
    %42 = arith.addf %40, %41 : vector<8x128xf32>
    %cst_26 = arith.constant 5.000000e-01 : f32
    %43 = vector.broadcast %cst_26 : f32 to vector<8x128xf32>
    %44 = arith.mulf %43, %42 : vector<8x128xf32>
    %45 = arith.mulf %34, %12 : vector<8x128xf32>
    %46 = arith.mulf %26, %36 : vector<8x128xf32>
    %47 = arith.addf %45, %46 : vector<8x128xf32>
    %48 = math.tanh %47 : vector<8x128xf32>
    %49 = arith.mulf %44, %48 : vector<8x128xf32>
    %50 = tpu.concatenate %49, %11 in 1 : vector<8x128xf32>, vector<8x128xf32> -> vector<8x256xf32>
    %51 = arith.truncf %50 : vector<8x256xf32> to vector<8x256xbf16>
    %c0_27 = arith.constant 0 : index
    %c0_28 = arith.constant 0 : index
    %52 = vector.load %arg4[%c0_27, %c0_28] : memref<256x512xbf16, #tpu.memory_space<vmem>>, vector<256x512xbf16>
    %cst_29 = arith.constant dense<0.000000e+00> : vector<8x512xf32>
    %53 = tpu.matmul %51, %52, %cst_29 {dimension_numbers = #tpu.dot_dimension_numbers<[1], [0], [0], [1], [0, 0, 1, 1], [], []>} : vector<8x256xbf16>, vector<256x512xbf16>, vector<8x512xf32> -> vector<8x512xf32>
    %54 = arith.addf %53, %9 : vector<8x512xf32>
    %55 = vector.extract_strided_slice %54 {offsets = [0, 0], sizes = [8, 128], strides = [1, 1]} : vector<8x512xf32> to vector<8x128xf32>
    %cst_30 = arith.constant 5.000000e-01 : f32
    %56 = vector.broadcast %cst_30 : f32 to vector<8x128xf32>
    %57 = arith.mulf %56, %55 : vector<8x128xf32>
    %58 = math.tanh %57 : vector<8x128xf32>
    %cst_31 = arith.constant 1.000000e+00 : f32
    %59 = vector.broadcast %cst_31 : f32 to vector<8x128xf32>
    %60 = arith.addf %58, %59 : vector<8x128xf32>
    %cst_32 = arith.constant 5.000000e-01 : f32
    %61 = vector.broadcast %cst_32 : f32 to vector<8x128xf32>
    %62 = arith.mulf %61, %60 : vector<8x128xf32>
    %63 = vector.extract_strided_slice %54 {offsets = [0, 128], sizes = [8, 128], strides = [1, 1]} : vector<8x512xf32> to vector<8x128xf32>
    %cst_33 = arith.constant 5.000000e-01 : f32
    %64 = vector.broadcast %cst_33 : f32 to vector<8x128xf32>
    %65 = arith.mulf %64, %63 : vector<8x128xf32>
    %66 = math.tanh %65 : vector<8x128xf32>
    %cst_34 = arith.constant 1.000000e+00 : f32
    %67 = vector.broadcast %cst_34 : f32 to vector<8x128xf32>
    %68 = arith.addf %66, %67 : vector<8x128xf32>
    %cst_35 = arith.constant 5.000000e-01 : f32
    %69 = vector.broadcast %cst_35 : f32 to vector<8x128xf32>
    %70 = arith.mulf %69, %68 : vector<8x128xf32>
    %71 = vector.extract_strided_slice %54 {offsets = [0, 256], sizes = [8, 128], strides = [1, 1]} : vector<8x512xf32> to vector<8x128xf32>
    %72 = math.tanh %71 : vector<8x128xf32>
    %73 = vector.extract_strided_slice %54 {offsets = [0, 384], sizes = [8, 128], strides = [1, 1]} : vector<8x512xf32> to vector<8x128xf32>
    %cst_36 = arith.constant 5.000000e-01 : f32
    %74 = vector.broadcast %cst_36 : f32 to vector<8x128xf32>
    %75 = arith.mulf %74, %73 : vector<8x128xf32>
    %76 = math.tanh %75 : vector<8x128xf32>
    %cst_37 = arith.constant 1.000000e+00 : f32
    %77 = vector.broadcast %cst_37 : f32 to vector<8x128xf32>
    %78 = arith.addf %76, %77 : vector<8x128xf32>
    %cst_38 = arith.constant 5.000000e-01 : f32
    %79 = vector.broadcast %cst_38 : f32 to vector<8x128xf32>
    %80 = arith.mulf %79, %78 : vector<8x128xf32>
    %81 = arith.mulf %70, %13 : vector<8x128xf32>
    %82 = arith.mulf %62, %72 : vector<8x128xf32>
    %83 = arith.addf %81, %82 : vector<8x128xf32>
    %84 = math.tanh %83 : vector<8x128xf32>
    %85 = arith.mulf %80, %84 : vector<8x128xf32>
    %c8 = arith.constant 8 : index
    %c0_39 = arith.constant 0 : index
    %86 = vector.load %arg7[%c8, %c0_39] : memref<64x512xf32, #tpu.memory_space<vmem>>, vector<8x512xf32>
    %87 = arith.truncf %49 : vector<8x128xf32> to vector<8x128xbf16>
    %c0_40 = arith.constant 0 : index
    %c0_41 = arith.constant 0 : index
    %88 = vector.load %arg2[%c0_40, %c0_41] : memref<128x512xbf16, #tpu.memory_space<vmem>>, vector<128x512xbf16>
    %cst_42 = arith.constant dense<0.000000e+00> : vector<8x512xf32>
    %89 = tpu.matmul %87, %88, %cst_42 {dimension_numbers = #tpu.dot_dimension_numbers<[1], [0], [0], [1], [0, 0, 1, 1], [], []>} : vector<8x128xbf16>, vector<128x512xbf16>, vector<8x512xf32> -> vector<8x512xf32>
    %90 = arith.addf %86, %89 : vector<8x512xf32>
    %91 = vector.extract_strided_slice %90 {offsets = [0, 0], sizes = [8, 128], strides = [1, 1]} : vector<8x512xf32> to vector<8x128xf32>
    %cst_43 = arith.constant 5.000000e-01 : f32
    %92 = vector.broadcast %cst_43 : f32 to vector<8x128xf32>
    %93 = arith.mulf %92, %91 : vector<8x128xf32>
    %94 = math.tanh %93 : vector<8x128xf32>
    %cst_44 = arith.constant 1.000000e+00 : f32
    %95 = vector.broadcast %cst_44 : f32 to vector<8x128xf32>
    %96 = arith.addf %94, %95 : vector<8x128xf32>
    %cst_45 = arith.constant 5.000000e-01 : f32
    %97 = vector.broadcast %cst_45 : f32 to vector<8x128xf32>
    %98 = arith.mulf %97, %96 : vector<8x128xf32>
    %99 = vector.extract_strided_slice %90 {offsets = [0, 128], sizes = [8, 128], strides = [1, 1]} : vector<8x512xf32> to vector<8x128xf32>
    %cst_46 = arith.constant 5.000000e-01 : f32
    %100 = vector.broadcast %cst_46 : f32 to vector<8x128xf32>
    %101 = arith.mulf %100, %99 : vector<8x128xf32>
    %102 = math.tanh %101 : vector<8x128xf32>
    %cst_47 = arith.constant 1.000000e+00 : f32
    %103 = vector.broadcast %cst_47 : f32 to vector<8x128xf32>
    %104 = arith.addf %102, %103 : vector<8x128xf32>
    %cst_48 = arith.constant 5.000000e-01 : f32
    %105 = vector.broadcast %cst_48 : f32 to vector<8x128xf32>
    %106 = arith.mulf %105, %104 : vector<8x128xf32>
    %107 = vector.extract_strided_slice %90 {offsets = [0, 256], sizes = [8, 128], strides = [1, 1]} : vector<8x512xf32> to vector<8x128xf32>
    %108 = math.tanh %107 : vector<8x128xf32>
    %109 = vector.extract_strided_slice %90 {offsets = [0, 384], sizes = [8, 128], strides = [1, 1]} : vector<8x512xf32> to vector<8x128xf32>
    %cst_49 = arith.constant 5.000000e-01 : f32
    %110 = vector.broadcast %cst_49 : f32 to vector<8x128xf32>
    %111 = arith.mulf %110, %109 : vector<8x128xf32>
    %112 = math.tanh %111 : vector<8x128xf32>
    %cst_50 = arith.constant 1.000000e+00 : f32
    %113 = vector.broadcast %cst_50 : f32 to vector<8x128xf32>
    %114 = arith.addf %112, %113 : vector<8x128xf32>
    %cst_51 = arith.constant 5.000000e-01 : f32
    %115 = vector.broadcast %cst_51 : f32 to vector<8x128xf32>
    %116 = arith.mulf %115, %114 : vector<8x128xf32>
    %117 = arith.mulf %106, %47 : vector<8x128xf32>
    %118 = arith.mulf %98, %108 : vector<8x128xf32>
    %119 = arith.addf %117, %118 : vector<8x128xf32>
    %120 = math.tanh %119 : vector<8x128xf32>
    %121 = arith.mulf %116, %120 : vector<8x128xf32>
    %122 = tpu.concatenate %121, %85 in 1 : vector<8x128xf32>, vector<8x128xf32> -> vector<8x256xf32>
    %123 = arith.truncf %122 : vector<8x256xf32> to vector<8x256xbf16>
    %c0_52 = arith.constant 0 : index
    %c0_53 = arith.constant 0 : index
    %124 = vector.load %arg4[%c0_52, %c0_53] : memref<256x512xbf16, #tpu.memory_space<vmem>>, vector<256x512xbf16>
    %cst_54 = arith.constant dense<0.000000e+00> : vector<8x512xf32>
    %125 = tpu.matmul %123, %124, %cst_54 {dimension_numbers = #tpu.dot_dimension_numbers<[1], [0], [0], [1], [0, 0, 1, 1], [], []>} : vector<8x256xbf16>, vector<256x512xbf16>, vector<8x512xf32> -> vector<8x512xf32>
    %126 = arith.addf %125, %9 : vector<8x512xf32>
    %127 = vector.extract_strided_slice %126 {offsets = [0, 0], sizes = [8, 128], strides = [1, 1]} : vector<8x512xf32> to vector<8x128xf32>
    %cst_55 = arith.constant 5.000000e-01 : f32
    %128 = vector.broadcast %cst_55 : f32 to vector<8x128xf32>
    %129 = arith.mulf %128, %127 : vector<8x128xf32>
    %130 = math.tanh %129 : vector<8x128xf32>
    %cst_56 = arith.constant 1.000000e+00 : f32
    %131 = vector.broadcast %cst_56 : f32 to vector<8x128xf32>
    %132 = arith.addf %130, %131 : vector<8x128xf32>
    %cst_57 = arith.constant 5.000000e-01 : f32
    %133 = vector.broadcast %cst_57 : f32 to vector<8x128xf32>
    %134 = arith.mulf %133, %132 : vector<8x128xf32>
    %135 = vector.extract_strided_slice %126 {offsets = [0, 128], sizes = [8, 128], strides = [1, 1]} : vector<8x512xf32> to vector<8x128xf32>
    %cst_58 = arith.constant 5.000000e-01 : f32
    %136 = vector.broadcast %cst_58 : f32 to vector<8x128xf32>
    %137 = arith.mulf %136, %135 : vector<8x128xf32>
    %138 = math.tanh %137 : vector<8x128xf32>
    %cst_59 = arith.constant 1.000000e+00 : f32
    %139 = vector.broadcast %cst_59 : f32 to vector<8x128xf32>
    %140 = arith.addf %138, %139 : vector<8x128xf32>
    %cst_60 = arith.constant 5.000000e-01 : f32
    %141 = vector.broadcast %cst_60 : f32 to vector<8x128xf32>
    %142 = arith.mulf %141, %140 : vector<8x128xf32>
    %143 = vector.extract_strided_slice %126 {offsets = [0, 256], sizes = [8, 128], strides = [1, 1]} : vector<8x512xf32> to vector<8x128xf32>
    %144 = math.tanh %143 : vector<8x128xf32>
    %145 = vector.extract_strided_slice %126 {offsets = [0, 384], sizes = [8, 128], strides = [1, 1]} : vector<8x512xf32> to vector<8x128xf32>
    %cst_61 = arith.constant 5.000000e-01 : f32
    %146 = vector.broadcast %cst_61 : f32 to vector<8x128xf32>
    %147 = arith.mulf %146, %145 : vector<8x128xf32>
    %148 = math.tanh %147 : vector<8x128xf32>
    %cst_62 = arith.constant 1.000000e+00 : f32
    %149 = vector.broadcast %cst_62 : f32 to vector<8x128xf32>
    %150 = arith.addf %148, %149 : vector<8x128xf32>
    %cst_63 = arith.constant 5.000000e-01 : f32
    %151 = vector.broadcast %cst_63 : f32 to vector<8x128xf32>
    %152 = arith.mulf %151, %150 : vector<8x128xf32>
    %153 = arith.mulf %142, %83 : vector<8x128xf32>
    %154 = arith.mulf %134, %144 : vector<8x128xf32>
    %155 = arith.addf %153, %154 : vector<8x128xf32>
    %156 = math.tanh %155 : vector<8x128xf32>
    %157 = arith.mulf %152, %156 : vector<8x128xf32>
    %c16 = arith.constant 16 : index
    %c0_64 = arith.constant 0 : index
    %158 = vector.load %arg7[%c16, %c0_64] : memref<64x512xf32, #tpu.memory_space<vmem>>, vector<8x512xf32>
    %159 = arith.truncf %121 : vector<8x128xf32> to vector<8x128xbf16>
    %c0_65 = arith.constant 0 : index
    %c0_66 = arith.constant 0 : index
    %160 = vector.load %arg2[%c0_65, %c0_66] : memref<128x512xbf16, #tpu.memory_space<vmem>>, vector<128x512xbf16>
    %cst_67 = arith.constant dense<0.000000e+00> : vector<8x512xf32>
    %161 = tpu.matmul %159, %160, %cst_67 {dimension_numbers = #tpu.dot_dimension_numbers<[1], [0], [0], [1], [0, 0, 1, 1], [], []>} : vector<8x128xbf16>, vector<128x512xbf16>, vector<8x512xf32> -> vector<8x512xf32>
    %162 = arith.addf %158, %161 : vector<8x512xf32>
    %163 = vector.extract_strided_slice %162 {offsets = [0, 0], sizes = [8, 128], strides = [1, 1]} : vector<8x512xf32> to vector<8x128xf32>
    %cst_68 = arith.constant 5.000000e-01 : f32
    %164 = vector.broadcast %cst_68 : f32 to vector<8x128xf32>
    %165 = arith.mulf %164, %163 : vector<8x128xf32>
    %166 = math.tanh %165 : vector<8x128xf32>
    %cst_69 = arith.constant 1.000000e+00 : f32
    %167 = vector.broadcast %cst_69 : f32 to vector<8x128xf32>
    %168 = arith.addf %166, %167 : vector<8x128xf32>
    %cst_70 = arith.constant 5.000000e-01 : f32
    %169 = vector.broadcast %cst_70 : f32 to vector<8x128xf32>
    %170 = arith.mulf %169, %168 : vector<8x128xf32>
    %171 = vector.extract_strided_slice %162 {offsets = [0, 128], sizes = [8, 128], strides = [1, 1]} : vector<8x512xf32> to vector<8x128xf32>
    %cst_71 = arith.constant 5.000000e-01 : f32
    %172 = vector.broadcast %cst_71 : f32 to vector<8x128xf32>
    %173 = arith.mulf %172, %171 : vector<8x128xf32>
    %174 = math.tanh %173 : vector<8x128xf32>
    %cst_72 = arith.constant 1.000000e+00 : f32
    %175 = vector.broadcast %cst_72 : f32 to vector<8x128xf32>
    %176 = arith.addf %174, %175 : vector<8x128xf32>
    %cst_73 = arith.constant 5.000000e-01 : f32
    %177 = vector.broadcast %cst_73 : f32 to vector<8x128xf32>
    %178 = arith.mulf %177, %176 : vector<8x128xf32>
    %179 = vector.extract_strided_slice %162 {offsets = [0, 256], sizes = [8, 128], strides = [1, 1]} : vector<8x512xf32> to vector<8x128xf32>
    %180 = math.tanh %179 : vector<8x128xf32>
    %181 = vector.extract_strided_slice %162 {offsets = [0, 384], sizes = [8, 128], strides = [1, 1]} : vector<8x512xf32> to vector<8x128xf32>
    %cst_74 = arith.constant 5.000000e-01 : f32
    %182 = vector.broadcast %cst_74 : f32 to vector<8x128xf32>
    %183 = arith.mulf %182, %181 : vector<8x128xf32>
    %184 = math.tanh %183 : vector<8x128xf32>
    %cst_75 = arith.constant 1.000000e+00 : f32
    %185 = vector.broadcast %cst_75 : f32 to vector<8x128xf32>
    %186 = arith.addf %184, %185 : vector<8x128xf32>
    %cst_76 = arith.constant 5.000000e-01 : f32
    %187 = vector.broadcast %cst_76 : f32 to vector<8x128xf32>
    %188 = arith.mulf %187, %186 : vector<8x128xf32>
    %189 = arith.mulf %178, %119 : vector<8x128xf32>
    %190 = arith.mulf %170, %180 : vector<8x128xf32>
    %191 = arith.addf %189, %190 : vector<8x128xf32>
    %192 = math.tanh %191 : vector<8x128xf32>
    %193 = arith.mulf %188, %192 : vector<8x128xf32>
    %194 = tpu.concatenate %193, %157 in 1 : vector<8x128xf32>, vector<8x128xf32> -> vector<8x256xf32>
    %195 = arith.truncf %194 : vector<8x256xf32> to vector<8x256xbf16>
    %c0_77 = arith.constant 0 : index
    %c0_78 = arith.constant 0 : index
    %196 = vector.load %arg4[%c0_77, %c0_78] : memref<256x512xbf16, #tpu.memory_space<vmem>>, vector<256x512xbf16>
    %cst_79 = arith.constant dense<0.000000e+00> : vector<8x512xf32>
    %197 = tpu.matmul %195, %196, %cst_79 {dimension_numbers = #tpu.dot_dimension_numbers<[1], [0], [0], [1], [0, 0, 1, 1], [], []>} : vector<8x256xbf16>, vector<256x512xbf16>, vector<8x512xf32> -> vector<8x512xf32>
    %198 = arith.addf %197, %9 : vector<8x512xf32>
    %199 = vector.extract_strided_slice %198 {offsets = [0, 0], sizes = [8, 128], strides = [1, 1]} : vector<8x512xf32> to vector<8x128xf32>
    %cst_80 = arith.constant 5.000000e-01 : f32
    %200 = vector.broadcast %cst_80 : f32 to vector<8x128xf32>
    %201 = arith.mulf %200, %199 : vector<8x128xf32>
    %202 = math.tanh %201 : vector<8x128xf32>
    %cst_81 = arith.constant 1.000000e+00 : f32
    %203 = vector.broadcast %cst_81 : f32 to vector<8x128xf32>
    %204 = arith.addf %202, %203 : vector<8x128xf32>
    %cst_82 = arith.constant 5.000000e-01 : f32
    %205 = vector.broadcast %cst_82 : f32 to vector<8x128xf32>
    %206 = arith.mulf %205, %204 : vector<8x128xf32>
    %207 = vector.extract_strided_slice %198 {offsets = [0, 128], sizes = [8, 128], strides = [1, 1]} : vector<8x512xf32> to vector<8x128xf32>
    %cst_83 = arith.constant 5.000000e-01 : f32
    %208 = vector.broadcast %cst_83 : f32 to vector<8x128xf32>
    %209 = arith.mulf %208, %207 : vector<8x128xf32>
    %210 = math.tanh %209 : vector<8x128xf32>
    %cst_84 = arith.constant 1.000000e+00 : f32
    %211 = vector.broadcast %cst_84 : f32 to vector<8x128xf32>
    %212 = arith.addf %210, %211 : vector<8x128xf32>
    %cst_85 = arith.constant 5.000000e-01 : f32
    %213 = vector.broadcast %cst_85 : f32 to vector<8x128xf32>
    %214 = arith.mulf %213, %212 : vector<8x128xf32>
    %215 = vector.extract_strided_slice %198 {offsets = [0, 256], sizes = [8, 128], strides = [1, 1]} : vector<8x512xf32> to vector<8x128xf32>
    %216 = math.tanh %215 : vector<8x128xf32>
    %217 = vector.extract_strided_slice %198 {offsets = [0, 384], sizes = [8, 128], strides = [1, 1]} : vector<8x512xf32> to vector<8x128xf32>
    %cst_86 = arith.constant 5.000000e-01 : f32
    %218 = vector.broadcast %cst_86 : f32 to vector<8x128xf32>
    %219 = arith.mulf %218, %217 : vector<8x128xf32>
    %220 = math.tanh %219 : vector<8x128xf32>
    %cst_87 = arith.constant 1.000000e+00 : f32
    %221 = vector.broadcast %cst_87 : f32 to vector<8x128xf32>
    %222 = arith.addf %220, %221 : vector<8x128xf32>
    %cst_88 = arith.constant 5.000000e-01 : f32
    %223 = vector.broadcast %cst_88 : f32 to vector<8x128xf32>
    %224 = arith.mulf %223, %222 : vector<8x128xf32>
    %225 = arith.mulf %214, %155 : vector<8x128xf32>
    %226 = arith.mulf %206, %216 : vector<8x128xf32>
    %227 = arith.addf %225, %226 : vector<8x128xf32>
    %228 = math.tanh %227 : vector<8x128xf32>
    %229 = arith.mulf %224, %228 : vector<8x128xf32>
    %c24 = arith.constant 24 : index
    %c0_89 = arith.constant 0 : index
    %230 = vector.load %arg7[%c24, %c0_89] : memref<64x512xf32, #tpu.memory_space<vmem>>, vector<8x512xf32>
    %231 = arith.truncf %193 : vector<8x128xf32> to vector<8x128xbf16>
    %c0_90 = arith.constant 0 : index
    %c0_91 = arith.constant 0 : index
    %232 = vector.load %arg2[%c0_90, %c0_91] : memref<128x512xbf16, #tpu.memory_space<vmem>>, vector<128x512xbf16>
    %cst_92 = arith.constant dense<0.000000e+00> : vector<8x512xf32>
    %233 = tpu.matmul %231, %232, %cst_92 {dimension_numbers = #tpu.dot_dimension_numbers<[1], [0], [0], [1], [0, 0, 1, 1], [], []>} : vector<8x128xbf16>, vector<128x512xbf16>, vector<8x512xf32> -> vector<8x512xf32>
    %234 = arith.addf %230, %233 : vector<8x512xf32>
    %235 = vector.extract_strided_slice %234 {offsets = [0, 0], sizes = [8, 128], strides = [1, 1]} : vector<8x512xf32> to vector<8x128xf32>
    %cst_93 = arith.constant 5.000000e-01 : f32
    %236 = vector.broadcast %cst_93 : f32 to vector<8x128xf32>
    %237 = arith.mulf %236, %235 : vector<8x128xf32>
    %238 = math.tanh %237 : vector<8x128xf32>
    %cst_94 = arith.constant 1.000000e+00 : f32
    %239 = vector.broadcast %cst_94 : f32 to vector<8x128xf32>
    %240 = arith.addf %238, %239 : vector<8x128xf32>
    %cst_95 = arith.constant 5.000000e-01 : f32
    %241 = vector.broadcast %cst_95 : f32 to vector<8x128xf32>
    %242 = arith.mulf %241, %240 : vector<8x128xf32>
    %243 = vector.extract_strided_slice %234 {offsets = [0, 128], sizes = [8, 128], strides = [1, 1]} : vector<8x512xf32> to vector<8x128xf32>
    %cst_96 = arith.constant 5.000000e-01 : f32
    %244 = vector.broadcast %cst_96 : f32 to vector<8x128xf32>
    %245 = arith.mulf %244, %243 : vector<8x128xf32>
    %246 = math.tanh %245 : vector<8x128xf32>
    %cst_97 = arith.constant 1.000000e+00 : f32
    %247 = vector.broadcast %cst_97 : f32 to vector<8x128xf32>
    %248 = arith.addf %246, %247 : vector<8x128xf32>
    %cst_98 = arith.constant 5.000000e-01 : f32
    %249 = vector.broadcast %cst_98 : f32 to vector<8x128xf32>
    %250 = arith.mulf %249, %248 : vector<8x128xf32>
    %251 = vector.extract_strided_slice %234 {offsets = [0, 256], sizes = [8, 128], strides = [1, 1]} : vector<8x512xf32> to vector<8x128xf32>
    %252 = math.tanh %251 : vector<8x128xf32>
    %253 = vector.extract_strided_slice %234 {offsets = [0, 384], sizes = [8, 128], strides = [1, 1]} : vector<8x512xf32> to vector<8x128xf32>
    %cst_99 = arith.constant 5.000000e-01 : f32
    %254 = vector.broadcast %cst_99 : f32 to vector<8x128xf32>
    %255 = arith.mulf %254, %253 : vector<8x128xf32>
    %256 = math.tanh %255 : vector<8x128xf32>
    %cst_100 = arith.constant 1.000000e+00 : f32
    %257 = vector.broadcast %cst_100 : f32 to vector<8x128xf32>
    %258 = arith.addf %256, %257 : vector<8x128xf32>
    %cst_101 = arith.constant 5.000000e-01 : f32
    %259 = vector.broadcast %cst_101 : f32 to vector<8x128xf32>
    %260 = arith.mulf %259, %258 : vector<8x128xf32>
    %261 = arith.mulf %250, %191 : vector<8x128xf32>
    %262 = arith.mulf %242, %252 : vector<8x128xf32>
    %263 = arith.addf %261, %262 : vector<8x128xf32>
    %264 = math.tanh %263 : vector<8x128xf32>
    %265 = arith.mulf %260, %264 : vector<8x128xf32>
    %266 = tpu.concatenate %265, %229 in 1 : vector<8x128xf32>, vector<8x128xf32> -> vector<8x256xf32>
    %267 = arith.truncf %266 : vector<8x256xf32> to vector<8x256xbf16>
    %c0_102 = arith.constant 0 : index
    %c0_103 = arith.constant 0 : index
    %268 = vector.load %arg4[%c0_102, %c0_103] : memref<256x512xbf16, #tpu.memory_space<vmem>>, vector<256x512xbf16>
    %cst_104 = arith.constant dense<0.000000e+00> : vector<8x512xf32>
    %269 = tpu.matmul %267, %268, %cst_104 {dimension_numbers = #tpu.dot_dimension_numbers<[1], [0], [0], [1], [0, 0, 1, 1], [], []>} : vector<8x256xbf16>, vector<256x512xbf16>, vector<8x512xf32> -> vector<8x512xf32>
    %270 = arith.addf %269, %9 : vector<8x512xf32>
    %271 = vector.extract_strided_slice %270 {offsets = [0, 0], sizes = [8, 128], strides = [1, 1]} : vector<8x512xf32> to vector<8x128xf32>
    %cst_105 = arith.constant 5.000000e-01 : f32
    %272 = vector.broadcast %cst_105 : f32 to vector<8x128xf32>
    %273 = arith.mulf %272, %271 : vector<8x128xf32>
    %274 = math.tanh %273 : vector<8x128xf32>
    %cst_106 = arith.constant 1.000000e+00 : f32
    %275 = vector.broadcast %cst_106 : f32 to vector<8x128xf32>
    %276 = arith.addf %274, %275 : vector<8x128xf32>
    %cst_107 = arith.constant 5.000000e-01 : f32
    %277 = vector.broadcast %cst_107 : f32 to vector<8x128xf32>
    %278 = arith.mulf %277, %276 : vector<8x128xf32>
    %279 = vector.extract_strided_slice %270 {offsets = [0, 128], sizes = [8, 128], strides = [1, 1]} : vector<8x512xf32> to vector<8x128xf32>
    %cst_108 = arith.constant 5.000000e-01 : f32
    %280 = vector.broadcast %cst_108 : f32 to vector<8x128xf32>
    %281 = arith.mulf %280, %279 : vector<8x128xf32>
    %282 = math.tanh %281 : vector<8x128xf32>
    %cst_109 = arith.constant 1.000000e+00 : f32
    %283 = vector.broadcast %cst_109 : f32 to vector<8x128xf32>
    %284 = arith.addf %282, %283 : vector<8x128xf32>
    %cst_110 = arith.constant 5.000000e-01 : f32
    %285 = vector.broadcast %cst_110 : f32 to vector<8x128xf32>
    %286 = arith.mulf %285, %284 : vector<8x128xf32>
    %287 = vector.extract_strided_slice %270 {offsets = [0, 256], sizes = [8, 128], strides = [1, 1]} : vector<8x512xf32> to vector<8x128xf32>
    %288 = math.tanh %287 : vector<8x128xf32>
    %289 = vector.extract_strided_slice %270 {offsets = [0, 384], sizes = [8, 128], strides = [1, 1]} : vector<8x512xf32> to vector<8x128xf32>
    %cst_111 = arith.constant 5.000000e-01 : f32
    %290 = vector.broadcast %cst_111 : f32 to vector<8x128xf32>
    %291 = arith.mulf %290, %289 : vector<8x128xf32>
    %292 = math.tanh %291 : vector<8x128xf32>
    %cst_112 = arith.constant 1.000000e+00 : f32
    %293 = vector.broadcast %cst_112 : f32 to vector<8x128xf32>
    %294 = arith.addf %292, %293 : vector<8x128xf32>
    %cst_113 = arith.constant 5.000000e-01 : f32
    %295 = vector.broadcast %cst_113 : f32 to vector<8x128xf32>
    %296 = arith.mulf %295, %294 : vector<8x128xf32>
    %297 = arith.mulf %286, %227 : vector<8x128xf32>
    %298 = arith.mulf %278, %288 : vector<8x128xf32>
    %299 = arith.addf %297, %298 : vector<8x128xf32>
    %300 = math.tanh %299 : vector<8x128xf32>
    %301 = arith.mulf %296, %300 : vector<8x128xf32>
    %c32 = arith.constant 32 : index
    %c0_114 = arith.constant 0 : index
    %302 = vector.load %arg7[%c32, %c0_114] : memref<64x512xf32, #tpu.memory_space<vmem>>, vector<8x512xf32>
    %303 = arith.truncf %265 : vector<8x128xf32> to vector<8x128xbf16>
    %c0_115 = arith.constant 0 : index
    %c0_116 = arith.constant 0 : index
    %304 = vector.load %arg2[%c0_115, %c0_116] : memref<128x512xbf16, #tpu.memory_space<vmem>>, vector<128x512xbf16>
    %cst_117 = arith.constant dense<0.000000e+00> : vector<8x512xf32>
    %305 = tpu.matmul %303, %304, %cst_117 {dimension_numbers = #tpu.dot_dimension_numbers<[1], [0], [0], [1], [0, 0, 1, 1], [], []>} : vector<8x128xbf16>, vector<128x512xbf16>, vector<8x512xf32> -> vector<8x512xf32>
    %306 = arith.addf %302, %305 : vector<8x512xf32>
    %307 = vector.extract_strided_slice %306 {offsets = [0, 0], sizes = [8, 128], strides = [1, 1]} : vector<8x512xf32> to vector<8x128xf32>
    %cst_118 = arith.constant 5.000000e-01 : f32
    %308 = vector.broadcast %cst_118 : f32 to vector<8x128xf32>
    %309 = arith.mulf %308, %307 : vector<8x128xf32>
    %310 = math.tanh %309 : vector<8x128xf32>
    %cst_119 = arith.constant 1.000000e+00 : f32
    %311 = vector.broadcast %cst_119 : f32 to vector<8x128xf32>
    %312 = arith.addf %310, %311 : vector<8x128xf32>
    %cst_120 = arith.constant 5.000000e-01 : f32
    %313 = vector.broadcast %cst_120 : f32 to vector<8x128xf32>
    %314 = arith.mulf %313, %312 : vector<8x128xf32>
    %315 = vector.extract_strided_slice %306 {offsets = [0, 128], sizes = [8, 128], strides = [1, 1]} : vector<8x512xf32> to vector<8x128xf32>
    %cst_121 = arith.constant 5.000000e-01 : f32
    %316 = vector.broadcast %cst_121 : f32 to vector<8x128xf32>
    %317 = arith.mulf %316, %315 : vector<8x128xf32>
    %318 = math.tanh %317 : vector<8x128xf32>
    %cst_122 = arith.constant 1.000000e+00 : f32
    %319 = vector.broadcast %cst_122 : f32 to vector<8x128xf32>
    %320 = arith.addf %318, %319 : vector<8x128xf32>
    %cst_123 = arith.constant 5.000000e-01 : f32
    %321 = vector.broadcast %cst_123 : f32 to vector<8x128xf32>
    %322 = arith.mulf %321, %320 : vector<8x128xf32>
    %323 = vector.extract_strided_slice %306 {offsets = [0, 256], sizes = [8, 128], strides = [1, 1]} : vector<8x512xf32> to vector<8x128xf32>
    %324 = math.tanh %323 : vector<8x128xf32>
    %325 = vector.extract_strided_slice %306 {offsets = [0, 384], sizes = [8, 128], strides = [1, 1]} : vector<8x512xf32> to vector<8x128xf32>
    %cst_124 = arith.constant 5.000000e-01 : f32
    %326 = vector.broadcast %cst_124 : f32 to vector<8x128xf32>
    %327 = arith.mulf %326, %325 : vector<8x128xf32>
    %328 = math.tanh %327 : vector<8x128xf32>
    %cst_125 = arith.constant 1.000000e+00 : f32
    %329 = vector.broadcast %cst_125 : f32 to vector<8x128xf32>
    %330 = arith.addf %328, %329 : vector<8x128xf32>
    %cst_126 = arith.constant 5.000000e-01 : f32
    %331 = vector.broadcast %cst_126 : f32 to vector<8x128xf32>
    %332 = arith.mulf %331, %330 : vector<8x128xf32>
    %333 = arith.mulf %322, %263 : vector<8x128xf32>
    %334 = arith.mulf %314, %324 : vector<8x128xf32>
    %335 = arith.addf %333, %334 : vector<8x128xf32>
    %336 = math.tanh %335 : vector<8x128xf32>
    %337 = arith.mulf %332, %336 : vector<8x128xf32>
    %338 = tpu.concatenate %337, %301 in 1 : vector<8x128xf32>, vector<8x128xf32> -> vector<8x256xf32>
    %339 = arith.truncf %338 : vector<8x256xf32> to vector<8x256xbf16>
    %c0_127 = arith.constant 0 : index
    %c0_128 = arith.constant 0 : index
    %340 = vector.load %arg4[%c0_127, %c0_128] : memref<256x512xbf16, #tpu.memory_space<vmem>>, vector<256x512xbf16>
    %cst_129 = arith.constant dense<0.000000e+00> : vector<8x512xf32>
    %341 = tpu.matmul %339, %340, %cst_129 {dimension_numbers = #tpu.dot_dimension_numbers<[1], [0], [0], [1], [0, 0, 1, 1], [], []>} : vector<8x256xbf16>, vector<256x512xbf16>, vector<8x512xf32> -> vector<8x512xf32>
    %342 = arith.addf %341, %9 : vector<8x512xf32>
    %343 = vector.extract_strided_slice %342 {offsets = [0, 0], sizes = [8, 128], strides = [1, 1]} : vector<8x512xf32> to vector<8x128xf32>
    %cst_130 = arith.constant 5.000000e-01 : f32
    %344 = vector.broadcast %cst_130 : f32 to vector<8x128xf32>
    %345 = arith.mulf %344, %343 : vector<8x128xf32>
    %346 = math.tanh %345 : vector<8x128xf32>
    %cst_131 = arith.constant 1.000000e+00 : f32
    %347 = vector.broadcast %cst_131 : f32 to vector<8x128xf32>
    %348 = arith.addf %346, %347 : vector<8x128xf32>
    %cst_132 = arith.constant 5.000000e-01 : f32
    %349 = vector.broadcast %cst_132 : f32 to vector<8x128xf32>
    %350 = arith.mulf %349, %348 : vector<8x128xf32>
    %351 = vector.extract_strided_slice %342 {offsets = [0, 128], sizes = [8, 128], strides = [1, 1]} : vector<8x512xf32> to vector<8x128xf32>
    %cst_133 = arith.constant 5.000000e-01 : f32
    %352 = vector.broadcast %cst_133 : f32 to vector<8x128xf32>
    %353 = arith.mulf %352, %351 : vector<8x128xf32>
    %354 = math.tanh %353 : vector<8x128xf32>
    %cst_134 = arith.constant 1.000000e+00 : f32
    %355 = vector.broadcast %cst_134 : f32 to vector<8x128xf32>
    %356 = arith.addf %354, %355 : vector<8x128xf32>
    %cst_135 = arith.constant 5.000000e-01 : f32
    %357 = vector.broadcast %cst_135 : f32 to vector<8x128xf32>
    %358 = arith.mulf %357, %356 : vector<8x128xf32>
    %359 = vector.extract_strided_slice %342 {offsets = [0, 256], sizes = [8, 128], strides = [1, 1]} : vector<8x512xf32> to vector<8x128xf32>
    %360 = math.tanh %359 : vector<8x128xf32>
    %361 = vector.extract_strided_slice %342 {offsets = [0, 384], sizes = [8, 128], strides = [1, 1]} : vector<8x512xf32> to vector<8x128xf32>
    %cst_136 = arith.constant 5.000000e-01 : f32
    %362 = vector.broadcast %cst_136 : f32 to vector<8x128xf32>
    %363 = arith.mulf %362, %361 : vector<8x128xf32>
    %364 = math.tanh %363 : vector<8x128xf32>
    %cst_137 = arith.constant 1.000000e+00 : f32
    %365 = vector.broadcast %cst_137 : f32 to vector<8x128xf32>
    %366 = arith.addf %364, %365 : vector<8x128xf32>
    %cst_138 = arith.constant 5.000000e-01 : f32
    %367 = vector.broadcast %cst_138 : f32 to vector<8x128xf32>
    %368 = arith.mulf %367, %366 : vector<8x128xf32>
    %369 = arith.mulf %358, %299 : vector<8x128xf32>
    %370 = arith.mulf %350, %360 : vector<8x128xf32>
    %371 = arith.addf %369, %370 : vector<8x128xf32>
    %372 = math.tanh %371 : vector<8x128xf32>
    %373 = arith.mulf %368, %372 : vector<8x128xf32>
    %c40 = arith.constant 40 : index
    %c0_139 = arith.constant 0 : index
    %374 = vector.load %arg7[%c40, %c0_139] : memref<64x512xf32, #tpu.memory_space<vmem>>, vector<8x512xf32>
    %375 = arith.truncf %337 : vector<8x128xf32> to vector<8x128xbf16>
    %c0_140 = arith.constant 0 : index
    %c0_141 = arith.constant 0 : index
    %376 = vector.load %arg2[%c0_140, %c0_141] : memref<128x512xbf16, #tpu.memory_space<vmem>>, vector<128x512xbf16>
    %cst_142 = arith.constant dense<0.000000e+00> : vector<8x512xf32>
    %377 = tpu.matmul %375, %376, %cst_142 {dimension_numbers = #tpu.dot_dimension_numbers<[1], [0], [0], [1], [0, 0, 1, 1], [], []>} : vector<8x128xbf16>, vector<128x512xbf16>, vector<8x512xf32> -> vector<8x512xf32>
    %378 = arith.addf %374, %377 : vector<8x512xf32>
    %379 = vector.extract_strided_slice %378 {offsets = [0, 0], sizes = [8, 128], strides = [1, 1]} : vector<8x512xf32> to vector<8x128xf32>
    %cst_143 = arith.constant 5.000000e-01 : f32
    %380 = vector.broadcast %cst_143 : f32 to vector<8x128xf32>
    %381 = arith.mulf %380, %379 : vector<8x128xf32>
    %382 = math.tanh %381 : vector<8x128xf32>
    %cst_144 = arith.constant 1.000000e+00 : f32
    %383 = vector.broadcast %cst_144 : f32 to vector<8x128xf32>
    %384 = arith.addf %382, %383 : vector<8x128xf32>
    %cst_145 = arith.constant 5.000000e-01 : f32
    %385 = vector.broadcast %cst_145 : f32 to vector<8x128xf32>
    %386 = arith.mulf %385, %384 : vector<8x128xf32>
    %387 = vector.extract_strided_slice %378 {offsets = [0, 128], sizes = [8, 128], strides = [1, 1]} : vector<8x512xf32> to vector<8x128xf32>
    %cst_146 = arith.constant 5.000000e-01 : f32
    %388 = vector.broadcast %cst_146 : f32 to vector<8x128xf32>
    %389 = arith.mulf %388, %387 : vector<8x128xf32>
    %390 = math.tanh %389 : vector<8x128xf32>
    %cst_147 = arith.constant 1.000000e+00 : f32
    %391 = vector.broadcast %cst_147 : f32 to vector<8x128xf32>
    %392 = arith.addf %390, %391 : vector<8x128xf32>
    %cst_148 = arith.constant 5.000000e-01 : f32
    %393 = vector.broadcast %cst_148 : f32 to vector<8x128xf32>
    %394 = arith.mulf %393, %392 : vector<8x128xf32>
    %395 = vector.extract_strided_slice %378 {offsets = [0, 256], sizes = [8, 128], strides = [1, 1]} : vector<8x512xf32> to vector<8x128xf32>
    %396 = math.tanh %395 : vector<8x128xf32>
    %397 = vector.extract_strided_slice %378 {offsets = [0, 384], sizes = [8, 128], strides = [1, 1]} : vector<8x512xf32> to vector<8x128xf32>
    %cst_149 = arith.constant 5.000000e-01 : f32
    %398 = vector.broadcast %cst_149 : f32 to vector<8x128xf32>
    %399 = arith.mulf %398, %397 : vector<8x128xf32>
    %400 = math.tanh %399 : vector<8x128xf32>
    %cst_150 = arith.constant 1.000000e+00 : f32
    %401 = vector.broadcast %cst_150 : f32 to vector<8x128xf32>
    %402 = arith.addf %400, %401 : vector<8x128xf32>
    %cst_151 = arith.constant 5.000000e-01 : f32
    %403 = vector.broadcast %cst_151 : f32 to vector<8x128xf32>
    %404 = arith.mulf %403, %402 : vector<8x128xf32>
    %405 = arith.mulf %394, %335 : vector<8x128xf32>
    %406 = arith.mulf %386, %396 : vector<8x128xf32>
    %407 = arith.addf %405, %406 : vector<8x128xf32>
    %408 = math.tanh %407 : vector<8x128xf32>
    %409 = arith.mulf %404, %408 : vector<8x128xf32>
    %410 = tpu.concatenate %409, %373 in 1 : vector<8x128xf32>, vector<8x128xf32> -> vector<8x256xf32>
    %411 = arith.truncf %410 : vector<8x256xf32> to vector<8x256xbf16>
    %c0_152 = arith.constant 0 : index
    %c0_153 = arith.constant 0 : index
    %412 = vector.load %arg4[%c0_152, %c0_153] : memref<256x512xbf16, #tpu.memory_space<vmem>>, vector<256x512xbf16>
    %cst_154 = arith.constant dense<0.000000e+00> : vector<8x512xf32>
    %413 = tpu.matmul %411, %412, %cst_154 {dimension_numbers = #tpu.dot_dimension_numbers<[1], [0], [0], [1], [0, 0, 1, 1], [], []>} : vector<8x256xbf16>, vector<256x512xbf16>, vector<8x512xf32> -> vector<8x512xf32>
    %414 = arith.addf %413, %9 : vector<8x512xf32>
    %415 = vector.extract_strided_slice %414 {offsets = [0, 0], sizes = [8, 128], strides = [1, 1]} : vector<8x512xf32> to vector<8x128xf32>
    %cst_155 = arith.constant 5.000000e-01 : f32
    %416 = vector.broadcast %cst_155 : f32 to vector<8x128xf32>
    %417 = arith.mulf %416, %415 : vector<8x128xf32>
    %418 = math.tanh %417 : vector<8x128xf32>
    %cst_156 = arith.constant 1.000000e+00 : f32
    %419 = vector.broadcast %cst_156 : f32 to vector<8x128xf32>
    %420 = arith.addf %418, %419 : vector<8x128xf32>
    %cst_157 = arith.constant 5.000000e-01 : f32
    %421 = vector.broadcast %cst_157 : f32 to vector<8x128xf32>
    %422 = arith.mulf %421, %420 : vector<8x128xf32>
    %423 = vector.extract_strided_slice %414 {offsets = [0, 128], sizes = [8, 128], strides = [1, 1]} : vector<8x512xf32> to vector<8x128xf32>
    %cst_158 = arith.constant 5.000000e-01 : f32
    %424 = vector.broadcast %cst_158 : f32 to vector<8x128xf32>
    %425 = arith.mulf %424, %423 : vector<8x128xf32>
    %426 = math.tanh %425 : vector<8x128xf32>
    %cst_159 = arith.constant 1.000000e+00 : f32
    %427 = vector.broadcast %cst_159 : f32 to vector<8x128xf32>
    %428 = arith.addf %426, %427 : vector<8x128xf32>
    %cst_160 = arith.constant 5.000000e-01 : f32
    %429 = vector.broadcast %cst_160 : f32 to vector<8x128xf32>
    %430 = arith.mulf %429, %428 : vector<8x128xf32>
    %431 = vector.extract_strided_slice %414 {offsets = [0, 256], sizes = [8, 128], strides = [1, 1]} : vector<8x512xf32> to vector<8x128xf32>
    %432 = math.tanh %431 : vector<8x128xf32>
    %433 = vector.extract_strided_slice %414 {offsets = [0, 384], sizes = [8, 128], strides = [1, 1]} : vector<8x512xf32> to vector<8x128xf32>
    %cst_161 = arith.constant 5.000000e-01 : f32
    %434 = vector.broadcast %cst_161 : f32 to vector<8x128xf32>
    %435 = arith.mulf %434, %433 : vector<8x128xf32>
    %436 = math.tanh %435 : vector<8x128xf32>
    %cst_162 = arith.constant 1.000000e+00 : f32
    %437 = vector.broadcast %cst_162 : f32 to vector<8x128xf32>
    %438 = arith.addf %436, %437 : vector<8x128xf32>
    %cst_163 = arith.constant 5.000000e-01 : f32
    %439 = vector.broadcast %cst_163 : f32 to vector<8x128xf32>
    %440 = arith.mulf %439, %438 : vector<8x128xf32>
    %441 = arith.mulf %430, %371 : vector<8x128xf32>
    %442 = arith.mulf %422, %432 : vector<8x128xf32>
    %443 = arith.addf %441, %442 : vector<8x128xf32>
    %444 = math.tanh %443 : vector<8x128xf32>
    %445 = arith.mulf %440, %444 : vector<8x128xf32>
    %c48 = arith.constant 48 : index
    %c0_164 = arith.constant 0 : index
    %446 = vector.load %arg7[%c48, %c0_164] : memref<64x512xf32, #tpu.memory_space<vmem>>, vector<8x512xf32>
    %447 = arith.truncf %409 : vector<8x128xf32> to vector<8x128xbf16>
    %c0_165 = arith.constant 0 : index
    %c0_166 = arith.constant 0 : index
    %448 = vector.load %arg2[%c0_165, %c0_166] : memref<128x512xbf16, #tpu.memory_space<vmem>>, vector<128x512xbf16>
    %cst_167 = arith.constant dense<0.000000e+00> : vector<8x512xf32>
    %449 = tpu.matmul %447, %448, %cst_167 {dimension_numbers = #tpu.dot_dimension_numbers<[1], [0], [0], [1], [0, 0, 1, 1], [], []>} : vector<8x128xbf16>, vector<128x512xbf16>, vector<8x512xf32> -> vector<8x512xf32>
    %450 = arith.addf %446, %449 : vector<8x512xf32>
    %451 = vector.extract_strided_slice %450 {offsets = [0, 0], sizes = [8, 128], strides = [1, 1]} : vector<8x512xf32> to vector<8x128xf32>
    %cst_168 = arith.constant 5.000000e-01 : f32
    %452 = vector.broadcast %cst_168 : f32 to vector<8x128xf32>
    %453 = arith.mulf %452, %451 : vector<8x128xf32>
    %454 = math.tanh %453 : vector<8x128xf32>
    %cst_169 = arith.constant 1.000000e+00 : f32
    %455 = vector.broadcast %cst_169 : f32 to vector<8x128xf32>
    %456 = arith.addf %454, %455 : vector<8x128xf32>
    %cst_170 = arith.constant 5.000000e-01 : f32
    %457 = vector.broadcast %cst_170 : f32 to vector<8x128xf32>
    %458 = arith.mulf %457, %456 : vector<8x128xf32>
    %459 = vector.extract_strided_slice %450 {offsets = [0, 128], sizes = [8, 128], strides = [1, 1]} : vector<8x512xf32> to vector<8x128xf32>
    %cst_171 = arith.constant 5.000000e-01 : f32
    %460 = vector.broadcast %cst_171 : f32 to vector<8x128xf32>
    %461 = arith.mulf %460, %459 : vector<8x128xf32>
    %462 = math.tanh %461 : vector<8x128xf32>
    %cst_172 = arith.constant 1.000000e+00 : f32
    %463 = vector.broadcast %cst_172 : f32 to vector<8x128xf32>
    %464 = arith.addf %462, %463 : vector<8x128xf32>
    %cst_173 = arith.constant 5.000000e-01 : f32
    %465 = vector.broadcast %cst_173 : f32 to vector<8x128xf32>
    %466 = arith.mulf %465, %464 : vector<8x128xf32>
    %467 = vector.extract_strided_slice %450 {offsets = [0, 256], sizes = [8, 128], strides = [1, 1]} : vector<8x512xf32> to vector<8x128xf32>
    %468 = math.tanh %467 : vector<8x128xf32>
    %469 = vector.extract_strided_slice %450 {offsets = [0, 384], sizes = [8, 128], strides = [1, 1]} : vector<8x512xf32> to vector<8x128xf32>
    %cst_174 = arith.constant 5.000000e-01 : f32
    %470 = vector.broadcast %cst_174 : f32 to vector<8x128xf32>
    %471 = arith.mulf %470, %469 : vector<8x128xf32>
    %472 = math.tanh %471 : vector<8x128xf32>
    %cst_175 = arith.constant 1.000000e+00 : f32
    %473 = vector.broadcast %cst_175 : f32 to vector<8x128xf32>
    %474 = arith.addf %472, %473 : vector<8x128xf32>
    %cst_176 = arith.constant 5.000000e-01 : f32
    %475 = vector.broadcast %cst_176 : f32 to vector<8x128xf32>
    %476 = arith.mulf %475, %474 : vector<8x128xf32>
    %477 = arith.mulf %466, %407 : vector<8x128xf32>
    %478 = arith.mulf %458, %468 : vector<8x128xf32>
    %479 = arith.addf %477, %478 : vector<8x128xf32>
    %480 = math.tanh %479 : vector<8x128xf32>
    %481 = arith.mulf %476, %480 : vector<8x128xf32>
    %482 = tpu.concatenate %481, %445 in 1 : vector<8x128xf32>, vector<8x128xf32> -> vector<8x256xf32>
    %483 = arith.truncf %482 : vector<8x256xf32> to vector<8x256xbf16>
    %c0_177 = arith.constant 0 : index
    %c0_178 = arith.constant 0 : index
    %484 = vector.load %arg4[%c0_177, %c0_178] : memref<256x512xbf16, #tpu.memory_space<vmem>>, vector<256x512xbf16>
    %cst_179 = arith.constant dense<0.000000e+00> : vector<8x512xf32>
    %485 = tpu.matmul %483, %484, %cst_179 {dimension_numbers = #tpu.dot_dimension_numbers<[1], [0], [0], [1], [0, 0, 1, 1], [], []>} : vector<8x256xbf16>, vector<256x512xbf16>, vector<8x512xf32> -> vector<8x512xf32>
    %486 = arith.addf %485, %9 : vector<8x512xf32>
    %487 = vector.extract_strided_slice %486 {offsets = [0, 0], sizes = [8, 128], strides = [1, 1]} : vector<8x512xf32> to vector<8x128xf32>
    %cst_180 = arith.constant 5.000000e-01 : f32
    %488 = vector.broadcast %cst_180 : f32 to vector<8x128xf32>
    %489 = arith.mulf %488, %487 : vector<8x128xf32>
    %490 = math.tanh %489 : vector<8x128xf32>
    %cst_181 = arith.constant 1.000000e+00 : f32
    %491 = vector.broadcast %cst_181 : f32 to vector<8x128xf32>
    %492 = arith.addf %490, %491 : vector<8x128xf32>
    %cst_182 = arith.constant 5.000000e-01 : f32
    %493 = vector.broadcast %cst_182 : f32 to vector<8x128xf32>
    %494 = arith.mulf %493, %492 : vector<8x128xf32>
    %495 = vector.extract_strided_slice %486 {offsets = [0, 128], sizes = [8, 128], strides = [1, 1]} : vector<8x512xf32> to vector<8x128xf32>
    %cst_183 = arith.constant 5.000000e-01 : f32
    %496 = vector.broadcast %cst_183 : f32 to vector<8x128xf32>
    %497 = arith.mulf %496, %495 : vector<8x128xf32>
    %498 = math.tanh %497 : vector<8x128xf32>
    %cst_184 = arith.constant 1.000000e+00 : f32
    %499 = vector.broadcast %cst_184 : f32 to vector<8x128xf32>
    %500 = arith.addf %498, %499 : vector<8x128xf32>
    %cst_185 = arith.constant 5.000000e-01 : f32
    %501 = vector.broadcast %cst_185 : f32 to vector<8x128xf32>
    %502 = arith.mulf %501, %500 : vector<8x128xf32>
    %503 = vector.extract_strided_slice %486 {offsets = [0, 256], sizes = [8, 128], strides = [1, 1]} : vector<8x512xf32> to vector<8x128xf32>
    %504 = math.tanh %503 : vector<8x128xf32>
    %505 = vector.extract_strided_slice %486 {offsets = [0, 384], sizes = [8, 128], strides = [1, 1]} : vector<8x512xf32> to vector<8x128xf32>
    %cst_186 = arith.constant 5.000000e-01 : f32
    %506 = vector.broadcast %cst_186 : f32 to vector<8x128xf32>
    %507 = arith.mulf %506, %505 : vector<8x128xf32>
    %508 = math.tanh %507 : vector<8x128xf32>
    %cst_187 = arith.constant 1.000000e+00 : f32
    %509 = vector.broadcast %cst_187 : f32 to vector<8x128xf32>
    %510 = arith.addf %508, %509 : vector<8x128xf32>
    %cst_188 = arith.constant 5.000000e-01 : f32
    %511 = vector.broadcast %cst_188 : f32 to vector<8x128xf32>
    %512 = arith.mulf %511, %510 : vector<8x128xf32>
    %513 = arith.mulf %502, %443 : vector<8x128xf32>
    %514 = arith.mulf %494, %504 : vector<8x128xf32>
    %515 = arith.addf %513, %514 : vector<8x128xf32>
    %516 = math.tanh %515 : vector<8x128xf32>
    %517 = arith.mulf %512, %516 : vector<8x128xf32>
    %c56 = arith.constant 56 : index
    %c0_189 = arith.constant 0 : index
    %518 = vector.load %arg7[%c56, %c0_189] : memref<64x512xf32, #tpu.memory_space<vmem>>, vector<8x512xf32>
    %519 = arith.truncf %481 : vector<8x128xf32> to vector<8x128xbf16>
    %c0_190 = arith.constant 0 : index
    %c0_191 = arith.constant 0 : index
    %520 = vector.load %arg2[%c0_190, %c0_191] : memref<128x512xbf16, #tpu.memory_space<vmem>>, vector<128x512xbf16>
    %cst_192 = arith.constant dense<0.000000e+00> : vector<8x512xf32>
    %521 = tpu.matmul %519, %520, %cst_192 {dimension_numbers = #tpu.dot_dimension_numbers<[1], [0], [0], [1], [0, 0, 1, 1], [], []>} : vector<8x128xbf16>, vector<128x512xbf16>, vector<8x512xf32> -> vector<8x512xf32>
    %522 = arith.addf %518, %521 : vector<8x512xf32>
    %523 = vector.extract_strided_slice %522 {offsets = [0, 0], sizes = [8, 128], strides = [1, 1]} : vector<8x512xf32> to vector<8x128xf32>
    %cst_193 = arith.constant 5.000000e-01 : f32
    %524 = vector.broadcast %cst_193 : f32 to vector<8x128xf32>
    %525 = arith.mulf %524, %523 : vector<8x128xf32>
    %526 = math.tanh %525 : vector<8x128xf32>
    %cst_194 = arith.constant 1.000000e+00 : f32
    %527 = vector.broadcast %cst_194 : f32 to vector<8x128xf32>
    %528 = arith.addf %526, %527 : vector<8x128xf32>
    %cst_195 = arith.constant 5.000000e-01 : f32
    %529 = vector.broadcast %cst_195 : f32 to vector<8x128xf32>
    %530 = arith.mulf %529, %528 : vector<8x128xf32>
    %531 = vector.extract_strided_slice %522 {offsets = [0, 128], sizes = [8, 128], strides = [1, 1]} : vector<8x512xf32> to vector<8x128xf32>
    %cst_196 = arith.constant 5.000000e-01 : f32
    %532 = vector.broadcast %cst_196 : f32 to vector<8x128xf32>
    %533 = arith.mulf %532, %531 : vector<8x128xf32>
    %534 = math.tanh %533 : vector<8x128xf32>
    %cst_197 = arith.constant 1.000000e+00 : f32
    %535 = vector.broadcast %cst_197 : f32 to vector<8x128xf32>
    %536 = arith.addf %534, %535 : vector<8x128xf32>
    %cst_198 = arith.constant 5.000000e-01 : f32
    %537 = vector.broadcast %cst_198 : f32 to vector<8x128xf32>
    %538 = arith.mulf %537, %536 : vector<8x128xf32>
    %539 = vector.extract_strided_slice %522 {offsets = [0, 256], sizes = [8, 128], strides = [1, 1]} : vector<8x512xf32> to vector<8x128xf32>
    %540 = math.tanh %539 : vector<8x128xf32>
    %541 = vector.extract_strided_slice %522 {offsets = [0, 384], sizes = [8, 128], strides = [1, 1]} : vector<8x512xf32> to vector<8x128xf32>
    %cst_199 = arith.constant 5.000000e-01 : f32
    %542 = vector.broadcast %cst_199 : f32 to vector<8x128xf32>
    %543 = arith.mulf %542, %541 : vector<8x128xf32>
    %544 = math.tanh %543 : vector<8x128xf32>
    %cst_200 = arith.constant 1.000000e+00 : f32
    %545 = vector.broadcast %cst_200 : f32 to vector<8x128xf32>
    %546 = arith.addf %544, %545 : vector<8x128xf32>
    %cst_201 = arith.constant 5.000000e-01 : f32
    %547 = vector.broadcast %cst_201 : f32 to vector<8x128xf32>
    %548 = arith.mulf %547, %546 : vector<8x128xf32>
    %549 = arith.mulf %538, %479 : vector<8x128xf32>
    %550 = arith.mulf %530, %540 : vector<8x128xf32>
    %551 = arith.addf %549, %550 : vector<8x128xf32>
    %552 = math.tanh %551 : vector<8x128xf32>
    %553 = arith.mulf %548, %552 : vector<8x128xf32>
    %554 = tpu.concatenate %553, %517 in 1 : vector<8x128xf32>, vector<8x128xf32> -> vector<8x256xf32>
    %555 = arith.truncf %554 : vector<8x256xf32> to vector<8x256xbf16>
    %c0_202 = arith.constant 0 : index
    %c0_203 = arith.constant 0 : index
    %556 = vector.load %arg4[%c0_202, %c0_203] : memref<256x512xbf16, #tpu.memory_space<vmem>>, vector<256x512xbf16>
    %cst_204 = arith.constant dense<0.000000e+00> : vector<8x512xf32>
    %557 = tpu.matmul %555, %556, %cst_204 {dimension_numbers = #tpu.dot_dimension_numbers<[1], [0], [0], [1], [0, 0, 1, 1], [], []>} : vector<8x256xbf16>, vector<256x512xbf16>, vector<8x512xf32> -> vector<8x512xf32>
    %558 = arith.addf %557, %9 : vector<8x512xf32>
    %559 = vector.extract_strided_slice %558 {offsets = [0, 0], sizes = [8, 128], strides = [1, 1]} : vector<8x512xf32> to vector<8x128xf32>
    %cst_205 = arith.constant 5.000000e-01 : f32
    %560 = vector.broadcast %cst_205 : f32 to vector<8x128xf32>
    %561 = arith.mulf %560, %559 : vector<8x128xf32>
    %562 = math.tanh %561 : vector<8x128xf32>
    %cst_206 = arith.constant 1.000000e+00 : f32
    %563 = vector.broadcast %cst_206 : f32 to vector<8x128xf32>
    %564 = arith.addf %562, %563 : vector<8x128xf32>
    %cst_207 = arith.constant 5.000000e-01 : f32
    %565 = vector.broadcast %cst_207 : f32 to vector<8x128xf32>
    %566 = arith.mulf %565, %564 : vector<8x128xf32>
    %567 = vector.extract_strided_slice %558 {offsets = [0, 128], sizes = [8, 128], strides = [1, 1]} : vector<8x512xf32> to vector<8x128xf32>
    %cst_208 = arith.constant 5.000000e-01 : f32
    %568 = vector.broadcast %cst_208 : f32 to vector<8x128xf32>
    %569 = arith.mulf %568, %567 : vector<8x128xf32>
    %570 = math.tanh %569 : vector<8x128xf32>
    %cst_209 = arith.constant 1.000000e+00 : f32
    %571 = vector.broadcast %cst_209 : f32 to vector<8x128xf32>
    %572 = arith.addf %570, %571 : vector<8x128xf32>
    %cst_210 = arith.constant 5.000000e-01 : f32
    %573 = vector.broadcast %cst_210 : f32 to vector<8x128xf32>
    %574 = arith.mulf %573, %572 : vector<8x128xf32>
    %575 = vector.extract_strided_slice %558 {offsets = [0, 256], sizes = [8, 128], strides = [1, 1]} : vector<8x512xf32> to vector<8x128xf32>
    %576 = math.tanh %575 : vector<8x128xf32>
    %577 = vector.extract_strided_slice %558 {offsets = [0, 384], sizes = [8, 128], strides = [1, 1]} : vector<8x512xf32> to vector<8x128xf32>
    %cst_211 = arith.constant 5.000000e-01 : f32
    %578 = vector.broadcast %cst_211 : f32 to vector<8x128xf32>
    %579 = arith.mulf %578, %577 : vector<8x128xf32>
    %580 = math.tanh %579 : vector<8x128xf32>
    %cst_212 = arith.constant 1.000000e+00 : f32
    %581 = vector.broadcast %cst_212 : f32 to vector<8x128xf32>
    %582 = arith.addf %580, %581 : vector<8x128xf32>
    %cst_213 = arith.constant 5.000000e-01 : f32
    %583 = vector.broadcast %cst_213 : f32 to vector<8x128xf32>
    %584 = arith.mulf %583, %582 : vector<8x128xf32>
    %585 = arith.mulf %574, %515 : vector<8x128xf32>
    %586 = arith.mulf %566, %576 : vector<8x128xf32>
    %587 = arith.addf %585, %586 : vector<8x128xf32>
    %588 = math.tanh %587 : vector<8x128xf32>
    %589 = arith.mulf %584, %588 : vector<8x128xf32>
    %c0_214 = arith.constant 0 : index
    %c0_215 = arith.constant 0 : index
    %590 = vector.load %arg6[%c0_214, %c0_215] : memref<8x128xf32, #tpu.memory_space<vmem>>, vector<8x128xf32>
    tpu.vector_store %arg6[%c0_214, %c0_215], %589 {strides = array<i32>} : memref<8x128xf32, #tpu.memory_space<vmem>>, vector<8x128xf32>,
    return
  }
}

</mosaic_0001>

<bundles_post_ra>
// kernel: encoder_forward.1
= control target key start
LH: loop header
LB: loop body
LE: loop exit
PB: predicated region body
PF: predicated region fallthrough
CT: control target
= control target key end

     0   :  { %vm99_vm0 = vcmask 1043456   ;;  %v5746_v2 = vmov 0   ;;  %vm86_vm1 = vcmask 64512   ;;  %s5739_s1 = inlined_call_operand.vmem [shape: bf16[8,512], index: 1, kind: input, shape index: {}]   ;;  %s5740_s0 = inlined_call_operand.vmem [shape: bf16[64,8], index: 0, kind: input, shape index: {}]   ;;  %s5741_s2 = inlined_call_operand.vmem [shape: bf16[128,512], index: 2, kind: input, shape index: {}]   ;;  %s5742_s4 = inlined_call_operand.vmem [shape: bf16[256,512], index: 4, kind: input, shape index: {}]   ;;  %s5743_s3 = inlined_call_operand.vmem [shape: f32[1,512], index: 3, kind: input, shape index: {}]   ;;  %s5744_s5 = inlined_call_operand.vmem [shape: f32[1,512], index: 5, kind: input, shape index: {}]   ;;  %s5745_s6 = inlined_call_operand.vmem [shape: f32[8,128], index: 6, kind: output, shape index: {}]  }
   0x1   :  { %v32_v0 = vld [vmem:[%s5739_s1] sm:$0xff]  ;;  %v33_v1 = vld [vmem:[%s5739_s1 + $0x8] sm:$0xff]  ;;  %144 = vmatprep.mubr.bf16.mxu0 %v5746_v2  ;;  %217 = vmatprep.mubr.bf16.mxu1 %v5746_v2  ;;  %v2719_v29 = vld [vmem:[%s5740_s0 + $0x10] sm:$0xff]  }
   0x2   :  { %v2578_v3 = vcombine.high %v32_v0, %v32_v0  ;;  %v2580_v4 = vcombine.high %v33_v1, %v33_v1  ;;  %v2577_v5 = vcombine.low %v32_v0, %v32_v0  ;;  %v2579_v6 = vcombine.low %v33_v1, %v33_v1  ;;  %v2693_v7 = vld [vmem:[%s5740_s0] sm:$0xff]   ;;  %v3249_v11 = vld [vmem:[%s5741_s2 + $0xc] ss:$16 sps:$4 sm:$0xff]   ;;  %v3259_v13 = vld [vmem:[%s5741_s2 + $0x8] ss:$16 sps:$4 sm:$0xff]  }
   0x3   :  { %v3244_v8 = vld [vmem:[%s5741_s2 + $0x4] ss:$16 sps:$4 sm:$0xff]   ;;  %v3254_v12 = vld [vmem:[%s5741_s2] ss:$16 sps:$4 sm:$0xff]   ;;  %v3271_v15 = vld [vmem:[%s5741_s2 + $0x2c] ss:$16 sps:$4 sm:$0xff]  }
   0x4   :  { %2581 = vmatprep.subr.msk.bf16.mxu0 %vm99_vm0, %v2578_v3  ;;  %2586 = vmatprep.subr.msk.bf16.mxu1 %vm99_vm0, %v2580_v4  ;;  %v101_v9 = vsel %vm99_vm0, %v2577_v5, 0  ;;  %v107_v10 = vsel %vm99_vm0, %v2579_v6, 0  ;;  %v3266_v14 = vld [vmem:[%s5741_s2 + $0x24] ss:$16 sps:$4 sm:$0xff]   ;;  %v3276_v16 = vld [vmem:[%s5741_s2 + $0x20] ss:$16 sps:$4 sm:$0xff]  }
   0x5   :  { %113 = vmatpush1.bf16.msra.mxu0 %v101_v9  ;;  %186 = vmatpush1.bf16.msra.mxu1 %v107_v10  ;;  %v3283_v17 = vld [vmem:[%s5741_s2 + $0x28] ss:$16 sps:$4 sm:$0xff]   ;;  %v3290_v18 = vld [vmem:[%s5741_s2 + $0x44] ss:$16 sps:$4 sm:$0xff]   ;;  %v3297_v19 = vld [vmem:[%s5741_s2 + $0x4c] ss:$16 sps:$4 sm:$0xff]  }
   0x6   :  { %508 = vmatprep.subr.bf16.mxu0 %v3244_v8  ;;  %549 = vmatprep.subr.bf16.mxu1 %v3249_v11  ;;  %v2706_v20 = vld [vmem:[%s5740_s0 + $0x8] sm:$0xff]   ;;  %v3307_v21 = vld [vmem:[%s5741_s2 + $0x40] ss:$16 sps:$4 sm:$0xff]   ;;  %v3319_v23 = vld [vmem:[%s5741_s2 + $0x64] ss:$16 sps:$4 sm:$0xff]  }
   0x7   :  { %v3314_v22 = vld [vmem:[%s5741_s2 + $0x48] ss:$16 sps:$4 sm:$0xff]   ;;  %v3326_v24 = vld [vmem:[%s5741_s2 + $0x6c] ss:$16 sps:$4 sm:$0xff]   ;;  %v3335_v25 = vld [vmem:[%s5741_s2 + $0x60] ss:$16 sps:$4 sm:$0xff]  }
   0x8   :  { %2582 = vmatmul.mubr.msk.bf16.vlgmr.msra.gmra.mrb[0].mxu0 %vm86_vm1, %v2693_v7  ;;  %2587 = vmatmul.mubr.msk.bf16.vlgmr.msra.gmra.mrb[0].mxu1 %vm86_vm1, %v2693_v7  ;;  %v3340_v26 = vld [vmem:[%s5741_s2 + $0x68] ss:$16 sps:$4 sm:$0xff]   ;;  %v3345_v27 = vld [vmem:[%s5741_s2 + $0x84] ss:$16 sps:$4 sm:$0xff]   ;;  %v3352_v28 = vld [vmem:[%s5741_s2 + $0x8c] ss:$16 sps:$4 sm:$0xff]  }
   0x9   :  { %509 = vmatpush1.bf16.msra.mxu0 %v3254_v12  ;;  %550 = vmatpush1.bf16.msra.mxu1 %v3259_v13  ;;  %v3362_v30 = vld [vmem:[%s5741_s2 + $0x80] ss:$16 sps:$4 sm:$0xff]   ;;  %v3367_v31 = vld [vmem:[%s5741_s2 + $0x88] ss:$16 sps:$4 sm:$0xff]   ;;  %v3374_v32 = vld [vmem:[%s5741_s2 + $0xa4] ss:$16 sps:$4 sm:$0xff]  }
   0xa   :  { %510 = vmatprep.subr.bf16.mxu0 %v3266_v14  ;;  %551 = vmatprep.subr.bf16.mxu1 %v3271_v15  ;;  %v3381_v33 = vld [vmem:[%s5741_s2 + $0xac] ss:$16 sps:$4 sm:$0xff]   ;;  %v3388_v34 = vld [vmem:[%s5741_s2 + $0xa0] ss:$16 sps:$4 sm:$0xff]   ;;  %v3395_v35 = vld [vmem:[%s5741_s2 + $0xa8] ss:$16 sps:$4 sm:$0xff]  }
   0xb   :  { %154 = vmatprep.mubr.bf16.mxu0 %v5746_v2  ;;  %227 = vmatprep.mubr.bf16.mxu1 %v5746_v2  ;;  %v3402_v36 = vld [vmem:[%s5741_s2 + $0xc4] ss:$16 sps:$4 sm:$0xff]   ;;  %v3407_v37 = vld [vmem:[%s5741_s2 + $0xcc] ss:$16 sps:$4 sm:$0xff]   ;;  %v3419_v39 = vld [vmem:[%s5741_s2 + $0xc0] ss:$16 sps:$4 sm:$0xff]  }
   0xc   :  { %v2732_v38 = vld [vmem:[%s5740_s0 + $0x18] sm:$0xff]   ;;  %v3431_v41 = vld [vmem:[%s5741_s2 + $0xe4] ss:$16 sps:$4 sm:$0xff]   ;;  %v3445_v43 = vld [vmem:[%s5741_s2 + $0xe0] ss:$16 sps:$4 sm:$0xff]  }
   0xd   :  { %511 = vmatpush1.bf16.msra.mxu0 %v3276_v16  ;;  %552 = vmatpush1.bf16.msra.mxu1 %v3283_v17  ;;  %v3424_v40 = vld [vmem:[%s5741_s2 + $0xc8] ss:$16 sps:$4 sm:$0xff]   ;;  %v3436_v42 = vld [vmem:[%s5741_s2 + $0xec] ss:$16 sps:$4 sm:$0xff]   ;;  %v3463_v45 = vld [vmem:[%s5742_s4 + $0x4] ss:$16 sps:$4 sm:$0xff]  }
   0xe   :  { %512 = vmatprep.subr.bf16.mxu0 %v3290_v18  ;;  %553 = vmatprep.subr.bf16.mxu1 %v3297_v19  ;;  %v3450_v44 = vld [vmem:[%s5741_s2 + $0xe8] ss:$16 sps:$4 sm:$0xff]   ;;  %v3468_v46 = vld [vmem:[%s5742_s4 + $0xc] ss:$16 sps:$4 sm:$0xff]   ;;  %v3474_v47 = vld [vmem:[%s5742_s4] ss:$16 sps:$4 sm:$0xff]  }
   0xf   :  { %v3479_v48 = vld [vmem:[%s5742_s4 + $0x8] ss:$16 sps:$4 sm:$0xff]   ;;  %v3487_v49 = vld [vmem:[%s5742_s4 + $0x24] ss:$16 sps:$4 sm:$0xff]   ;;  %v3492_v50 = vld [vmem:[%s5742_s4 + $0x2c] ss:$16 sps:$4 sm:$0xff]  }
  0x10   :  { %2583 = vmatmul.mubr.msk.bf16.gmra.mrb[4].mxu0 %vm86_vm1, %v2706_v20  ;;  %2588 = vmatmul.mubr.msk.bf16.gmra.mrb[4].mxu1 %vm86_vm1, %v2706_v20  ;;  %v3497_v51 = vld [vmem:[%s5742_s4 + $0x20] ss:$16 sps:$4 sm:$0xff]   ;;  %v3502_v52 = vld [vmem:[%s5742_s4 + $0x28] ss:$16 sps:$4 sm:$0xff]   ;;  %v3509_v53 = vld [vmem:[%s5742_s4 + $0x44] ss:$16 sps:$4 sm:$0xff]  }
  0x11   :  { %513 = vmatpush1.bf16.msra.mxu0 %v3307_v21  ;;  %554 = vmatpush1.bf16.msra.mxu1 %v3314_v22  ;;  %v3514_v54 = vld [vmem:[%s5742_s4 + $0x4c] ss:$16 sps:$4 sm:$0xff]   ;;  %v3523_v55 = vld [vmem:[%s5742_s4 + $0x40] ss:$16 sps:$4 sm:$0xff]   ;;  %v3528_v56 = vld [vmem:[%s5742_s4 + $0x48] ss:$16 sps:$4 sm:$0xff]  }
  0x12   :  { %514 = vmatprep.subr.bf16.mxu0 %v3319_v23  ;;  %555 = vmatprep.subr.bf16.mxu1 %v3326_v24  ;;  %6118 = vst [vmem:[#allocation3_spill] sm:$0xff] %v3514_v54  ;;  %6119 = vst [vmem:[#allocation4_spill] sm:$0xff] %v3523_v55  ;;  %v3535_v57 = vld [vmem:[%s5742_s4 + $0x64] ss:$16 sps:$4 sm:$0xff]   ;;  %v3540_v58 = vld [vmem:[%s5742_s4 + $0x6c] ss:$16 sps:$4 sm:$0xff]  }
  0x13   :  { %164 = vmatprep.mubr.bf16.mxu0 %v5746_v2  ;;  %237 = vmatprep.mubr.bf16.mxu1 %v5746_v2  ;;  %6120 = vst [vmem:[#allocation5_spill] sm:$0xff] %v3528_v56  ;;  %6121 = vst [vmem:[#allocation6_spill] sm:$0xff] %v3535_v57  ;;  %v3545_v59 = vld [vmem:[%s5742_s4 + $0x60] ss:$16 sps:$4 sm:$0xff]   ;;  %v3550_v60 = vld [vmem:[%s5742_s4 + $0x68] ss:$16 sps:$4 sm:$0xff]  }
  0x14   :  { %6122 = vst [vmem:[#allocation7_spill] sm:$0xff] %v3540_v58  ;;  %6123 = vst [vmem:[#allocation8_spill] sm:$0xff] %v3545_v59  ;;  %v3557_v61 = vld [vmem:[%s5742_s4 + $0x84] ss:$16 sps:$4 sm:$0xff]   ;;  %v3562_v62 = vld [vmem:[%s5742_s4 + $0x8c] ss:$16 sps:$4 sm:$0xff]  }
  0x15   :  { %515 = vmatpush1.bf16.msra.mxu0 %v3335_v25  ;;  %556 = vmatpush1.bf16.msra.mxu1 %v3340_v26  ;;  %6124 = vst [vmem:[#allocation9_spill] sm:$0xff] %v3550_v60  ;;  %6125 = vst [vmem:[#allocation10_spill] sm:$0xff] %v3557_v61  ;;  %v3571_v63 = vld [vmem:[%s5742_s4 + $0x80] ss:$16 sps:$4 sm:$0xff]   ;;  %v3576_v0 = vld [vmem:[%s5742_s4 + $0x88] ss:$16 sps:$4 sm:$0xff]  }
  0x16   :  { %516 = vmatprep.subr.bf16.mxu0 %v3345_v27  ;;  %557 = vmatprep.subr.bf16.mxu1 %v3352_v28  ;;  %6126 = vst [vmem:[#allocation11_spill] sm:$0xff] %v3562_v62  ;;  %6127 = vst [vmem:[#allocation12_spill] sm:$0xff] %v3571_v63  ;;  %v3583_v1 = vld [vmem:[%s5742_s4 + $0xa4] ss:$16 sps:$4 sm:$0xff]   ;;  %v3588_v3 = vld [vmem:[%s5742_s4 + $0xac] ss:$16 sps:$4 sm:$0xff]  }
  0x17   :  { %6128 = vst [vmem:[#allocation13_spill] sm:$0xff] %v3576_v0  ;;  %6129 = vst [vmem:[#allocation14_spill] sm:$0xff] %v3583_v1  ;;  %v3593_v4 = vld [vmem:[%s5742_s4 + $0xa0] ss:$16 sps:$4 sm:$0xff]   ;;  %v3598_v5 = vld [vmem:[%s5742_s4 + $0xa8] ss:$16 sps:$4 sm:$0xff]  }
  0x18   :  { %2584 = vmatmul.mubr.msk.bf16.gmra.mrb[8].mxu0 %vm86_vm1, %v2719_v29  ;;  %2589 = vmatmul.mubr.msk.bf16.gmra.mrb[8].mxu1 %vm86_vm1, %v2719_v29  ;;  %6130 = vst [vmem:[#allocation15_spill] sm:$0xff] %v3588_v3  ;;  %6131 = vst [vmem:[#allocation16_spill] sm:$0xff] %v3593_v4  ;;  %v3605_v6 = vld [vmem:[%s5742_s4 + $0xc4] ss:$16 sps:$4 sm:$0xff]   ;;  %v3610_v7 = vld [vmem:[%s5742_s4 + $0xcc] ss:$16 sps:$4 sm:$0xff]  }
  0x19   :  { %517 = vmatpush1.bf16.msra.mxu0 %v3362_v30  ;;  %558 = vmatpush1.bf16.msra.mxu1 %v3367_v31  ;;  %6132 = vst [vmem:[#allocation17_spill] sm:$0xff] %v3598_v5  ;;  %6133 = vst [vmem:[#allocation18_spill] sm:$0xff] %v3605_v6  ;;  %v3619_v9 = vld [vmem:[%s5742_s4 + $0xc0] ss:$16 sps:$4 sm:$0xff]   ;;  %v3624_v10 = vld [vmem:[%s5742_s4 + $0xc8] ss:$16 sps:$4 sm:$0xff]  }
  0x1a   :  { %518 = vmatprep.subr.bf16.mxu0 %v3374_v32  ;;  %559 = vmatprep.subr.bf16.mxu1 %v3381_v33  ;;  %6134 = vst [vmem:[#allocation19_spill] sm:$0xff] %v3610_v7  ;;  %6135 = vst [vmem:[#allocation20_spill] sm:$0xff] %v3619_v9  ;;  %v3631_v20 = vld [vmem:[%s5742_s4 + $0xe4] ss:$16 sps:$4 sm:$0xff]   ;;  %v3636_v29 = vld [vmem:[%s5742_s4 + $0xec] ss:$16 sps:$4 sm:$0xff]  }
  0x1b   :  { %174 = vmatprep.mubr.bf16.mxu0 %v5746_v2  ;;  %247 = vmatprep.mubr.bf16.mxu1 %v5746_v2  ;;  %6136 = vst [vmem:[#allocation21_spill] sm:$0xff] %v3624_v10  ;;  %6137 = vst [vmem:[#allocation22_spill] sm:$0xff] %v3631_v20 }
  0x1c   :  { %6138 = vst [vmem:[#allocation23_spill] sm:$0xff] %v3636_v29 }
  0x1d   :  { %519 = vmatpush1.bf16.msra.mxu0 %v3388_v34  ;;  %560 = vmatpush1.bf16.msra.mxu1 %v3395_v35 }
  0x1e   :  { %520 = vmatprep.subr.bf16.mxu0 %v3402_v36  ;;  %561 = vmatprep.subr.bf16.mxu1 %v3407_v37 }
  0x20   :  { %2585 = vmatmul.mubr.msk.bf16.gmra.mrb[12].mxu0 %vm86_vm1, %v2732_v38  ;;  %2590 = vmatmul.mubr.msk.bf16.gmra.mrb[12].mxu1 %vm86_vm1, %v2732_v38  ;;  %v3641_v38 = vld [vmem:[%s5742_s4 + $0xe0] ss:$16 sps:$4 sm:$0xff]  }
  0x21   :  { %521 = vmatpush1.bf16.msra.mxu0 %v3419_v39  ;;  %562 = vmatpush1.bf16.msra.mxu1 %v3424_v40  ;;  %6139 = vst [vmem:[#allocation24_spill] sm:$0xff] %v3641_v38 }
  0x22   :  { %522 = vmatprep.subr.bf16.mxu0 %v3431_v41  ;;  %563 = vmatprep.subr.bf16.mxu1 %v3436_v42 }
  0x23   :  { %540 = vmatprep.mubr.bf16.mxu0 %v5746_v2  ;;  %581 = vmatprep.mubr.bf16.mxu1 %v5746_v2 }
  0x25   :  { %523 = vmatpush1.bf16.msra.mxu0 %v3445_v43  ;;  %564 = vmatpush1.bf16.msra.mxu1 %v3450_v44 }
  0x26   :  { %998 = vmatprep.subr.bf16.mxu0 %v3463_v45  ;;  %1039 = vmatprep.subr.bf16.mxu1 %v3468_v46 }
  0x28   :  { %541 = vmatmul.mubr.bf16.vlgmr.msra.gmra.mrb[16].mxu0 %v5746_v2  ;;  %582 = vmatmul.mubr.bf16.vlgmr.msra.gmra.mrb[16].mxu1 %v5746_v2  ;;  %v3646_v2 = vld [vmem:[%s5742_s4 + $0xe8] ss:$16 sps:$4 sm:$0xff]  }
  0x29   :  { %999 = vmatpush1.bf16.msra.mxu0 %v3474_v47  ;;  %1040 = vmatpush1.bf16.msra.mxu1 %v3479_v48  ;;  %6140 = vst [vmem:[#allocation25_spill] sm:$0xff] %v3646_v2 }
  0x2a   :  { %1000 = vmatprep.subr.bf16.mxu0 %v3487_v49  ;;  %1041 = vmatprep.subr.bf16.mxu1 %v3492_v50 }
  0x2d   :  { %1001 = vmatpush1.bf16.msra.mxu0 %v3497_v51  ;;  %1042 = vmatpush1.bf16.msra.mxu1 %v3502_v52 }
  0x2e   :  { %1002 = vmatprep.subr.bf16.mxu0 %v3509_v53  ;;  %1043 = vmatprep.subr.bf16.mxu1 %v3514_v54 }
  0x31   :  { %1003 = vmatpush1.bf16.msra.mxu0 %v3523_v55  ;;  %1044 = vmatpush1.bf16.msra.mxu1 %v3528_v56 }
  0x32   :  { %1004 = vmatprep.subr.bf16.mxu0 %v3535_v57  ;;  %1045 = vmatprep.subr.bf16.mxu1 %v3540_v58 }
  0x35   :  { %1005 = vmatpush1.bf16.msra.mxu0 %v3545_v59  ;;  %1046 = vmatpush1.bf16.msra.mxu1 %v3550_v60 }
  0x36   :  { %1006 = vmatprep.subr.bf16.mxu0 %v3557_v61  ;;  %1047 = vmatprep.subr.bf16.mxu1 %v3562_v62 }
  0x39   :  { %1007 = vmatpush1.bf16.msra.mxu0 %v3571_v63  ;;  %1048 = vmatpush1.bf16.msra.mxu1 %v3576_v0 }
  0x3a   :  { %1008 = vmatprep.subr.bf16.mxu0 %v3583_v1  ;;  %1049 = vmatprep.subr.bf16.mxu1 %v3588_v3 }
  0x3d   :  { %1009 = vmatpush1.bf16.msra.mxu0 %v3593_v4  ;;  %1050 = vmatpush1.bf16.msra.mxu1 %v3598_v5 }
  0x3e   :  { %1010 = vmatprep.subr.bf16.mxu0 %v3605_v6  ;;  %1051 = vmatprep.subr.bf16.mxu1 %v3610_v7 }
  0x41   :  { %1011 = vmatpush1.bf16.msra.mxu0 %v3619_v9  ;;  %1052 = vmatpush1.bf16.msra.mxu1 %v3624_v10  ;;  %v3655_v10 = vld [vmem:[%s5742_s4 + $0x104] ss:$16 sps:$4 sm:$0xff]   ;;  %v3660_v9 = vld [vmem:[%s5742_s4 + $0x10c] ss:$16 sps:$4 sm:$0xff]  }
  0x42   :  { %1012 = vmatprep.subr.bf16.mxu0 %v3631_v20  ;;  %1053 = vmatprep.subr.bf16.mxu1 %v3636_v29  ;;  %6141 = vst [vmem:[#allocation26_spill] sm:$0xff] %v3655_v10  ;;  %6142 = vst [vmem:[#allocation27_spill] sm:$0xff] %v3660_v9  ;;  %v3665_v20 = vld [vmem:[%s5742_s4 + $0x100] ss:$16 sps:$4 sm:$0xff]   ;;  %v3684_v29 = vld [vmem:[%s5742_s4 + $0x12c] ss:$16 sps:$4 sm:$0xff]  }
  0x43   :  { %6143 = vst [vmem:[#allocation28_spill] sm:$0xff] %v3665_v20  ;;  %6146 = vst [vmem:[#allocation31_spill] sm:$0xff] %v3684_v29 }
  0x45   :  { %1013 = vmatpush1.bf16.msra.mxu0 %v3641_v38  ;;  %1054 = vmatpush1.bf16.msra.mxu1 %v3646_v2  ;;  %v3670_v38 = vld [vmem:[%s5742_s4 + $0x108] ss:$16 sps:$4 sm:$0xff]   ;;  %v3679_v2 = vld [vmem:[%s5742_s4 + $0x124] ss:$16 sps:$4 sm:$0xff]  }
  0x46   :  { %6144 = vst [vmem:[#allocation29_spill] sm:$0xff] %v3670_v38  ;;  %1014 = vmatprep.subr.bf16.mxu0 %v3655_v10  ;;  %1055 = vmatprep.subr.bf16.mxu1 %v3660_v9  ;;  %6145 = vst [vmem:[#allocation30_spill] sm:$0xff] %v3679_v2  ;;  %v3689_v10 = vld [vmem:[%s5742_s4 + $0x120] ss:$16 sps:$4 sm:$0xff]   ;;  %v3708_v9 = vld [vmem:[%s5742_s4 + $0x14c] ss:$16 sps:$4 sm:$0xff]  }
  0x47   :  { %6147 = vst [vmem:[#allocation32_spill] sm:$0xff] %v3689_v10  ;;  %6150 = vst [vmem:[#allocation35_spill] sm:$0xff] %v3708_v9 }
  0x49   :  { %1015 = vmatpush1.bf16.msra.mxu0 %v3665_v20  ;;  %1056 = vmatpush1.bf16.msra.mxu1 %v3670_v38  ;;  %v3694_v20 = vld [vmem:[%s5742_s4 + $0x128] ss:$16 sps:$4 sm:$0xff]   ;;  %v3703_v38 = vld [vmem:[%s5742_s4 + $0x144] ss:$16 sps:$4 sm:$0xff]  }
  0x4a   :  { %6148 = vst [vmem:[#allocation33_spill] sm:$0xff] %v3694_v20  ;;  %1016 = vmatprep.subr.bf16.mxu0 %v3679_v2  ;;  %1057 = vmatprep.subr.bf16.mxu1 %v3684_v29  ;;  %6149 = vst [vmem:[#allocation34_spill] sm:$0xff] %v3703_v38  ;;  %v3713_v2 = vld [vmem:[%s5742_s4 + $0x140] ss:$16 sps:$4 sm:$0xff]   ;;  %v3732_v29 = vld [vmem:[%s5742_s4 + $0x16c] ss:$16 sps:$4 sm:$0xff]  }
  0x4b   :  { %6151 = vst [vmem:[#allocation36_spill] sm:$0xff] %v3713_v2  ;;  %6154 = vst [vmem:[#allocation39_spill] sm:$0xff] %v3732_v29 }
  0x4d   :  { %1017 = vmatpush1.bf16.msra.mxu0 %v3689_v10  ;;  %1058 = vmatpush1.bf16.msra.mxu1 %v3694_v20  ;;  %v3718_v10 = vld [vmem:[%s5742_s4 + $0x148] ss:$16 sps:$4 sm:$0xff]   ;;  %v3727_v20 = vld [vmem:[%s5742_s4 + $0x164] ss:$16 sps:$4 sm:$0xff]  }
  0x4e   :  { %6152 = vst [vmem:[#allocation37_spill] sm:$0xff] %v3718_v10  ;;  %1018 = vmatprep.subr.bf16.mxu0 %v3703_v38  ;;  %1059 = vmatprep.subr.bf16.mxu1 %v3708_v9  ;;  %6153 = vst [vmem:[#allocation38_spill] sm:$0xff] %v3727_v20  ;;  %v3737_v38 = vld [vmem:[%s5742_s4 + $0x160] ss:$16 sps:$4 sm:$0xff]   ;;  %v3756_v9 = vld [vmem:[%s5742_s4 + $0x18c] ss:$16 sps:$4 sm:$0xff]  }
  0x4f   :  { %6155 = vst [vmem:[#allocation40_spill] sm:$0xff] %v3737_v38  ;;  %6158 = vst [vmem:[#allocation43_spill] sm:$0xff] %v3756_v9 }
  0x51   :  { %1019 = vmatpush1.bf16.msra.mxu0 %v3713_v2  ;;  %1060 = vmatpush1.bf16.msra.mxu1 %v3718_v10  ;;  %v3742_v2 = vld [vmem:[%s5742_s4 + $0x168] ss:$16 sps:$4 sm:$0xff]   ;;  %v3751_v10 = vld [vmem:[%s5742_s4 + $0x184] ss:$16 sps:$4 sm:$0xff]  }
  0x52   :  { %6156 = vst [vmem:[#allocation41_spill] sm:$0xff] %v3742_v2  ;;  %1020 = vmatprep.subr.bf16.mxu0 %v3727_v20  ;;  %1061 = vmatprep.subr.bf16.mxu1 %v3732_v29  ;;  %6157 = vst [vmem:[#allocation42_spill] sm:$0xff] %v3751_v10  ;;  %v3761_v20 = vld [vmem:[%s5742_s4 + $0x180] ss:$16 sps:$4 sm:$0xff]   ;;  %v3780_v29 = vld [vmem:[%s5742_s4 + $0x1ac] ss:$16 sps:$4 sm:$0xff]  }
  0x53   :  { %6159 = vst [vmem:[#allocation44_spill] sm:$0xff] %v3761_v20  ;;  %6162 = vst [vmem:[#allocation47_spill] sm:$0xff] %v3780_v29 }
  0x55   :  { %1021 = vmatpush1.bf16.msra.mxu0 %v3737_v38  ;;  %1062 = vmatpush1.bf16.msra.mxu1 %v3742_v2  ;;  %v3766_v38 = vld [vmem:[%s5742_s4 + $0x188] ss:$16 sps:$4 sm:$0xff]   ;;  %v3775_v2 = vld [vmem:[%s5742_s4 + $0x1a4] ss:$16 sps:$4 sm:$0xff]  }
  0x56   :  { %6160 = vst [vmem:[#allocation45_spill] sm:$0xff] %v3766_v38  ;;  %1022 = vmatprep.subr.bf16.mxu0 %v3751_v10  ;;  %1063 = vmatprep.subr.bf16.mxu1 %v3756_v9  ;;  %6161 = vst [vmem:[#allocation46_spill] sm:$0xff] %v3775_v2  ;;  %v3785_v10 = vld [vmem:[%s5742_s4 + $0x1a0] ss:$16 sps:$4 sm:$0xff]   ;;  %v3804_v9 = vld [vmem:[%s5742_s4 + $0x1cc] ss:$16 sps:$4 sm:$0xff]  }
  0x57   :  { %6163 = vst [vmem:[#allocation48_spill] sm:$0xff] %v3785_v10  ;;  %6166 = vst [vmem:[#allocation51_spill] sm:$0xff] %v3804_v9 }
  0x59   :  { %1023 = vmatpush1.bf16.msra.mxu0 %v3761_v20  ;;  %1064 = vmatpush1.bf16.msra.mxu1 %v3766_v38  ;;  %v3790_v20 = vld [vmem:[%s5742_s4 + $0x1a8] ss:$16 sps:$4 sm:$0xff]   ;;  %v3799_v38 = vld [vmem:[%s5742_s4 + $0x1c4] ss:$16 sps:$4 sm:$0xff]  }
  0x5a   :  { %6164 = vst [vmem:[#allocation49_spill] sm:$0xff] %v3790_v20  ;;  %1024 = vmatprep.subr.bf16.mxu0 %v3775_v2  ;;  %1065 = vmatprep.subr.bf16.mxu1 %v3780_v29  ;;  %6165 = vst [vmem:[#allocation50_spill] sm:$0xff] %v3799_v38  ;;  %v3809_v2 = vld [vmem:[%s5742_s4 + $0x1c0] ss:$16 sps:$4 sm:$0xff]   ;;  %v3828_v29 = vld [vmem:[%s5742_s4 + $0x1ec] ss:$16 sps:$4 sm:$0xff]  }
  0x5b   :  { %6167 = vst [vmem:[#allocation52_spill] sm:$0xff] %v3809_v2  ;;  %6170 = vst [vmem:[#allocation55_spill] sm:$0xff] %v3828_v29 }
  0x5d   :  { %1025 = vmatpush1.bf16.msra.mxu0 %v3785_v10  ;;  %1066 = vmatpush1.bf16.msra.mxu1 %v3790_v20  ;;  %v3814_v10 = vld [vmem:[%s5742_s4 + $0x1c8] ss:$16 sps:$4 sm:$0xff]   ;;  %v3823_v20 = vld [vmem:[%s5742_s4 + $0x1e4] ss:$16 sps:$4 sm:$0xff]  }
  0x5e   :  { %6168 = vst [vmem:[#allocation53_spill] sm:$0xff] %v3814_v10  ;;  %1026 = vmatprep.subr.bf16.mxu0 %v3799_v38  ;;  %1067 = vmatprep.subr.bf16.mxu1 %v3804_v9  ;;  %6169 = vst [vmem:[#allocation54_spill] sm:$0xff] %v3823_v20  ;;  %v3833_v38 = vld [vmem:[%s5742_s4 + $0x1e0] ss:$16 sps:$4 sm:$0xff]   ;;  %v36_v9 = vlaneseq }
  0x5f   :  { %6171 = vst [vmem:[#allocation56_spill] sm:$0xff] %v3833_v38 }
  0x60   :  { %v3846_v7 = vshrl.u32 %v36_v9, 7 }
  0x61   :  { %1027 = vmatpush1.bf16.msra.mxu0 %v3809_v2  ;;  %1068 = vmatpush1.bf16.msra.mxu1 %v3814_v10  ;;  %v3838_v2 = vld [vmem:[%s5742_s4 + $0x1e8] ss:$16 sps:$4 sm:$0xff]   ;;  %v3194_v10 = vmov 0.0|0.0  }
  0x62   :  { %6172 = vst [vmem:[#allocation57_spill] sm:$0xff] %v3838_v2  ;;  %1028 = vmatprep.subr.bf16.mxu0 %v3823_v20  ;;  %1069 = vmatprep.subr.bf16.mxu1 %v3828_v29  ;;  %6173 = vst [vmem:[#allocation58_spill] sm:$0xff] %v3846_v7  ;;  %v5840_v6 = vsub.s32 2, %v3846_v7  ;;  %v5849_v20 = vsub.s32 3, %v3846_v7  ;;  %v5850_v29 = vsub.s32 0, %v3846_v7 }
  0x63   :  { %1030 = vmatprep.mubr.bf16.mxu0 %v3194_v10  ;;  %1071 = vmatprep.mubr.bf16.mxu1 %v3194_v10 }
  0x65   :  { %1029 = vmatpush1.bf16.msra.mxu0 %v3833_v38  ;;  %1070 = vmatpush1.bf16.msra.mxu1 %v3838_v2  ;;  %v34_v2 = vld [vmem:[%s5743_s3] sm:$0xf] }
  0x66   :  { %1102 = vmatprep.subr.bf16.mxu0 %v3244_v8  ;;  %1143 = vmatprep.subr.bf16.mxu1 %v3249_v11  ;;  %v5857_v8 = vsub.s32 1, %v3846_v7  ;;  %v3857_v11 = vrot.slane %v34_v2, %v5840_v6  ;;  %v3865_v38 = vrot.slane %v34_v2, %v5849_v20  ;;  %v39_v5 = vrot.slane %v34_v2, %v5850_v29 }
  0x68   :  { %v43_v1 = vrot.slane %v34_v2, %v5857_v8 }
  0xdb   :  { %v3859_v10 = vpop.f32.mrb[0].mxu0  ;;  %v3861_v9 = vpop.f32.mrb[0].mxu1 }
  0xdc   :  { %v148_v4 = vpop.f32.mrb[1].mxu0  ;;  %v221_v3 = vpop.f32.mrb[1].mxu1 }
  0xdd   :  { %v150_v0 = vpop.f32.mrb[2].mxu0  ;;  %v223_v63 = vpop.f32.mrb[2].mxu1 }
  0xde   :  { %v3871_v6 = vadd.f32 %v150_v0, %v39_v5  ;;  %v152_v62 = vpop.f32.mrb[3].mxu0  ;;  %v3874_v61 = vadd.f32 %v223_v63, %v3857_v11  ;;  %v225_v60 = vpop.f32.mrb[3].mxu1 }
  0xdf   :  { %v3876_v59 = vadd.f32 %v152_v62, %v43_v1  ;;  %v3879_v20 = vadd.f32 %v225_v60, %v3865_v38 }
  0xe0   :  { %6174 = vst [vmem:[#allocation59_spill] sm:$0xff] %v3871_v6  ;;  %6175 = vst [vmem:[#allocation60_spill] sm:$0xff] %v3874_v61 }
  0xe1   :  { %6176 = vst [vmem:[#allocation61_spill] sm:$0xff] %v3876_v59  ;;  %6177 = vst [vmem:[#allocation62_spill] sm:$0xff] %v3879_v20 }
  0xe3   :  { %v156_v29 = vpop.f32.mrb[4].mxu0  ;;  %v229_v58 = vpop.f32.mrb[4].mxu1 }
  0xe4   :  { %v3881_v57 = vadd.f32 %v156_v29, %v39_v5  ;;  %v158_v7 = vpop.f32.mrb[5].mxu0  ;;  %v3884_v2 = vadd.f32 %v229_v58, %v3857_v11  ;;  %v231_v0 = vpop.f32.mrb[5].mxu1 }
  0xe5   :  { %v3886_v8 = vadd.f32 %v158_v7, %v43_v1  ;;  %v160_v6 = vpop.f32.mrb[6].mxu0  ;;  %v3889_v63 = vadd.f32 %v231_v0, %v3865_v38  ;;  %v233_v62 = vpop.f32.mrb[6].mxu1 }
  0xe6   :  { %6178 = vst [vmem:[#allocation63_spill] sm:$0xff] %v3881_v57  ;;  %6179 = vst [vmem:[#allocation64_spill] sm:$0xff] %v3884_v2  ;;  %v3891_v59 = vadd.f32 %v160_v6, %v39_v5  ;;  %v162_v60 = vpop.f32.mrb[7].mxu0  ;;  %v3894_v20 = vadd.f32 %v233_v62, %v3857_v11  ;;  %v235_v29 = vpop.f32.mrb[7].mxu1 }
  0xe7   :  { %6180 = vst [vmem:[#allocation65_spill] sm:$0xff] %v3886_v8  ;;  %6181 = vst [vmem:[#allocation66_spill] sm:$0xff] %v3889_v63  ;;  %v3896_v57 = vadd.f32 %v162_v60, %v43_v1  ;;  %v3899_v58 = vadd.f32 %v235_v29, %v3865_v38 }
  0xe8   :  { %6182 = vst [vmem:[#allocation67_spill] sm:$0xff] %v3891_v59  ;;  %6183 = vst [vmem:[#allocation68_spill] sm:$0xff] %v3894_v20 }
  0xe9   :  { %6184 = vst [vmem:[#allocation69_spill] sm:$0xff] %v3896_v57  ;;  %6185 = vst [vmem:[#allocation70_spill] sm:$0xff] %v3899_v58 }
  0xeb   :  { %v166_v2 = vpop.f32.mrb[8].mxu0  ;;  %v239_v7 = vpop.f32.mrb[8].mxu1 }
  0xec   :  { %v3901_v8 = vadd.f32 %v166_v2, %v39_v5  ;;  %v168_v61 = vpop.f32.mrb[9].mxu0  ;;  %v3904_v0 = vadd.f32 %v239_v7, %v3857_v11  ;;  %v241_v6 = vpop.f32.mrb[9].mxu1 }
  0xed   :  { %v3906_v59 = vadd.f32 %v168_v61, %v43_v1  ;;  %v170_v63 = vpop.f32.mrb[10].mxu0  ;;  %v3909_v62 = vadd.f32 %v241_v6, %v3865_v38  ;;  %v243_v60 = vpop.f32.mrb[10].mxu1 }
  0xee   :  { %6186 = vst [vmem:[#allocation71_spill] sm:$0xff] %v3901_v8  ;;  %6187 = vst [vmem:[#allocation72_spill] sm:$0xff] %v3904_v0  ;;  %v3911_v57 = vadd.f32 %v170_v63, %v39_v5  ;;  %v172_v29 = vpop.f32.mrb[11].mxu0  ;;  %v3914_v58 = vadd.f32 %v243_v60, %v3857_v11  ;;  %v245_v2 = vpop.f32.mrb[11].mxu1 }
  0xef   :  { %6188 = vst [vmem:[#allocation73_spill] sm:$0xff] %v3906_v59  ;;  %6189 = vst [vmem:[#allocation74_spill] sm:$0xff] %v3909_v62  ;;  %v3916_v8 = vadd.f32 %v172_v29, %v43_v1  ;;  %v3919_v7 = vadd.f32 %v245_v2, %v3865_v38 }
  0xf0   :  { %6190 = vst [vmem:[#allocation75_spill] sm:$0xff] %v3911_v57  ;;  %6191 = vst [vmem:[#allocation76_spill] sm:$0xff] %v3914_v58 }
  0xf1   :  { %6192 = vst [vmem:[#allocation77_spill] sm:$0xff] %v3916_v8  ;;  %6193 = vst [vmem:[#allocation78_spill] sm:$0xff] %v3919_v7 }
  0xf3   :  { %v176_v0 = vpop.f32.mrb[12].mxu0  ;;  %v249_v61 = vpop.f32.mrb[12].mxu1 }
  0xf4   :  { %v3921_v59 = vadd.f32 %v176_v0, %v39_v5  ;;  %v178_v20 = vpop.f32.mrb[13].mxu0  ;;  %v3924_v6 = vadd.f32 %v249_v61, %v3857_v11  ;;  %v251_v63 = vpop.f32.mrb[13].mxu1 }
  0xf5   :  { %v3926_v57 = vadd.f32 %v178_v20, %v43_v1  ;;  %v180_v62 = vpop.f32.mrb[14].mxu0  ;;  %v3929_v60 = vadd.f32 %v251_v63, %v3865_v38  ;;  %v253_v29 = vpop.f32.mrb[14].mxu1  ;;  %v147_v20 = vadd.f32 %v3859_v10, %v39_v5  ;;  %v149_v63 = vadd.f32 %v148_v4, %v43_v1 }
  0xf6   :  { %6194 = vst [vmem:[#allocation79_spill] sm:$0xff] %v3921_v59  ;;  %6195 = vst [vmem:[#allocation80_spill] sm:$0xff] %v3924_v6  ;;  %v3931_v8 = vadd.f32 %v180_v62, %v39_v5  ;;  %v182_v2 = vpop.f32.mrb[15].mxu0  ;;  %v3934_v7 = vadd.f32 %v253_v29, %v3857_v11  ;;  %v255_v0 = vpop.f32.mrb[15].mxu1 }
  0xf7   :  { %6196 = vst [vmem:[#allocation81_spill] sm:$0xff] %v3926_v57  ;;  %6197 = vst [vmem:[#allocation82_spill] sm:$0xff] %v3929_v60  ;;  %v3936_v59 = vadd.f32 %v182_v2, %v43_v1  ;;  %v3939_v61 = vadd.f32 %v255_v0, %v3865_v38  ;;  %v220_v57 = vadd.f32 %v3861_v9, %v3857_v11 }
  0xf8   :  { %6198 = vst [vmem:[#allocation83_spill] sm:$0xff] %v3931_v8  ;;  %6199 = vst [vmem:[#allocation84_spill] sm:$0xff] %v3934_v7  ;;  %v222_v60 = vadd.f32 %v221_v3, %v3865_v38 }
  0xf9   :  { %6200 = vst [vmem:[#allocation85_spill] sm:$0xff] %v3936_v59  ;;  %6201 = vst [vmem:[#allocation86_spill] sm:$0xff] %v3939_v61 }
  0xfb   :  { %v542_v62 = vpop.f32.mrb[16].mxu0  ;;  %v583_v8 = vpop.f32.mrb[16].mxu1 }
  0xfc   :  { %v590_v6 = vadd.f32 %v542_v62, %v147_v20  ;;  %v592_v58 = vadd.f32 %v583_v8, %v220_v57  ;;  %v544_v29 = vpop.f32.mrb[17].mxu0  ;;  %v585_v7 = vpop.f32.mrb[17].mxu1  ;;  %v6241_v20 = vld [vmem:[#allocation41_spill] sm:$0xff]  ;;  %v6243_v62 = vld [vmem:[#allocation43_spill] sm:$0xff] }
  0xfd   :  { %v591_v56 = vadd.f32 %v544_v29, %v149_v63  ;;  %v593_v2 = vadd.f32 %v585_v7, %v222_v60  ;;  %v546_v59 = vpop.f32.mrb[18].mxu0  ;;  %v587_v55 = vpop.f32.mrb[18].mxu1  ;;  %v6242_v63 = vld [vmem:[#allocation42_spill] sm:$0xff]  ;;  %v6244_v29 = vld [vmem:[#allocation44_spill] sm:$0xff] }
  0xfe   :  { %v594_v0 = vmul.f32 0.5, %v590_v6  ;;  %v547_v61 = vpop.f32.mrb[19].mxu0  ;;  %v588_v54 = vpop.f32.mrb[19].mxu1 }
  0xff   :  { %v598_v5 = vmul.f32 0.5, %v591_v56  ;;  %v603_v1 = vmul.f32 0.5, %v593_v2  ;;  %v6202_v61 = vmov 0   ;;  %v6245_v2 = vld [vmem:[#allocation45_spill] sm:$0xff] }
 0x100   :  { %2841 = vtanh.f32 %v594_v0  ;;  %v6246_v0 = vld [vmem:[#allocation46_spill] sm:$0xff] }
 0x101   :  { %2843 = vtanh.f32 %v598_v5  ;;  %v6247_v5 = vld [vmem:[#allocation47_spill] sm:$0xff] }
 0x102   :  { %2845 = vtanh.f32 %v592_v58 }
 0x103   :  { %2847 = vtanh.f32 %v603_v1  ;;  %v6248_v1 = vld [vmem:[#allocation48_spill] sm:$0xff] }
 0x10a   :  { %v2842_v4 = vpop.eup %2841 }
 0x10b   :  { %v2844_v3 = vpop.eup %2843  ;;  %v596_v38 = vadd.f32 1.0, %v2842_v4  ;;  %v6249_v4 = vld [vmem:[#allocation49_spill] sm:$0xff] }
 0x10c   :  { %v600_v11 = vadd.f32 1.0, %v2844_v3  ;;  %v2846_v8 = vpop.eup %2845  ;;  %v6250_v3 = vld [vmem:[#allocation50_spill] sm:$0xff] }
 0x10d   :  { %v597_v57 = vmul.f32 0.5, %v596_v38  ;;  %v2848_v54 = vpop.eup %2847  ;;  %v6251_v38 = vld [vmem:[#allocation51_spill] sm:$0xff] }
 0x10e   :  { %v601_v10 = vmul.f32 0.5, %v600_v11  ;;  %v605_v55 = vadd.f32 1.0, %v2848_v54  ;;  %v6252_v11 = vld [vmem:[#allocation52_spill] sm:$0xff]  ;;  %v4047_v54 = vld [vmem:[%s5741_s2 + $0x4] ss:$16 sps:$4 sm:$0xff]  }
 0x10f   :  { %v608_v9 = vmul.f32 %v2846_v8, %v597_v57  ;;  %v6253_v57 = vld [vmem:[#allocation53_spill] sm:$0xff]  ;;  %v6254_v8 = vld [vmem:[#allocation54_spill] sm:$0xff] }
 0x110   :  { %v607_v7 = vmul.f32 0.0, %v601_v10  ;;  %v606_v56 = vmul.f32 0.5, %v605_v55  ;;  %v6255_v10 = vld [vmem:[#allocation55_spill] sm:$0xff]  ;;  %v4053_v55 = vld [vmem:[%s5741_s2 + $0xc] ss:$16 sps:$4 sm:$0xff]  }
 0x112   :  { %v3945_v59 = vadd.f32 %v608_v9, %v607_v7  ;;  %v6256_v9 = vld [vmem:[#allocation56_spill] sm:$0xff]  ;;  %v6257_v7 = vld [vmem:[#allocation57_spill] sm:$0xff] }
 0x114   :  { %2849 = vtanh.f32 %v3945_v59 }
 0x11e   :  { %v2850_v6 = vpop.eup %2849 }
 0x11f   :  { %v611_v58 = vmul.f32 %v2850_v6, %v606_v56  ;;  %v290_v56 = vld [vmem:[%s5744_s5] sm:$0xf]  ;;  %v6260_v6 = vld [vmem:[#allocation58_spill] sm:$0xff] }
 0x121   :  { %v612_v60 = vpack.c.bf16 %v611_v58, %v611_v58  ;;  %v6261_v58 = vsub.s32 0, %v6260_v6 }
 0x123   :  { %1031 = vmatmul.mubr.bf16.vlgmr.msra.gmra.mrb[20].mxu0 %v612_v60  ;;  %1072 = vmatmul.mubr.bf16.vlgmr.msra.gmra.mrb[20].mxu1 %v612_v60 }
 0x124   :  { %1103 = vmatpush1.bf16.msra.mxu0 %v3254_v12  ;;  %1144 = vmatpush1.bf16.msra.mxu1 %v3259_v13  ;;  %v6203_v12 = vld [vmem:[#allocation3_spill] sm:$0xff]  ;;  %v6204_v13 = vld [vmem:[#allocation4_spill] sm:$0xff] }
 0x125   :  { %1104 = vmatprep.subr.bf16.mxu0 %v3266_v14  ;;  %1145 = vmatprep.subr.bf16.mxu1 %v3271_v15  ;;  %v6205_v14 = vld [vmem:[#allocation5_spill] sm:$0xff]  ;;  %v6206_v15 = vld [vmem:[#allocation6_spill] sm:$0xff]  ;;  %6258 = vst [vmem:[#allocation3_spill] sm:$0xff] %v4047_v54  ;;  %6259 = vst [vmem:[#allocation4_spill] sm:$0xff] %v4053_v55 }
 0x126   :  { %1134 = vmatprep.mubr.bf16.mxu0 %v6202_v61  ;;  %1175 = vmatprep.mubr.bf16.mxu1 %v6202_v61 }
 0x128   :  { %1105 = vmatpush1.bf16.msra.mxu0 %v3276_v16  ;;  %1146 = vmatpush1.bf16.msra.mxu1 %v3283_v17  ;;  %v6207_v16 = vld [vmem:[#allocation7_spill] sm:$0xff]  ;;  %v6208_v17 = vld [vmem:[#allocation8_spill] sm:$0xff] }
 0x129   :  { %1106 = vmatprep.subr.bf16.mxu0 %v3290_v18  ;;  %1147 = vmatprep.subr.bf16.mxu1 %v3297_v19  ;;  %v6209_v18 = vld [vmem:[#allocation9_spill] sm:$0xff]  ;;  %v6210_v19 = vld [vmem:[#allocation10_spill] sm:$0xff] }
 0x12c   :  { %1107 = vmatpush1.bf16.msra.mxu0 %v3307_v21  ;;  %1148 = vmatpush1.bf16.msra.mxu1 %v3314_v22  ;;  %v6211_v21 = vld [vmem:[#allocation11_spill] sm:$0xff]  ;;  %v6212_v22 = vld [vmem:[#allocation12_spill] sm:$0xff] }
 0x12d   :  { %1108 = vmatprep.subr.bf16.mxu0 %v3319_v23  ;;  %1149 = vmatprep.subr.bf16.mxu1 %v3326_v24  ;;  %v6213_v23 = vld [vmem:[#allocation13_spill] sm:$0xff]  ;;  %v6214_v24 = vld [vmem:[#allocation14_spill] sm:$0xff] }
 0x130   :  { %1109 = vmatpush1.bf16.msra.mxu0 %v3335_v25  ;;  %1150 = vmatpush1.bf16.msra.mxu1 %v3340_v26  ;;  %v6215_v25 = vld [vmem:[#allocation15_spill] sm:$0xff]  ;;  %v6216_v26 = vld [vmem:[#allocation16_spill] sm:$0xff] }
 0x131   :  { %1110 = vmatprep.subr.bf16.mxu0 %v3345_v27  ;;  %1151 = vmatprep.subr.bf16.mxu1 %v3352_v28  ;;  %v6217_v27 = vld [vmem:[#allocation17_spill] sm:$0xff]  ;;  %v6218_v28 = vld [vmem:[#allocation18_spill] sm:$0xff] }
 0x134   :  { %1111 = vmatpush1.bf16.msra.mxu0 %v3362_v30  ;;  %1152 = vmatpush1.bf16.msra.mxu1 %v3367_v31  ;;  %v6219_v30 = vld [vmem:[#allocation19_spill] sm:$0xff]  ;;  %v6220_v31 = vld [vmem:[#allocation20_spill] sm:$0xff] }
 0x135   :  { %1112 = vmatprep.subr.bf16.mxu0 %v3374_v32  ;;  %1153 = vmatprep.subr.bf16.mxu1 %v3381_v33  ;;  %v6221_v32 = vld [vmem:[#allocation21_spill] sm:$0xff]  ;;  %v6222_v33 = vld [vmem:[#allocation22_spill] sm:$0xff] }
 0x138   :  { %1113 = vmatpush1.bf16.msra.mxu0 %v3388_v34  ;;  %1154 = vmatpush1.bf16.msra.mxu1 %v3395_v35  ;;  %v6223_v34 = vld [vmem:[#allocation23_spill] sm:$0xff]  ;;  %v6224_v35 = vld [vmem:[#allocation24_spill] sm:$0xff] }
 0x139   :  { %1114 = vmatprep.subr.bf16.mxu0 %v3402_v36  ;;  %1155 = vmatprep.subr.bf16.mxu1 %v3407_v37  ;;  %v6225_v36 = vld [vmem:[#allocation25_spill] sm:$0xff]  ;;  %v6226_v37 = vld [vmem:[#allocation26_spill] sm:$0xff] }
 0x13c   :  { %1115 = vmatpush1.bf16.msra.mxu0 %v3419_v39  ;;  %1156 = vmatpush1.bf16.msra.mxu1 %v3424_v40  ;;  %v6227_v39 = vld [vmem:[#allocation27_spill] sm:$0xff]  ;;  %v6228_v40 = vld [vmem:[#allocation28_spill] sm:$0xff] }
 0x13d   :  { %1116 = vmatprep.subr.bf16.mxu0 %v3431_v41  ;;  %1157 = vmatprep.subr.bf16.mxu1 %v3436_v42  ;;  %v6229_v41 = vld [vmem:[#allocation29_spill] sm:$0xff]  ;;  %v6230_v42 = vld [vmem:[#allocation30_spill] sm:$0xff] }
 0x140   :  { %1117 = vmatpush1.bf16.msra.mxu0 %v3445_v43  ;;  %1158 = vmatpush1.bf16.msra.mxu1 %v3450_v44  ;;  %v6231_v43 = vld [vmem:[#allocation31_spill] sm:$0xff]  ;;  %v6232_v44 = vld [vmem:[#allocation32_spill] sm:$0xff] }
 0x141   :  { %1208 = vmatprep.subr.bf16.mxu0 %v3463_v45  ;;  %1249 = vmatprep.subr.bf16.mxu1 %v3468_v46  ;;  %v6233_v45 = vld [vmem:[#allocation33_spill] sm:$0xff]  ;;  %v6234_v46 = vld [vmem:[#allocation34_spill] sm:$0xff] }
 0x143   :  { %1135 = vmatmul.mubr.bf16.vlgmr.msra.gmra.mrb[24].mxu0 %v612_v60  ;;  %1176 = vmatmul.mubr.bf16.vlgmr.msra.gmra.mrb[24].mxu1 %v612_v60  ;;  %v4061_v60 = vrot.slane %v290_v56, %v6261_v58 }
 0x144   :  { %1209 = vmatpush1.bf16.msra.mxu0 %v3474_v47  ;;  %1250 = vmatpush1.bf16.msra.mxu1 %v3479_v48  ;;  %v6235_v47 = vld [vmem:[#allocation35_spill] sm:$0xff]  ;;  %v6236_v48 = vld [vmem:[#allocation36_spill] sm:$0xff] }
 0x145   :  { %1210 = vmatprep.subr.bf16.mxu0 %v3487_v49  ;;  %1251 = vmatprep.subr.bf16.mxu1 %v3492_v50  ;;  %v6237_v49 = vld [vmem:[#allocation37_spill] sm:$0xff]  ;;  %v6238_v50 = vld [vmem:[#allocation38_spill] sm:$0xff]  ;;  %6262 = vst [vmem:[#allocation5_spill] sm:$0xff] %v4061_v60 }
 0x148   :  { %1211 = vmatpush1.bf16.msra.mxu0 %v3497_v51  ;;  %1252 = vmatpush1.bf16.msra.mxu1 %v3502_v52  ;;  %v6239_v51 = vld [vmem:[#allocation39_spill] sm:$0xff]  ;;  %v6240_v52 = vld [vmem:[#allocation40_spill] sm:$0xff] }
 0x149   :  { %1212 = vmatprep.subr.bf16.mxu0 %v3509_v53  ;;  %1253 = vmatprep.subr.bf16.mxu1 %v6203_v12 }
 0x14c   :  { %1213 = vmatpush1.bf16.msra.mxu0 %v6204_v13  ;;  %1254 = vmatpush1.bf16.msra.mxu1 %v6205_v14 }
 0x14d   :  { %1214 = vmatprep.subr.bf16.mxu0 %v6206_v15  ;;  %1255 = vmatprep.subr.bf16.mxu1 %v6207_v16 }
 0x150   :  { %1215 = vmatpush1.bf16.msra.mxu0 %v6208_v17  ;;  %1256 = vmatpush1.bf16.msra.mxu1 %v6209_v18 }
 0x151   :  { %1216 = vmatprep.subr.bf16.mxu0 %v6210_v19  ;;  %1257 = vmatprep.subr.bf16.mxu1 %v6211_v21 }
 0x154   :  { %1217 = vmatpush1.bf16.msra.mxu0 %v6212_v22  ;;  %1258 = vmatpush1.bf16.msra.mxu1 %v6213_v23 }
 0x155   :  { %1218 = vmatprep.subr.bf16.mxu0 %v6214_v24  ;;  %1259 = vmatprep.subr.bf16.mxu1 %v6215_v25 }
 0x158   :  { %1219 = vmatpush1.bf16.msra.mxu0 %v6216_v26  ;;  %1260 = vmatpush1.bf16.msra.mxu1 %v6217_v27 }
 0x159   :  { %1220 = vmatprep.subr.bf16.mxu0 %v6218_v28  ;;  %1261 = vmatprep.subr.bf16.mxu1 %v6219_v30 }
 0x15c   :  { %1221 = vmatpush1.bf16.msra.mxu0 %v6220_v31  ;;  %1262 = vmatpush1.bf16.msra.mxu1 %v6221_v32 }
 0x15d   :  { %1222 = vmatprep.subr.bf16.mxu0 %v6222_v33  ;;  %1263 = vmatprep.subr.bf16.mxu1 %v6223_v34 }
 0x160   :  { %1223 = vmatpush1.bf16.msra.mxu0 %v6224_v35  ;;  %1264 = vmatpush1.bf16.msra.mxu1 %v6225_v36 }
 0x161   :  { %1224 = vmatprep.subr.bf16.mxu0 %v6226_v37  ;;  %1265 = vmatprep.subr.bf16.mxu1 %v6227_v39 }
 0x164   :  { %1225 = vmatpush1.bf16.msra.mxu0 %v6228_v40  ;;  %1266 = vmatpush1.bf16.msra.mxu1 %v6229_v41 }
 0x165   :  { %1226 = vmatprep.subr.bf16.mxu0 %v6230_v42  ;;  %1267 = vmatprep.subr.bf16.mxu1 %v6231_v43 }
 0x168   :  { %1227 = vmatpush1.bf16.msra.mxu0 %v6232_v44  ;;  %1268 = vmatpush1.bf16.msra.mxu1 %v6233_v45 }
 0x169   :  { %1228 = vmatprep.subr.bf16.mxu0 %v6234_v46  ;;  %1269 = vmatprep.subr.bf16.mxu1 %v6235_v47 }
 0x16c   :  { %1229 = vmatpush1.bf16.msra.mxu0 %v6236_v48  ;;  %1270 = vmatpush1.bf16.msra.mxu1 %v6237_v49 }
 0x16d   :  { %1230 = vmatprep.subr.bf16.mxu0 %v6238_v50  ;;  %1271 = vmatprep.subr.bf16.mxu1 %v6239_v51 }
 0x170   :  { %1231 = vmatpush1.bf16.msra.mxu0 %v6240_v52  ;;  %1272 = vmatpush1.bf16.msra.mxu1 %v6241_v20 }
 0x171   :  { %1232 = vmatprep.subr.bf16.mxu0 %v6242_v63  ;;  %1273 = vmatprep.subr.bf16.mxu1 %v6243_v62 }
 0x174   :  { %1233 = vmatpush1.bf16.msra.mxu0 %v6244_v29  ;;  %1274 = vmatpush1.bf16.msra.mxu1 %v6245_v2  ;;  %v6267_v29 = vsub.s32 3, %v6260_v6 }
 0x175   :  { %1234 = vmatprep.subr.bf16.mxu0 %v6246_v0  ;;  %1275 = vmatprep.subr.bf16.mxu1 %v6247_v5 }
 0x178   :  { %1235 = vmatpush1.bf16.msra.mxu0 %v6248_v1  ;;  %1276 = vmatpush1.bf16.msra.mxu1 %v6249_v4 }
 0x179   :  { %1236 = vmatprep.subr.bf16.mxu0 %v6250_v3  ;;  %1277 = vmatprep.subr.bf16.mxu1 %v6251_v38 }
 0x17c   :  { %1237 = vmatpush1.bf16.msra.mxu0 %v6252_v11  ;;  %1278 = vmatpush1.bf16.msra.mxu1 %v6253_v57  ;;  %v6265_v57 = vsub.s32 2, %v6260_v6 }
 0x17d   :  { %1238 = vmatprep.subr.bf16.mxu0 %v6254_v8  ;;  %1279 = vmatprep.subr.bf16.mxu1 %v6255_v10 }
 0x17e   :  { %v4070_v11 = vrot.slane %v290_v56, %v6265_v57 }
 0x180   :  { %1239 = vmatpush1.bf16.msra.mxu0 %v6256_v9  ;;  %1280 = vmatpush1.bf16.msra.mxu1 %v6257_v7  ;;  %v6263_v7 = vsub.s32 1, %v6260_v6  ;;  %6266 = vst [vmem:[#allocation7_spill] sm:$0xff] %v4070_v11 }
 0x181   :  { %1312 = vmatprep.subr.bf16.mxu0 %v4047_v54  ;;  %1353 = vmatprep.subr.bf16.mxu1 %v4053_v55 }
 0x182   :  { %v4065_v9 = vrot.slane %v290_v56, %v6263_v7 }
 0x184   :  { %6264 = vst [vmem:[#allocation6_spill] sm:$0xff] %v4065_v9 }
 0x1f6   :  { %v1032_v54 = vpop.f32.mrb[20].mxu0  ;;  %v1073_v10 = vpop.f32.mrb[20].mxu1 }
 0x1f7   :  { %v1033_v8 = vadd.f32 %v1032_v54, %v4061_v60  ;;  %v1034_v55 = vpop.f32.mrb[21].mxu0  ;;  %v1075_v38 = vpop.f32.mrb[21].mxu1  ;;  %v1074_v7 = vadd.f32 %v1073_v10, %v4070_v11  ;;  %v4076_v54 = vrot.slane %v290_v56, %v6267_v29 }
 0x1f8   :  { %v1035_v3 = vadd.f32 %v1034_v55, %v4065_v9  ;;  %v1036_v4 = vpop.f32.mrb[22].mxu0  ;;  %v1077_v1 = vpop.f32.mrb[22].mxu1 }
 0x1f9   :  { %v1080_v58 = vmul.f32 0.5, %v1033_v8  ;;  %v1037_v5 = vpop.f32.mrb[23].mxu0  ;;  %v1078_v0 = vpop.f32.mrb[23].mxu1  ;;  %6268 = vst [vmem:[#allocation8_spill] sm:$0xff] %v4076_v54  ;;  %v1076_v57 = vadd.f32 %v1075_v38, %v4076_v54  ;;  %v6270_v38 = vld [vmem:[#allocation59_spill] sm:$0xff] }
 0x1fa   :  { %v1084_v2 = vmul.f32 0.5, %v1035_v3 }
 0x1fb   :  { %2851 = vtanh.f32 %v1080_v58  ;;  %v1089_v60 = vmul.f32 0.5, %v1076_v57  ;;  %v6271_v57 = vld [vmem:[#allocation60_spill] sm:$0xff] }
 0x1fc   :  { %2853 = vtanh.f32 %v1084_v2 }
 0x1fd   :  { %2855 = vtanh.f32 %v1074_v7 }
 0x1fe   :  { %2857 = vtanh.f32 %v1089_v60 }
 0x205   :  { %v2852_v62 = vpop.eup %2851 }
 0x206   :  { %v2854_v55 = vpop.eup %2853  ;;  %v1082_v4 = vadd.f32 1.0, %v2852_v62 }
 0x207   :  { %v1086_v1 = vadd.f32 1.0, %v2854_v55  ;;  %v2856_v0 = vpop.eup %2855 }
 0x208   :  { %v1083_v5 = vmul.f32 0.5, %v1082_v4  ;;  %v2858_v29 = vpop.eup %2857  ;;  %v6272_v4 = vld [vmem:[#allocation61_spill] sm:$0xff] }
 0x209   :  { %v1087_v3 = vmul.f32 0.5, %v1086_v1  ;;  %v1091_v2 = vadd.f32 1.0, %v2858_v29  ;;  %v6273_v1 = vld [vmem:[#allocation62_spill] sm:$0xff] }
 0x20a   :  { %v1094_v8 = vmul.f32 %v2856_v0, %v1083_v5 }
 0x20b   :  { %v1093_v58 = vmul.f32 0.0, %v1087_v3  ;;  %v1092_v60 = vmul.f32 0.5, %v1091_v2 }
 0x20d   :  { %v4079_v10 = vadd.f32 %v1094_v8, %v1093_v58 }
 0x20f   :  { %6269 = vst [vmem:[#allocation9_spill] sm:$0xff] %v4079_v10  ;;  %2859 = vtanh.f32 %v4079_v10 }
 0x216   :  { %v1136_v56 = vpop.f32.mrb[24].mxu0  ;;  %v1177_v6 = vpop.f32.mrb[24].mxu1 }
 0x217   :  { %v1184_v7 = vadd.f32 %v1136_v56, %v6270_v38  ;;  %v1186_v54 = vadd.f32 %v1177_v6, %v6271_v57  ;;  %v1138_v62 = vpop.f32.mrb[25].mxu0  ;;  %v1179_v55 = vpop.f32.mrb[25].mxu1 }
 0x218   :  { %v1185_v11 = vadd.f32 %v1138_v62, %v6272_v4  ;;  %v1187_v5 = vadd.f32 %v1179_v55, %v6273_v1  ;;  %v1140_v0 = vpop.f32.mrb[26].mxu0  ;;  %v1181_v3 = vpop.f32.mrb[26].mxu1 }
 0x219   :  { %v2860_v8 = vpop.eup %2859  ;;  %v1188_v58 = vmul.f32 0.5, %v1184_v7  ;;  %v1141_v10 = vpop.f32.mrb[27].mxu0  ;;  %v4097_v3 = vld [vmem:[%s5741_s2] ss:$16 sps:$4 sm:$0xff]  }
 0x21a   :  { %v1182_v9 = vpop.f32.mrb[27].mxu1  ;;  %v1192_v29 = vmul.f32 0.5, %v1185_v11  ;;  %v1097_v63 = vmul.f32 %v2860_v8, %v1092_v60  ;;  %v1197_v6 = vmul.f32 0.5, %v1187_v5  ;;  %v4109_v8 = vld [vmem:[%s5741_s2 + $0x24] ss:$16 sps:$4 sm:$0xff]  }
 0x21b   :  { %2861 = vtanh.f32 %v1188_v58  ;;  %v4115_v58 = vld [vmem:[%s5741_s2 + $0x2c] ss:$16 sps:$4 sm:$0xff]  }
 0x21c   :  { %2863 = vtanh.f32 %v1192_v29  ;;  %v1207_v56 = vpack.c.bf16 %v1097_v63, %v1097_v63  ;;  %v4123_v29 = vld [vmem:[%s5741_s2 + $0x20] ss:$16 sps:$4 sm:$0xff]  }
 0x21d   :  { %2865 = vtanh.f32 %v1186_v54 }
 0x21e   :  { %1240 = vmatprep.mubr.bf16.mxu0 %v1207_v56  ;;  %1281 = vmatprep.mubr.bf16.mxu1 %v1207_v56  ;;  %2867 = vtanh.f32 %v1197_v6  ;;  %v4129_v56 = vld [vmem:[%s5741_s2 + $0x28] ss:$16 sps:$4 sm:$0xff]   ;;  %v4135_v6 = vld [vmem:[%s5741_s2 + $0x44] ss:$16 sps:$4 sm:$0xff]  }
 0x225   :  { %v2862_v2 = vpop.eup %2861 }
 0x226   :  { %v2864_v38 = vpop.eup %2863  ;;  %v1190_v57 = vadd.f32 1.0, %v2862_v2  ;;  %v4141_v2 = vld [vmem:[%s5741_s2 + $0x4c] ss:$16 sps:$4 sm:$0xff]  }
 0x227   :  { %v1194_v62 = vadd.f32 1.0, %v2864_v38  ;;  %v2866_v4 = vpop.eup %2865  ;;  %v4147_v38 = vld [vmem:[%s5741_s2 + $0x40] ss:$16 sps:$4 sm:$0xff]  }
 0x228   :  { %v1191_v55 = vmul.f32 0.5, %v1190_v57  ;;  %v2868_v63 = vpop.eup %2867  ;;  %v4153_v57 = vld [vmem:[%s5741_s2 + $0x48] ss:$16 sps:$4 sm:$0xff]  }
 0x229   :  { %v1195_v1 = vmul.f32 0.5, %v1194_v62  ;;  %v1199_v10 = vadd.f32 1.0, %v2868_v63  ;;  %v4159_v62 = vld [vmem:[%s5741_s2 + $0x64] ss:$16 sps:$4 sm:$0xff]   ;;  %v4195_v63 = vld [vmem:[%s5741_s2 + $0x80] ss:$16 sps:$4 sm:$0xff]  }
 0x22a   :  { %v1202_v7 = vmul.f32 %v2866_v4, %v1191_v55  ;;  %v4165_v55 = vld [vmem:[%s5741_s2 + $0x6c] ss:$16 sps:$4 sm:$0xff]   ;;  %v4171_v4 = vld [vmem:[%s5741_s2 + $0x60] ss:$16 sps:$4 sm:$0xff]  }
 0x22b   :  { %v1201_v9 = vmul.f32 %v1195_v1, %v3945_v59  ;;  %v1200_v60 = vmul.f32 0.5, %v1199_v10  ;;  %v4103_v59 = vld [vmem:[%s5741_s2 + $0x8] ss:$16 sps:$4 sm:$0xff]  }
 0x22c   :  { %v4177_v1 = vld [vmem:[%s5741_s2 + $0x68] ss:$16 sps:$4 sm:$0xff]  }
 0x22d   :  { %v4087_v11 = vadd.f32 %v1202_v7, %v1201_v9  ;;  %v4183_v7 = vld [vmem:[%s5741_s2 + $0x84] ss:$16 sps:$4 sm:$0xff]   ;;  %v4189_v9 = vld [vmem:[%s5741_s2 + $0x8c] ss:$16 sps:$4 sm:$0xff]   ;;  %v4201_v10 = vld [vmem:[%s5741_s2 + $0x88] ss:$16 sps:$4 sm:$0xff]  }
 0x22e   :  { %6274 = vst [vmem:[#allocation10_spill] sm:$0xff] %v4201_v10 }
 0x22f   :  { %2869 = vtanh.f32 %v4087_v11 }
 0x239   :  { %v2870_v54 = vpop.eup %2869 }
 0x23a   :  { %v1205_v5 = vmul.f32 %v2870_v54, %v1200_v60  ;;  %v4207_v60 = vld [vmem:[%s5741_s2 + $0xa4] ss:$16 sps:$4 sm:$0xff]   ;;  %v4213_v54 = vld [vmem:[%s5741_s2 + $0xac] ss:$16 sps:$4 sm:$0xff]  }
 0x23b   :  { %6275 = vst [vmem:[#allocation11_spill] sm:$0xff] %v4207_v60  ;;  %6276 = vst [vmem:[#allocation12_spill] sm:$0xff] %v4213_v54 }
 0x23c   :  { %v4090_v0 = vpack.c.bf16 %v1205_v5, %v1205_v5  ;;  %v4219_v5 = vld [vmem:[%s5741_s2 + $0xa0] ss:$16 sps:$4 sm:$0xff]  }
 0x23d   :  { %6277 = vst [vmem:[#allocation13_spill] sm:$0xff] %v4219_v5 }
 0x23e   :  { %1241 = vmatmul.mubr.bf16.vlgmr.msra.gmra.mrb[28].mxu0 %v4090_v0  ;;  %1282 = vmatmul.mubr.bf16.vlgmr.msra.gmra.mrb[28].mxu1 %v4090_v0 }
 0x23f   :  { %1313 = vmatpush1.bf16.msra.mxu0 %v4097_v3  ;;  %1354 = vmatpush1.bf16.msra.mxu1 %v4103_v59 }
 0x240   :  { %1314 = vmatprep.subr.bf16.mxu0 %v4109_v8  ;;  %1355 = vmatprep.subr.bf16.mxu1 %v4115_v58 }
 0x241   :  { %1344 = vmatprep.mubr.bf16.mxu0 %v6202_v61  ;;  %1385 = vmatprep.mubr.bf16.mxu1 %v6202_v61 }
 0x243   :  { %1315 = vmatpush1.bf16.msra.mxu0 %v4123_v29  ;;  %1356 = vmatpush1.bf16.msra.mxu1 %v4129_v56 }
 0x244   :  { %1316 = vmatprep.subr.bf16.mxu0 %v4135_v6  ;;  %1357 = vmatprep.subr.bf16.mxu1 %v4141_v2 }
 0x247   :  { %1317 = vmatpush1.bf16.msra.mxu0 %v4147_v38  ;;  %1358 = vmatpush1.bf16.msra.mxu1 %v4153_v57 }
 0x248   :  { %1318 = vmatprep.subr.bf16.mxu0 %v4159_v62  ;;  %1359 = vmatprep.subr.bf16.mxu1 %v4165_v55 }
 0x24b   :  { %1319 = vmatpush1.bf16.msra.mxu0 %v4171_v4  ;;  %1360 = vmatpush1.bf16.msra.mxu1 %v4177_v1 }
 0x24c   :  { %1320 = vmatprep.subr.bf16.mxu0 %v4183_v7  ;;  %1361 = vmatprep.subr.bf16.mxu1 %v4189_v9 }
 0x24f   :  { %1321 = vmatpush1.bf16.msra.mxu0 %v4195_v63  ;;  %1362 = vmatpush1.bf16.msra.mxu1 %v4201_v10  ;;  %v4225_v10 = vld [vmem:[%s5741_s2 + $0xa8] ss:$16 sps:$4 sm:$0xff]  }
 0x250   :  { %1322 = vmatprep.subr.bf16.mxu0 %v4207_v60  ;;  %1363 = vmatprep.subr.bf16.mxu1 %v4213_v54  ;;  %6278 = vst [vmem:[#allocation14_spill] sm:$0xff] %v4225_v10  ;;  %v4231_v60 = vld [vmem:[%s5741_s2 + $0xc4] ss:$16 sps:$4 sm:$0xff]   ;;  %v4237_v54 = vld [vmem:[%s5741_s2 + $0xcc] ss:$16 sps:$4 sm:$0xff]  }
 0x251   :  { %6279 = vst [vmem:[#allocation15_spill] sm:$0xff] %v4231_v60  ;;  %6280 = vst [vmem:[#allocation16_spill] sm:$0xff] %v4237_v54 }
 0x253   :  { %1323 = vmatpush1.bf16.msra.mxu0 %v4219_v5  ;;  %1364 = vmatpush1.bf16.msra.mxu1 %v4225_v10  ;;  %v4243_v5 = vld [vmem:[%s5741_s2 + $0xc0] ss:$16 sps:$4 sm:$0xff]   ;;  %v4249_v10 = vld [vmem:[%s5741_s2 + $0xc8] ss:$16 sps:$4 sm:$0xff]  }
 0x254   :  { %1324 = vmatprep.subr.bf16.mxu0 %v4231_v60  ;;  %1365 = vmatprep.subr.bf16.mxu1 %v4237_v54  ;;  %6281 = vst [vmem:[#allocation17_spill] sm:$0xff] %v4243_v5  ;;  %6282 = vst [vmem:[#allocation18_spill] sm:$0xff] %v4249_v10  ;;  %v4255_v60 = vld [vmem:[%s5741_s2 + $0xe4] ss:$16 sps:$4 sm:$0xff]   ;;  %v4261_v54 = vld [vmem:[%s5741_s2 + $0xec] ss:$16 sps:$4 sm:$0xff]  }
 0x255   :  { %6283 = vst [vmem:[#allocation19_spill] sm:$0xff] %v4255_v60  ;;  %6284 = vst [vmem:[#allocation20_spill] sm:$0xff] %v4261_v54 }
 0x257   :  { %1325 = vmatpush1.bf16.msra.mxu0 %v4243_v5  ;;  %1366 = vmatpush1.bf16.msra.mxu1 %v4249_v10  ;;  %v4267_v5 = vld [vmem:[%s5741_s2 + $0xe0] ss:$16 sps:$4 sm:$0xff]   ;;  %v4273_v10 = vld [vmem:[%s5741_s2 + $0xe8] ss:$16 sps:$4 sm:$0xff]  }
 0x258   :  { %1326 = vmatprep.subr.bf16.mxu0 %v4255_v60  ;;  %1367 = vmatprep.subr.bf16.mxu1 %v4261_v54  ;;  %6285 = vst [vmem:[#allocation21_spill] sm:$0xff] %v4273_v10  ;;  %v4279_v60 = vld [vmem:[%s5742_s4 + $0x4] ss:$16 sps:$4 sm:$0xff]   ;;  %v4285_v54 = vld [vmem:[%s5742_s4 + $0xc] ss:$16 sps:$4 sm:$0xff]  }
 0x259   :  { %6286 = vst [vmem:[#allocation22_spill] sm:$0xff] %v4279_v60  ;;  %6287 = vst [vmem:[#allocation23_spill] sm:$0xff] %v4285_v54 }
 0x25b   :  { %1327 = vmatpush1.bf16.msra.mxu0 %v4267_v5  ;;  %1368 = vmatpush1.bf16.msra.mxu1 %v4273_v10  ;;  %v4293_v10 = vld [vmem:[%s5742_s4] ss:$16 sps:$4 sm:$0xff]  }
 0x25c   :  { %1418 = vmatprep.subr.bf16.mxu0 %v4279_v60  ;;  %1459 = vmatprep.subr.bf16.mxu1 %v4285_v54  ;;  %6288 = vst [vmem:[#allocation24_spill] sm:$0xff] %v4293_v10  ;;  %v4299_v60 = vld [vmem:[%s5742_s4 + $0x8] ss:$16 sps:$4 sm:$0xff]   ;;  %v4305_v54 = vld [vmem:[%s5742_s4 + $0x24] ss:$16 sps:$4 sm:$0xff]  }
 0x25d   :  { %6289 = vst [vmem:[#allocation25_spill] sm:$0xff] %v4299_v60 }
 0x25e   :  { %1345 = vmatmul.mubr.bf16.vlgmr.msra.gmra.mrb[32].mxu0 %v4090_v0  ;;  %1386 = vmatmul.mubr.bf16.vlgmr.msra.gmra.mrb[32].mxu1 %v4090_v0  ;;  %v4311_v0 = vld [vmem:[%s5742_s4 + $0x2c] ss:$16 sps:$4 sm:$0xff]  }
 0x25f   :  { %1419 = vmatpush1.bf16.msra.mxu0 %v4293_v10  ;;  %1460 = vmatpush1.bf16.msra.mxu1 %v4299_v60  ;;  %v4317_v10 = vld [vmem:[%s5742_s4 + $0x20] ss:$16 sps:$4 sm:$0xff]   ;;  %v4323_v60 = vld [vmem:[%s5742_s4 + $0x28] ss:$16 sps:$4 sm:$0xff]  }
 0x260   :  { %1420 = vmatprep.subr.bf16.mxu0 %v4305_v54  ;;  %1461 = vmatprep.subr.bf16.mxu1 %v4311_v0 }
 0x263   :  { %1421 = vmatpush1.bf16.msra.mxu0 %v4317_v10  ;;  %1462 = vmatpush1.bf16.msra.mxu1 %v4323_v60 }
 0x264   :  { %1422 = vmatprep.subr.bf16.mxu0 %v3509_v53  ;;  %1463 = vmatprep.subr.bf16.mxu1 %v6203_v12  ;;  %v6290_v53 = vld [vmem:[#allocation42_spill] sm:$0xff]  ;;  %v6291_v12 = vld [vmem:[#allocation43_spill] sm:$0xff] }
 0x267   :  { %1423 = vmatpush1.bf16.msra.mxu0 %v6204_v13  ;;  %1464 = vmatpush1.bf16.msra.mxu1 %v6205_v14  ;;  %v6292_v13 = vld [vmem:[#allocation44_spill] sm:$0xff]  ;;  %v6293_v14 = vld [vmem:[#allocation45_spill] sm:$0xff] }
 0x268   :  { %1424 = vmatprep.subr.bf16.mxu0 %v6206_v15  ;;  %1465 = vmatprep.subr.bf16.mxu1 %v6207_v16  ;;  %v6294_v15 = vld [vmem:[#allocation46_spill] sm:$0xff]  ;;  %v6295_v16 = vld [vmem:[#allocation47_spill] sm:$0xff] }
 0x26b   :  { %1425 = vmatpush1.bf16.msra.mxu0 %v6208_v17  ;;  %1466 = vmatpush1.bf16.msra.mxu1 %v6209_v18  ;;  %v6296_v17 = vld [vmem:[#allocation48_spill] sm:$0xff]  ;;  %v6297_v18 = vld [vmem:[#allocation49_spill] sm:$0xff] }
 0x26c   :  { %1426 = vmatprep.subr.bf16.mxu0 %v6210_v19  ;;  %1467 = vmatprep.subr.bf16.mxu1 %v6211_v21  ;;  %v6298_v19 = vld [vmem:[#allocation50_spill] sm:$0xff]  ;;  %v6299_v21 = vld [vmem:[#allocation51_spill] sm:$0xff] }
 0x26f   :  { %1427 = vmatpush1.bf16.msra.mxu0 %v6212_v22  ;;  %1468 = vmatpush1.bf16.msra.mxu1 %v6213_v23  ;;  %v6300_v22 = vld [vmem:[#allocation52_spill] sm:$0xff]  ;;  %v6301_v23 = vld [vmem:[#allocation53_spill] sm:$0xff] }
 0x270   :  { %1428 = vmatprep.subr.bf16.mxu0 %v6214_v24  ;;  %1469 = vmatprep.subr.bf16.mxu1 %v6215_v25  ;;  %v6302_v24 = vld [vmem:[#allocation54_spill] sm:$0xff]  ;;  %v6303_v25 = vld [vmem:[#allocation55_spill] sm:$0xff] }
 0x273   :  { %1429 = vmatpush1.bf16.msra.mxu0 %v6216_v26  ;;  %1470 = vmatpush1.bf16.msra.mxu1 %v6217_v27  ;;  %v6304_v26 = vld [vmem:[#allocation56_spill] sm:$0xff]  ;;  %v6305_v27 = vld [vmem:[#allocation57_spill] sm:$0xff] }
 0x274   :  { %1430 = vmatprep.subr.bf16.mxu0 %v6218_v28  ;;  %1471 = vmatprep.subr.bf16.mxu1 %v6219_v30  ;;  %v6306_v28 = vld [vmem:[#allocation3_spill] sm:$0xff]  ;;  %v6307_v30 = vld [vmem:[#allocation4_spill] sm:$0xff] }
 0x277   :  { %1431 = vmatpush1.bf16.msra.mxu0 %v6220_v31  ;;  %1472 = vmatpush1.bf16.msra.mxu1 %v6221_v32 }
 0x278   :  { %1432 = vmatprep.subr.bf16.mxu0 %v6222_v33  ;;  %1473 = vmatprep.subr.bf16.mxu1 %v6223_v34  ;;  %v6308_v33 = vld [vmem:[#allocation5_spill] sm:$0xff] }
 0x27b   :  { %1433 = vmatpush1.bf16.msra.mxu0 %v6224_v35  ;;  %1474 = vmatpush1.bf16.msra.mxu1 %v6225_v36 }
 0x27c   :  { %1434 = vmatprep.subr.bf16.mxu0 %v6226_v37  ;;  %1475 = vmatprep.subr.bf16.mxu1 %v6227_v39  ;;  %v6309_v37 = vld [vmem:[#allocation6_spill] sm:$0xff] }
 0x27f   :  { %1435 = vmatpush1.bf16.msra.mxu0 %v6228_v40  ;;  %1476 = vmatpush1.bf16.msra.mxu1 %v6229_v41 }
 0x280   :  { %1436 = vmatprep.subr.bf16.mxu0 %v6230_v42  ;;  %1477 = vmatprep.subr.bf16.mxu1 %v6231_v43 }
 0x283   :  { %1437 = vmatpush1.bf16.msra.mxu0 %v6232_v44  ;;  %1478 = vmatpush1.bf16.msra.mxu1 %v6233_v45 }
 0x284   :  { %1438 = vmatprep.subr.bf16.mxu0 %v6234_v46  ;;  %1479 = vmatprep.subr.bf16.mxu1 %v6235_v47  ;;  %v6310_v46 = vld [vmem:[#allocation7_spill] sm:$0xff] }
 0x287   :  { %1439 = vmatpush1.bf16.msra.mxu0 %v6236_v48  ;;  %1480 = vmatpush1.bf16.msra.mxu1 %v6237_v49  ;;  %v6311_v48 = vld [vmem:[#allocation8_spill] sm:$0xff] }
 0x288   :  { %1440 = vmatprep.subr.bf16.mxu0 %v6238_v50  ;;  %1481 = vmatprep.subr.bf16.mxu1 %v6239_v51 }
 0x28b   :  { %1441 = vmatpush1.bf16.msra.mxu0 %v6240_v52  ;;  %1482 = vmatpush1.bf16.msra.mxu1 %v6241_v20 }
 0x28c   :  { %1442 = vmatprep.subr.bf16.mxu0 %v6290_v53  ;;  %1483 = vmatprep.subr.bf16.mxu1 %v6291_v12 }
 0x28f   :  { %1443 = vmatpush1.bf16.msra.mxu0 %v6292_v13  ;;  %1484 = vmatpush1.bf16.msra.mxu1 %v6293_v14 }
 0x290   :  { %1444 = vmatprep.subr.bf16.mxu0 %v6294_v15  ;;  %1485 = vmatprep.subr.bf16.mxu1 %v6295_v16  ;;  %v6312_v16 = vld [vmem:[#allocation9_spill] sm:$0xff] }
 0x293   :  { %1445 = vmatpush1.bf16.msra.mxu0 %v6296_v17  ;;  %1486 = vmatpush1.bf16.msra.mxu1 %v6297_v18 }
 0x294   :  { %1446 = vmatprep.subr.bf16.mxu0 %v6298_v19  ;;  %1487 = vmatprep.subr.bf16.mxu1 %v6299_v21 }
 0x297   :  { %1447 = vmatpush1.bf16.msra.mxu0 %v6300_v22  ;;  %1488 = vmatpush1.bf16.msra.mxu1 %v6301_v23 }
 0x298   :  { %1448 = vmatprep.subr.bf16.mxu0 %v6302_v24  ;;  %1489 = vmatprep.subr.bf16.mxu1 %v6303_v25  ;;  %v6313_v24 = vld [vmem:[#allocation63_spill] sm:$0xff] }
 0x29b   :  { %1449 = vmatpush1.bf16.msra.mxu0 %v6304_v26  ;;  %1490 = vmatpush1.bf16.msra.mxu1 %v6305_v27  ;;  %v6314_v26 = vld [vmem:[#allocation64_spill] sm:$0xff] }
 0x29c   :  { %1522 = vmatprep.subr.bf16.mxu0 %v6306_v28  ;;  %1563 = vmatprep.subr.bf16.mxu1 %v6307_v30 }
 0x311   :  { %v1242_v31 = vpop.f32.mrb[28].mxu0  ;;  %v1283_v32 = vpop.f32.mrb[28].mxu1 }
 0x312   :  { %v1243_v34 = vadd.f32 %v1242_v31, %v6308_v33  ;;  %v1244_v35 = vpop.f32.mrb[29].mxu0  ;;  %v1285_v36 = vpop.f32.mrb[29].mxu1  ;;  %v1284_v47 = vadd.f32 %v1283_v32, %v6310_v46 }
 0x313   :  { %v1245_v39 = vadd.f32 %v1244_v35, %v6309_v37  ;;  %v1246_v40 = vpop.f32.mrb[30].mxu0  ;;  %v1287_v41 = vpop.f32.mrb[30].mxu1  ;;  %v1286_v49 = vadd.f32 %v1285_v36, %v6311_v48  ;;  %v6315_v35 = vld [vmem:[#allocation65_spill] sm:$0xff] }
 0x314   :  { %v1290_v42 = vmul.f32 0.5, %v1243_v34  ;;  %v1247_v43 = vpop.f32.mrb[31].mxu0  ;;  %v1288_v44 = vpop.f32.mrb[31].mxu1 }
 0x315   :  { %v1294_v45 = vmul.f32 0.5, %v1245_v39  ;;  %v1299_v50 = vmul.f32 0.5, %v1286_v49  ;;  %v6316_v39 = vld [vmem:[#allocation66_spill] sm:$0xff] }
 0x316   :  { %2871 = vtanh.f32 %v1290_v42 }
 0x317   :  { %2873 = vtanh.f32 %v1294_v45 }
 0x318   :  { %2875 = vtanh.f32 %v1284_v47 }
 0x319   :  { %2877 = vtanh.f32 %v1299_v50 }
 0x320   :  { %v2872_v51 = vpop.eup %2871 }
 0x321   :  { %v2874_v52 = vpop.eup %2873  ;;  %v1292_v20 = vadd.f32 1.0, %v2872_v51 }
 0x322   :  { %v1296_v53 = vadd.f32 1.0, %v2874_v52  ;;  %v2876_v13 = vpop.eup %2875 }
 0x323   :  { %v1293_v12 = vmul.f32 0.5, %v1292_v20  ;;  %v2878_v19 = vpop.eup %2877 }
 0x324   :  { %v1297_v14 = vmul.f32 0.5, %v1296_v53  ;;  %v1301_v21 = vadd.f32 1.0, %v2878_v19 }
 0x325   :  { %v1304_v15 = vmul.f32 %v2876_v13, %v1293_v12 }
 0x326   :  { %v1303_v17 = vmul.f32 %v1297_v14, %v6312_v16  ;;  %v1302_v34 = vmul.f32 0.5, %v1301_v21 }
 0x328   :  { %v4389_v18 = vadd.f32 %v1304_v15, %v1303_v17 }
 0x32a   :  { %2879 = vtanh.f32 %v4389_v18 }
 0x331   :  { %v1346_v22 = vpop.f32.mrb[32].mxu0  ;;  %v1387_v23 = vpop.f32.mrb[32].mxu1 }
 0x332   :  { %v1394_v25 = vadd.f32 %v1346_v22, %v6313_v24  ;;  %v1396_v27 = vadd.f32 %v1387_v23, %v6314_v26  ;;  %v1348_v31 = vpop.f32.mrb[33].mxu0  ;;  %v1389_v32 = vpop.f32.mrb[33].mxu1 }
 0x333   :  { %v1395_v36 = vadd.f32 %v1348_v31, %v6315_v35  ;;  %v1397_v40 = vadd.f32 %v1389_v32, %v6316_v39  ;;  %v1350_v41 = vpop.f32.mrb[34].mxu0  ;;  %v1391_v42 = vpop.f32.mrb[34].mxu1  ;;  %v6318_v31 = vld [vmem:[#allocation11_spill] sm:$0xff]  ;;  %v6319_v32 = vld [vmem:[#allocation12_spill] sm:$0xff]  ;;  %v6321_v35 = vld [vmem:[#allocation14_spill] sm:$0xff] }
 0x334   :  { %v2880_v43 = vpop.eup %2879  ;;  %v1398_v44 = vmul.f32 0.5, %v1394_v25  ;;  %v1351_v45 = vpop.f32.mrb[35].mxu0  ;;  %v6323_v39 = vld [vmem:[#allocation16_spill] sm:$0xff]  ;;  %v6325_v41 = vld [vmem:[#allocation18_spill] sm:$0xff]  ;;  %v6326_v42 = vld [vmem:[#allocation19_spill] sm:$0xff] }
 0x335   :  { %v1392_v47 = vpop.f32.mrb[35].mxu1  ;;  %v1402_v49 = vmul.f32 0.5, %v1395_v36  ;;  %v1307_v50 = vmul.f32 %v2880_v43, %v1302_v34  ;;  %v1407_v52 = vmul.f32 0.5, %v1397_v40  ;;  %v6320_v34 = vld [vmem:[#allocation13_spill] sm:$0xff]  ;;  %v6322_v36 = vld [vmem:[#allocation15_spill] sm:$0xff]  ;;  %v6327_v43 = vld [vmem:[#allocation20_spill] sm:$0xff] }
 0x336   :  { %2881 = vtanh.f32 %v1398_v44  ;;  %v6324_v40 = vld [vmem:[#allocation17_spill] sm:$0xff]  ;;  %v6329_v45 = vld [vmem:[#allocation22_spill] sm:$0xff]  ;;  %v6330_v47 = vld [vmem:[#allocation23_spill] sm:$0xff] }
 0x337   :  { %2883 = vtanh.f32 %v1402_v49  ;;  %v1417_v51 = vpack.c.bf16 %v1307_v50, %v1307_v50  ;;  %v6328_v44 = vld [vmem:[#allocation21_spill] sm:$0xff]  ;;  %v6331_v49 = vld [vmem:[#allocation24_spill] sm:$0xff] }
 0x338   :  { %2885 = vtanh.f32 %v1396_v27  ;;  %v6332_v50 = vld [vmem:[#allocation25_spill] sm:$0xff] }
 0x339   :  { %1450 = vmatprep.mubr.bf16.mxu0 %v1417_v51  ;;  %1491 = vmatprep.mubr.bf16.mxu1 %v1417_v51  ;;  %2887 = vtanh.f32 %v1407_v52  ;;  %v4443_v51 = vld [vmem:[%s5742_s4 + $0x44] ss:$16 sps:$4 sm:$0xff]   ;;  %v4449_v52 = vld [vmem:[%s5742_s4 + $0x4c] ss:$16 sps:$4 sm:$0xff]  }
 0x340   :  { %v2882_v20 = vpop.eup %2881 }
 0x341   :  { %v2884_v53 = vpop.eup %2883  ;;  %v1400_v12 = vadd.f32 1.0, %v2882_v20  ;;  %v4455_v20 = vld [vmem:[%s5742_s4 + $0x40] ss:$16 sps:$4 sm:$0xff]  }
 0x342   :  { %v1404_v13 = vadd.f32 1.0, %v2884_v53  ;;  %v2886_v15 = vpop.eup %2885  ;;  %6333 = vst [vmem:[#allocation26_spill] sm:$0xff] %v4455_v20  ;;  %v4461_v53 = vld [vmem:[%s5742_s4 + $0x48] ss:$16 sps:$4 sm:$0xff]  }
 0x343   :  { %v1401_v14 = vmul.f32 0.5, %v1400_v12  ;;  %v2888_v22 = vpop.eup %2887  ;;  %6334 = vst [vmem:[#allocation27_spill] sm:$0xff] %v4461_v53  ;;  %v4467_v12 = vld [vmem:[%s5742_s4 + $0x64] ss:$16 sps:$4 sm:$0xff]  }
 0x344   :  { %v1405_v16 = vmul.f32 0.5, %v1404_v13  ;;  %v1409_v23 = vadd.f32 1.0, %v2888_v22  ;;  %6335 = vst [vmem:[#allocation28_spill] sm:$0xff] %v4467_v12  ;;  %v4473_v13 = vld [vmem:[%s5742_s4 + $0x6c] ss:$16 sps:$4 sm:$0xff]  }
 0x345   :  { %v1412_v17 = vmul.f32 %v2886_v15, %v1401_v14  ;;  %6336 = vst [vmem:[#allocation29_spill] sm:$0xff] %v4473_v13  ;;  %v4479_v14 = vld [vmem:[%s5742_s4 + $0x60] ss:$16 sps:$4 sm:$0xff]   ;;  %v4485_v15 = vld [vmem:[%s5742_s4 + $0x68] ss:$16 sps:$4 sm:$0xff]  }
 0x346   :  { %v1411_v19 = vmul.f32 %v1405_v16, %v4087_v11  ;;  %v1410_v24 = vmul.f32 0.5, %v1409_v23  ;;  %v6317_v11 = vld [vmem:[#allocation10_spill] sm:$0xff]  ;;  %6337 = vst [vmem:[#allocation30_spill] sm:$0xff] %v4479_v14  ;;  %6338 = vst [vmem:[#allocation31_spill] sm:$0xff] %v4485_v15  ;;  %v4491_v16 = vld [vmem:[%s5742_s4 + $0x84] ss:$16 sps:$4 sm:$0xff]  }
 0x347   :  { %6339 = vst [vmem:[#allocation32_spill] sm:$0xff] %v4491_v16  ;;  %v4509_v22 = vld [vmem:[%s5742_s4 + $0x88] ss:$16 sps:$4 sm:$0xff]   ;;  %v4515_v23 = vld [vmem:[%s5742_s4 + $0xa4] ss:$16 sps:$4 sm:$0xff]  }
 0x348   :  { %v4397_v21 = vadd.f32 %v1412_v17, %v1411_v19  ;;  %v4497_v17 = vld [vmem:[%s5742_s4 + $0x8c] ss:$16 sps:$4 sm:$0xff]   ;;  %v4503_v19 = vld [vmem:[%s5742_s4 + $0x80] ss:$16 sps:$4 sm:$0xff]   ;;  %6342 = vst [vmem:[#allocation35_spill] sm:$0xff] %v4509_v22  ;;  %6343 = vst [vmem:[#allocation36_spill] sm:$0xff] %v4515_v23 }
 0x349   :  { %6340 = vst [vmem:[#allocation33_spill] sm:$0xff] %v4497_v17  ;;  %6341 = vst [vmem:[#allocation34_spill] sm:$0xff] %v4503_v19 }
 0x34a   :  { %2889 = vtanh.f32 %v4397_v21 }
 0x354   :  { %v2890_v25 = vpop.eup %2889 }
 0x355   :  { %v1415_v26 = vmul.f32 %v2890_v25, %v1410_v24  ;;  %v4521_v24 = vld [vmem:[%s5742_s4 + $0xac] ss:$16 sps:$4 sm:$0xff]   ;;  %v4527_v25 = vld [vmem:[%s5742_s4 + $0xa0] ss:$16 sps:$4 sm:$0xff]  }
 0x356   :  { %6344 = vst [vmem:[#allocation37_spill] sm:$0xff] %v4521_v24  ;;  %6345 = vst [vmem:[#allocation38_spill] sm:$0xff] %v4527_v25 }
 0x357   :  { %v1416_v27 = vpack.c.bf16 %v1415_v26, %v1415_v26  ;;  %v4533_v26 = vld [vmem:[%s5742_s4 + $0xa8] ss:$16 sps:$4 sm:$0xff]  }
 0x358   :  { %6346 = vst [vmem:[#allocation39_spill] sm:$0xff] %v4533_v26 }
 0x359   :  { %1451 = vmatmul.mubr.bf16.vlgmr.msra.gmra.mrb[36].mxu0 %v1416_v27  ;;  %1492 = vmatmul.mubr.bf16.vlgmr.msra.gmra.mrb[36].mxu1 %v1416_v27 }
 0x35a   :  { %1523 = vmatpush1.bf16.msra.mxu0 %v4097_v3  ;;  %1564 = vmatpush1.bf16.msra.mxu1 %v4103_v59 }
 0x35b   :  { %1524 = vmatprep.subr.bf16.mxu0 %v4109_v8  ;;  %1565 = vmatprep.subr.bf16.mxu1 %v4115_v58 }
 0x35c   :  { %1554 = vmatprep.mubr.bf16.mxu0 %v6202_v61  ;;  %1595 = vmatprep.mubr.bf16.mxu1 %v6202_v61 }
 0x35e   :  { %1525 = vmatpush1.bf16.msra.mxu0 %v4123_v29  ;;  %1566 = vmatpush1.bf16.msra.mxu1 %v4129_v56 }
 0x35f   :  { %1526 = vmatprep.subr.bf16.mxu0 %v4135_v6  ;;  %1567 = vmatprep.subr.bf16.mxu1 %v4141_v2 }
 0x362   :  { %1527 = vmatpush1.bf16.msra.mxu0 %v4147_v38  ;;  %1568 = vmatpush1.bf16.msra.mxu1 %v4153_v57 }
 0x363   :  { %1528 = vmatprep.subr.bf16.mxu0 %v4159_v62  ;;  %1569 = vmatprep.subr.bf16.mxu1 %v4165_v55 }
 0x366   :  { %1529 = vmatpush1.bf16.msra.mxu0 %v4171_v4  ;;  %1570 = vmatpush1.bf16.msra.mxu1 %v4177_v1 }
 0x367   :  { %1530 = vmatprep.subr.bf16.mxu0 %v4183_v7  ;;  %1571 = vmatprep.subr.bf16.mxu1 %v4189_v9 }
 0x36a   :  { %1531 = vmatpush1.bf16.msra.mxu0 %v4195_v63  ;;  %1572 = vmatpush1.bf16.msra.mxu1 %v6317_v11 }
 0x36b   :  { %1532 = vmatprep.subr.bf16.mxu0 %v6318_v31  ;;  %1573 = vmatprep.subr.bf16.mxu1 %v6319_v32 }
 0x36e   :  { %1533 = vmatpush1.bf16.msra.mxu0 %v6320_v34  ;;  %1574 = vmatpush1.bf16.msra.mxu1 %v6321_v35 }
 0x36f   :  { %1534 = vmatprep.subr.bf16.mxu0 %v6322_v36  ;;  %1575 = vmatprep.subr.bf16.mxu1 %v6323_v39 }
 0x372   :  { %1535 = vmatpush1.bf16.msra.mxu0 %v6324_v40  ;;  %1576 = vmatpush1.bf16.msra.mxu1 %v6325_v41 }
 0x373   :  { %1536 = vmatprep.subr.bf16.mxu0 %v6326_v42  ;;  %1577 = vmatprep.subr.bf16.mxu1 %v6327_v43 }
 0x376   :  { %1537 = vmatpush1.bf16.msra.mxu0 %v4267_v5  ;;  %1578 = vmatpush1.bf16.msra.mxu1 %v6328_v44 }
 0x377   :  { %1628 = vmatprep.subr.bf16.mxu0 %v6329_v45  ;;  %1669 = vmatprep.subr.bf16.mxu1 %v6330_v47 }
 0x379   :  { %1555 = vmatmul.mubr.bf16.vlgmr.msra.gmra.mrb[40].mxu0 %v1416_v27  ;;  %1596 = vmatmul.mubr.bf16.vlgmr.msra.gmra.mrb[40].mxu1 %v1416_v27  ;;  %v4539_v27 = vld [vmem:[%s5742_s4 + $0xc4] ss:$16 sps:$4 sm:$0xff]  }
 0x37a   :  { %1629 = vmatpush1.bf16.msra.mxu0 %v6331_v49  ;;  %1670 = vmatpush1.bf16.msra.mxu1 %v6332_v50  ;;  %6347 = vst [vmem:[#allocation40_spill] sm:$0xff] %v4539_v27 }
 0x37b   :  { %1630 = vmatprep.subr.bf16.mxu0 %v4305_v54  ;;  %1671 = vmatprep.subr.bf16.mxu1 %v4311_v0 }
 0x37e   :  { %1631 = vmatpush1.bf16.msra.mxu0 %v4317_v10  ;;  %1672 = vmatpush1.bf16.msra.mxu1 %v4323_v60 }
 0x37f   :  { %1632 = vmatprep.subr.bf16.mxu0 %v4443_v51  ;;  %1673 = vmatprep.subr.bf16.mxu1 %v4449_v52 }
 0x382   :  { %1633 = vmatpush1.bf16.msra.mxu0 %v4455_v20  ;;  %1674 = vmatpush1.bf16.msra.mxu1 %v4461_v53 }
 0x383   :  { %1634 = vmatprep.subr.bf16.mxu0 %v4467_v12  ;;  %1675 = vmatprep.subr.bf16.mxu1 %v4473_v13 }
 0x386   :  { %1635 = vmatpush1.bf16.msra.mxu0 %v4479_v14  ;;  %1676 = vmatpush1.bf16.msra.mxu1 %v4485_v15 }
 0x387   :  { %1636 = vmatprep.subr.bf16.mxu0 %v4491_v16  ;;  %1677 = vmatprep.subr.bf16.mxu1 %v4497_v17 }
 0x38a   :  { %1637 = vmatpush1.bf16.msra.mxu0 %v4503_v19  ;;  %1678 = vmatpush1.bf16.msra.mxu1 %v4509_v22 }
 0x38b   :  { %1638 = vmatprep.subr.bf16.mxu0 %v4515_v23  ;;  %1679 = vmatprep.subr.bf16.mxu1 %v4521_v24  ;;  %v4545_v24 = vld [vmem:[%s5742_s4 + $0xcc] ss:$16 sps:$4 sm:$0xff]  }
 0x38c   :  { %6348 = vst [vmem:[#allocation41_spill] sm:$0xff] %v4545_v24 }
 0x38e   :  { %1639 = vmatpush1.bf16.msra.mxu0 %v4527_v25  ;;  %1680 = vmatpush1.bf16.msra.mxu1 %v4533_v26  ;;  %v4551_v25 = vld [vmem:[%s5742_s4 + $0xc0] ss:$16 sps:$4 sm:$0xff]   ;;  %v4557_v26 = vld [vmem:[%s5742_s4 + $0xc8] ss:$16 sps:$4 sm:$0xff]  }
 0x38f   :  { %1640 = vmatprep.subr.bf16.mxu0 %v4539_v27  ;;  %1681 = vmatprep.subr.bf16.mxu1 %v4545_v24  ;;  %6349 = vst [vmem:[#allocation58_spill] sm:$0xff] %v4551_v25  ;;  %6350 = vst [vmem:[#allocation59_spill] sm:$0xff] %v4557_v26  ;;  %v4563_v27 = vld [vmem:[%s5742_s4 + $0xe4] ss:$16 sps:$4 sm:$0xff]   ;;  %v4569_v24 = vld [vmem:[%s5742_s4 + $0xec] ss:$16 sps:$4 sm:$0xff]  }
 0x390   :  { %6351 = vst [vmem:[#allocation60_spill] sm:$0xff] %v4563_v27  ;;  %6352 = vst [vmem:[#allocation61_spill] sm:$0xff] %v4569_v24 }
 0x392   :  { %1641 = vmatpush1.bf16.msra.mxu0 %v4551_v25  ;;  %1682 = vmatpush1.bf16.msra.mxu1 %v4557_v26  ;;  %v4575_v25 = vld [vmem:[%s5742_s4 + $0xe0] ss:$16 sps:$4 sm:$0xff]   ;;  %v4581_v26 = vld [vmem:[%s5742_s4 + $0xe8] ss:$16 sps:$4 sm:$0xff]  }
 0x393   :  { %1642 = vmatprep.subr.bf16.mxu0 %v4563_v27  ;;  %1683 = vmatprep.subr.bf16.mxu1 %v4569_v24  ;;  %6353 = vst [vmem:[#allocation62_spill] sm:$0xff] %v4575_v25  ;;  %6354 = vst [vmem:[#allocation42_spill] sm:$0xff] %v4581_v26  ;;  %v4587_v27 = vld [vmem:[%s5742_s4 + $0x104] ss:$16 sps:$4 sm:$0xff]   ;;  %v4593_v24 = vld [vmem:[%s5742_s4 + $0x10c] ss:$16 sps:$4 sm:$0xff]  }
 0x394   :  { %6355 = vst [vmem:[#allocation43_spill] sm:$0xff] %v4587_v27  ;;  %6356 = vst [vmem:[#allocation44_spill] sm:$0xff] %v4593_v24 }
 0x396   :  { %1643 = vmatpush1.bf16.msra.mxu0 %v4575_v25  ;;  %1684 = vmatpush1.bf16.msra.mxu1 %v4581_v26  ;;  %v4599_v25 = vld [vmem:[%s5742_s4 + $0x100] ss:$16 sps:$4 sm:$0xff]   ;;  %v4605_v26 = vld [vmem:[%s5742_s4 + $0x108] ss:$16 sps:$4 sm:$0xff]  }
 0x397   :  { %1644 = vmatprep.subr.bf16.mxu0 %v4587_v27  ;;  %1685 = vmatprep.subr.bf16.mxu1 %v4593_v24  ;;  %6357 = vst [vmem:[#allocation45_spill] sm:$0xff] %v4599_v25  ;;  %6358 = vst [vmem:[#allocation46_spill] sm:$0xff] %v4605_v26  ;;  %v4611_v27 = vld [vmem:[%s5742_s4 + $0x124] ss:$16 sps:$4 sm:$0xff]   ;;  %v4617_v24 = vld [vmem:[%s5742_s4 + $0x12c] ss:$16 sps:$4 sm:$0xff]  }
 0x398   :  { %6359 = vst [vmem:[#allocation47_spill] sm:$0xff] %v4611_v27  ;;  %6360 = vst [vmem:[#allocation48_spill] sm:$0xff] %v4617_v24 }
 0x39a   :  { %1645 = vmatpush1.bf16.msra.mxu0 %v4599_v25  ;;  %1686 = vmatpush1.bf16.msra.mxu1 %v4605_v26  ;;  %v4623_v25 = vld [vmem:[%s5742_s4 + $0x120] ss:$16 sps:$4 sm:$0xff]   ;;  %v4629_v26 = vld [vmem:[%s5742_s4 + $0x128] ss:$16 sps:$4 sm:$0xff]  }
 0x39b   :  { %1646 = vmatprep.subr.bf16.mxu0 %v4611_v27  ;;  %1687 = vmatprep.subr.bf16.mxu1 %v4617_v24  ;;  %6361 = vst [vmem:[#allocation49_spill] sm:$0xff] %v4623_v25  ;;  %6362 = vst [vmem:[#allocation50_spill] sm:$0xff] %v4629_v26  ;;  %v4635_v27 = vld [vmem:[%s5742_s4 + $0x144] ss:$16 sps:$4 sm:$0xff]   ;;  %v4641_v24 = vld [vmem:[%s5742_s4 + $0x14c] ss:$16 sps:$4 sm:$0xff]  }
 0x39c   :  { %6363 = vst [vmem:[#allocation51_spill] sm:$0xff] %v4635_v27  ;;  %6364 = vst [vmem:[#allocation52_spill] sm:$0xff] %v4641_v24 }
 0x39e   :  { %1647 = vmatpush1.bf16.msra.mxu0 %v4623_v25  ;;  %1688 = vmatpush1.bf16.msra.mxu1 %v4629_v26  ;;  %v4647_v25 = vld [vmem:[%s5742_s4 + $0x140] ss:$16 sps:$4 sm:$0xff]   ;;  %v4653_v26 = vld [vmem:[%s5742_s4 + $0x148] ss:$16 sps:$4 sm:$0xff]  }
 0x39f   :  { %1648 = vmatprep.subr.bf16.mxu0 %v4635_v27  ;;  %1689 = vmatprep.subr.bf16.mxu1 %v4641_v24  ;;  %6365 = vst [vmem:[#allocation53_spill] sm:$0xff] %v4647_v25  ;;  %6366 = vst [vmem:[#allocation54_spill] sm:$0xff] %v4653_v26  ;;  %v4659_v27 = vld [vmem:[%s5742_s4 + $0x164] ss:$16 sps:$4 sm:$0xff]   ;;  %v4665_v24 = vld [vmem:[%s5742_s4 + $0x16c] ss:$16 sps:$4 sm:$0xff]  }
 0x3a0   :  { %6367 = vst [vmem:[#allocation55_spill] sm:$0xff] %v4659_v27  ;;  %6368 = vst [vmem:[#allocation56_spill] sm:$0xff] %v4665_v24 }
 0x3a2   :  { %1649 = vmatpush1.bf16.msra.mxu0 %v4647_v25  ;;  %1690 = vmatpush1.bf16.msra.mxu1 %v4653_v26  ;;  %v4671_v25 = vld [vmem:[%s5742_s4 + $0x160] ss:$16 sps:$4 sm:$0xff]   ;;  %v4677_v26 = vld [vmem:[%s5742_s4 + $0x168] ss:$16 sps:$4 sm:$0xff]  }
 0x3a3   :  { %1650 = vmatprep.subr.bf16.mxu0 %v4659_v27  ;;  %1691 = vmatprep.subr.bf16.mxu1 %v4665_v24  ;;  %6369 = vst [vmem:[#allocation57_spill] sm:$0xff] %v4671_v25  ;;  %6370 = vst [vmem:[#allocation3_spill] sm:$0xff] %v4677_v26  ;;  %v4683_v27 = vld [vmem:[%s5742_s4 + $0x184] ss:$16 sps:$4 sm:$0xff]   ;;  %v4689_v24 = vld [vmem:[%s5742_s4 + $0x18c] ss:$16 sps:$4 sm:$0xff]  }
 0x3a4   :  { %6371 = vst [vmem:[#allocation4_spill] sm:$0xff] %v4683_v27  ;;  %6372 = vst [vmem:[#allocation9_spill] sm:$0xff] %v4689_v24 }
 0x3a6   :  { %1651 = vmatpush1.bf16.msra.mxu0 %v4671_v25  ;;  %1692 = vmatpush1.bf16.msra.mxu1 %v4677_v26  ;;  %v4695_v25 = vld [vmem:[%s5742_s4 + $0x180] ss:$16 sps:$4 sm:$0xff]   ;;  %v4701_v26 = vld [vmem:[%s5742_s4 + $0x188] ss:$16 sps:$4 sm:$0xff]  }
 0x3a7   :  { %1652 = vmatprep.subr.bf16.mxu0 %v4683_v27  ;;  %1693 = vmatprep.subr.bf16.mxu1 %v4689_v24  ;;  %6373 = vst [vmem:[#allocation63_spill] sm:$0xff] %v4695_v25  ;;  %6374 = vst [vmem:[#allocation64_spill] sm:$0xff] %v4701_v26  ;;  %v4707_v27 = vld [vmem:[%s5742_s4 + $0x1a4] ss:$16 sps:$4 sm:$0xff]   ;;  %v4713_v24 = vld [vmem:[%s5742_s4 + $0x1ac] ss:$16 sps:$4 sm:$0xff]  }
 0x3a8   :  { %6375 = vst [vmem:[#allocation65_spill] sm:$0xff] %v4707_v27  ;;  %6376 = vst [vmem:[#allocation66_spill] sm:$0xff] %v4713_v24 }
 0x3aa   :  { %1653 = vmatpush1.bf16.msra.mxu0 %v4695_v25  ;;  %1694 = vmatpush1.bf16.msra.mxu1 %v4701_v26  ;;  %v4719_v25 = vld [vmem:[%s5742_s4 + $0x1a0] ss:$16 sps:$4 sm:$0xff]   ;;  %v4725_v26 = vld [vmem:[%s5742_s4 + $0x1a8] ss:$16 sps:$4 sm:$0xff]  }
 0x3ab   :  { %1654 = vmatprep.subr.bf16.mxu0 %v4707_v27  ;;  %1695 = vmatprep.subr.bf16.mxu1 %v4713_v24  ;;  %6377 = vst [vmem:[#allocation10_spill] sm:$0xff] %v4719_v25  ;;  %6378 = vst [vmem:[#allocation11_spill] sm:$0xff] %v4725_v26  ;;  %v4731_v27 = vld [vmem:[%s5742_s4 + $0x1c4] ss:$16 sps:$4 sm:$0xff]   ;;  %v4737_v24 = vld [vmem:[%s5742_s4 + $0x1cc] ss:$16 sps:$4 sm:$0xff]  }
 0x3ac   :  { %6379 = vst [vmem:[#allocation12_spill] sm:$0xff] %v4731_v27  ;;  %6380 = vst [vmem:[#allocation13_spill] sm:$0xff] %v4737_v24 }
 0x3ae   :  { %1655 = vmatpush1.bf16.msra.mxu0 %v4719_v25  ;;  %1696 = vmatpush1.bf16.msra.mxu1 %v4725_v26  ;;  %v4743_v25 = vld [vmem:[%s5742_s4 + $0x1c0] ss:$16 sps:$4 sm:$0xff]   ;;  %v4749_v26 = vld [vmem:[%s5742_s4 + $0x1c8] ss:$16 sps:$4 sm:$0xff]  }
 0x3af   :  { %1656 = vmatprep.subr.bf16.mxu0 %v4731_v27  ;;  %1697 = vmatprep.subr.bf16.mxu1 %v4737_v24  ;;  %6381 = vst [vmem:[#allocation14_spill] sm:$0xff] %v4743_v25  ;;  %6382 = vst [vmem:[#allocation15_spill] sm:$0xff] %v4749_v26  ;;  %v4755_v27 = vld [vmem:[%s5742_s4 + $0x1e4] ss:$16 sps:$4 sm:$0xff]   ;;  %v4761_v24 = vld [vmem:[%s5742_s4 + $0x1ec] ss:$16 sps:$4 sm:$0xff]  }
 0x3b0   :  { %6383 = vst [vmem:[#allocation16_spill] sm:$0xff] %v4755_v27  ;;  %6384 = vst [vmem:[#allocation17_spill] sm:$0xff] %v4761_v24 }
 0x3b2   :  { %1657 = vmatpush1.bf16.msra.mxu0 %v4743_v25  ;;  %1698 = vmatpush1.bf16.msra.mxu1 %v4749_v26  ;;  %v4767_v25 = vld [vmem:[%s5742_s4 + $0x1e0] ss:$16 sps:$4 sm:$0xff]   ;;  %v4773_v26 = vld [vmem:[%s5742_s4 + $0x1e8] ss:$16 sps:$4 sm:$0xff]  }
 0x3b3   :  { %1658 = vmatprep.subr.bf16.mxu0 %v4755_v27  ;;  %1699 = vmatprep.subr.bf16.mxu1 %v4761_v24  ;;  %6385 = vst [vmem:[#allocation18_spill] sm:$0xff] %v4767_v25  ;;  %6386 = vst [vmem:[#allocation19_spill] sm:$0xff] %v4773_v26 }
 0x3b6   :  { %1659 = vmatpush1.bf16.msra.mxu0 %v4767_v25  ;;  %1700 = vmatpush1.bf16.msra.mxu1 %v4773_v26 }
 0x3b7   :  { %1732 = vmatprep.subr.bf16.mxu0 %v6306_v28  ;;  %1773 = vmatprep.subr.bf16.mxu1 %v6307_v30 }
 0x42c   :  { %v1452_v27 = vpop.f32.mrb[36].mxu0  ;;  %v1493_v24 = vpop.f32.mrb[36].mxu1 }
 0x42d   :  { %v1453_v23 = vadd.f32 %v1452_v27, %v6308_v33  ;;  %v1454_v22 = vpop.f32.mrb[37].mxu0  ;;  %v1495_v19 = vpop.f32.mrb[37].mxu1  ;;  %v1494_v26 = vadd.f32 %v1493_v24, %v6310_v46  ;;  %v6388_v24 = vld [vmem:[#allocation67_spill] sm:$0xff] }
 0x42e   :  { %v1455_v17 = vadd.f32 %v1454_v22, %v6309_v37  ;;  %v1456_v25 = vpop.f32.mrb[38].mxu0  ;;  %v1497_v16 = vpop.f32.mrb[38].mxu1  ;;  %v1496_v28 = vadd.f32 %v1495_v19, %v6311_v48  ;;  %v6390_v48 = vld [vmem:[#allocation69_spill] sm:$0xff] }
 0x42f   :  { %v1500_v15 = vmul.f32 0.5, %v1453_v23  ;;  %v1457_v14 = vpop.f32.mrb[39].mxu0  ;;  %v1498_v13 = vpop.f32.mrb[39].mxu1 }
 0x430   :  { %v1504_v12 = vmul.f32 0.5, %v1455_v17  ;;  %v1509_v30 = vmul.f32 0.5, %v1496_v28  ;;  %v6389_v28 = vld [vmem:[#allocation68_spill] sm:$0xff] }
 0x431   :  { %2891 = vtanh.f32 %v1500_v15 }
 0x432   :  { %2893 = vtanh.f32 %v1504_v12 }
 0x433   :  { %2895 = vtanh.f32 %v1494_v26 }
 0x434   :  { %2897 = vtanh.f32 %v1509_v30 }
 0x43b   :  { %v2892_v53 = vpop.eup %2891 }
 0x43c   :  { %v2894_v27 = vpop.eup %2893  ;;  %v1502_v33 = vadd.f32 1.0, %v2892_v53 }
 0x43d   :  { %v1506_v20 = vadd.f32 1.0, %v2894_v27  ;;  %v2896_v25 = vpop.eup %2895 }
 0x43e   :  { %v1503_v22 = vmul.f32 0.5, %v1502_v33  ;;  %v2898_v12 = vpop.eup %2897 }
 0x43f   :  { %v1507_v16 = vmul.f32 0.5, %v1506_v20  ;;  %v1511_v15 = vadd.f32 1.0, %v2898_v12 }
 0x440   :  { %v1514_v23 = vmul.f32 %v2896_v25, %v1503_v22  ;;  %v6391_v22 = vld [vmem:[#allocation70_spill] sm:$0xff] }
 0x441   :  { %v1513_v13 = vmul.f32 %v1507_v16, %v4389_v18  ;;  %v1512_v33 = vmul.f32 0.5, %v1511_v15 }
 0x443   :  { %v4783_v14 = vadd.f32 %v1514_v23, %v1513_v13 }
 0x445   :  { %6387 = vst [vmem:[#allocation20_spill] sm:$0xff] %v4783_v14  ;;  %2899 = vtanh.f32 %v4783_v14 }
 0x44c   :  { %v1556_v17 = vpop.f32.mrb[40].mxu0  ;;  %v1597_v19 = vpop.f32.mrb[40].mxu1 }
 0x44d   :  { %v1604_v26 = vadd.f32 %v1556_v17, %v6388_v24  ;;  %v1606_v53 = vadd.f32 %v1597_v19, %v6389_v28  ;;  %v1558_v27 = vpop.f32.mrb[41].mxu0  ;;  %v1599_v30 = vpop.f32.mrb[41].mxu1 }
 0x44e   :  { %v1605_v20 = vadd.f32 %v1558_v27, %v6390_v48  ;;  %v1607_v25 = vadd.f32 %v1599_v30, %v6391_v22  ;;  %v1560_v18 = vpop.f32.mrb[42].mxu0  ;;  %v1601_v16 = vpop.f32.mrb[42].mxu1 }
 0x44f   :  { %v2900_v23 = vpop.eup %2899  ;;  %v1608_v13 = vmul.f32 0.5, %v1604_v26  ;;  %v1561_v14 = vpop.f32.mrb[43].mxu0  ;;  %v6431_v16 = vld [vmem:[#allocation9_spill] sm:$0xff] }
 0x450   :  { %v1602_v46 = vpop.f32.mrb[43].mxu1  ;;  %v1612_v12 = vmul.f32 0.5, %v1605_v20  ;;  %v1517_v37 = vmul.f32 %v2900_v23, %v1512_v33  ;;  %v1617_v19 = vmul.f32 0.5, %v1607_v25  ;;  %v6432_v23 = vld [vmem:[#allocation63_spill] sm:$0xff] }
 0x451   :  { %2901 = vtanh.f32 %v1608_v13  ;;  %v6433_v13 = vld [vmem:[#allocation64_spill] sm:$0xff] }
 0x452   :  { %2903 = vtanh.f32 %v1612_v12  ;;  %v1627_v17 = vpack.c.bf16 %v1517_v37, %v1517_v37  ;;  %v6434_v12 = vld [vmem:[#allocation65_spill] sm:$0xff] }
 0x453   :  { %2905 = vtanh.f32 %v1606_v53 }
 0x454   :  { %1660 = vmatprep.mubr.bf16.mxu0 %v1627_v17  ;;  %1701 = vmatprep.mubr.bf16.mxu1 %v1627_v17  ;;  %2907 = vtanh.f32 %v1617_v19  ;;  %v6435_v17 = vld [vmem:[#allocation66_spill] sm:$0xff] }
 0x455   :  { %v6436_v19 = vld [vmem:[#allocation10_spill] sm:$0xff] }
 0x45b   :  { %v2902_v15 = vpop.eup %2901 }
 0x45c   :  { %v2904_v24 = vpop.eup %2903  ;;  %v1610_v48 = vadd.f32 1.0, %v2902_v15  ;;  %v6437_v15 = vld [vmem:[#allocation11_spill] sm:$0xff] }
 0x45d   :  { %v1614_v28 = vadd.f32 1.0, %v2904_v24  ;;  %v2906_v30 = vpop.eup %2905  ;;  %v6438_v24 = vld [vmem:[#allocation12_spill] sm:$0xff] }
 0x45e   :  { %v1611_v27 = vmul.f32 0.5, %v1610_v48  ;;  %v2908_v37 = vpop.eup %2907  ;;  %v6439_v48 = vld [vmem:[#allocation13_spill] sm:$0xff] }
 0x45f   :  { %v1615_v22 = vmul.f32 0.5, %v1614_v28  ;;  %v1619_v33 = vadd.f32 1.0, %v2908_v37  ;;  %v6440_v28 = vld [vmem:[#allocation14_spill] sm:$0xff]  ;;  %v4893_v37 = vld [vmem:[%s5741_s2 + $0x4] ss:$16 sps:$4 sm:$0xff]  }
 0x460   :  { %v1622_v26 = vmul.f32 %v2906_v30, %v1611_v27  ;;  %v6441_v27 = vld [vmem:[#allocation15_spill] sm:$0xff]  ;;  %v6442_v30 = vld [vmem:[#allocation16_spill] sm:$0xff]  ;;  %6446 = vst [vmem:[#allocation21_spill] sm:$0xff] %v4893_v37 }
 0x461   :  { %v1621_v46 = vmul.f32 %v1615_v22, %v4397_v21  ;;  %v1620_v20 = vmul.f32 0.5, %v1619_v33  ;;  %v6414_v21 = vld [vmem:[#allocation43_spill] sm:$0xff]  ;;  %v6443_v22 = vld [vmem:[#allocation17_spill] sm:$0xff]  ;;  %v4899_v33 = vld [vmem:[%s5741_s2 + $0xc] ss:$16 sps:$4 sm:$0xff]  }
 0x462   :  { %6447 = vst [vmem:[#allocation22_spill] sm:$0xff] %v4899_v33 }
 0x463   :  { %v4791_v14 = vadd.f32 %v1622_v26, %v1621_v46  ;;  %v6444_v26 = vld [vmem:[#allocation18_spill] sm:$0xff]  ;;  %v6445_v46 = vld [vmem:[#allocation19_spill] sm:$0xff] }
 0x465   :  { %2909 = vtanh.f32 %v4791_v14 }
 0x46f   :  { %v2910_v53 = vpop.eup %2909 }
 0x470   :  { %v1625_v25 = vmul.f32 %v2910_v53, %v1620_v20 }
 0x472   :  { %v1626_v18 = vpack.c.bf16 %v1625_v25, %v1625_v25  ;;  %v6448_v25 = vld [vmem:[#allocation5_spill] sm:$0xff] }
 0x474   :  { %1661 = vmatmul.mubr.bf16.vlgmr.msra.gmra.mrb[44].mxu0 %v1626_v18  ;;  %1702 = vmatmul.mubr.bf16.vlgmr.msra.gmra.mrb[44].mxu1 %v1626_v18 }
 0x475   :  { %1733 = vmatpush1.bf16.msra.mxu0 %v4097_v3  ;;  %1774 = vmatpush1.bf16.msra.mxu1 %v4103_v59  ;;  %v6392_v3 = vld [vmem:[#allocation26_spill] sm:$0xff]  ;;  %v6393_v59 = vld [vmem:[#allocation27_spill] sm:$0xff] }
 0x476   :  { %1734 = vmatprep.subr.bf16.mxu0 %v4109_v8  ;;  %1775 = vmatprep.subr.bf16.mxu1 %v4115_v58  ;;  %v6394_v8 = vld [vmem:[#allocation28_spill] sm:$0xff]  ;;  %v6395_v58 = vld [vmem:[#allocation29_spill] sm:$0xff] }
 0x477   :  { %1764 = vmatprep.mubr.bf16.mxu0 %v6202_v61  ;;  %1805 = vmatprep.mubr.bf16.mxu1 %v6202_v61 }
 0x479   :  { %1735 = vmatpush1.bf16.msra.mxu0 %v4123_v29  ;;  %1776 = vmatpush1.bf16.msra.mxu1 %v4129_v56  ;;  %v6396_v29 = vld [vmem:[#allocation30_spill] sm:$0xff]  ;;  %v6397_v56 = vld [vmem:[#allocation31_spill] sm:$0xff] }
 0x47a   :  { %1736 = vmatprep.subr.bf16.mxu0 %v4135_v6  ;;  %1777 = vmatprep.subr.bf16.mxu1 %v4141_v2  ;;  %v6398_v6 = vld [vmem:[#allocation32_spill] sm:$0xff]  ;;  %v6399_v2 = vld [vmem:[#allocation33_spill] sm:$0xff] }
 0x47d   :  { %1737 = vmatpush1.bf16.msra.mxu0 %v4147_v38  ;;  %1778 = vmatpush1.bf16.msra.mxu1 %v4153_v57  ;;  %v6400_v38 = vld [vmem:[#allocation34_spill] sm:$0xff]  ;;  %v6401_v57 = vld [vmem:[#allocation35_spill] sm:$0xff] }
 0x47e   :  { %1738 = vmatprep.subr.bf16.mxu0 %v4159_v62  ;;  %1779 = vmatprep.subr.bf16.mxu1 %v4165_v55  ;;  %v6402_v62 = vld [vmem:[#allocation36_spill] sm:$0xff]  ;;  %v6403_v55 = vld [vmem:[#allocation37_spill] sm:$0xff] }
 0x481   :  { %1739 = vmatpush1.bf16.msra.mxu0 %v4171_v4  ;;  %1780 = vmatpush1.bf16.msra.mxu1 %v4177_v1  ;;  %v6404_v4 = vld [vmem:[#allocation38_spill] sm:$0xff]  ;;  %v6405_v1 = vld [vmem:[#allocation39_spill] sm:$0xff] }
 0x482   :  { %1740 = vmatprep.subr.bf16.mxu0 %v4183_v7  ;;  %1781 = vmatprep.subr.bf16.mxu1 %v4189_v9  ;;  %v6406_v7 = vld [vmem:[#allocation40_spill] sm:$0xff]  ;;  %v6407_v9 = vld [vmem:[#allocation41_spill] sm:$0xff] }
 0x485   :  { %1741 = vmatpush1.bf16.msra.mxu0 %v4195_v63  ;;  %1782 = vmatpush1.bf16.msra.mxu1 %v6317_v11  ;;  %v6408_v63 = vld [vmem:[#allocation58_spill] sm:$0xff]  ;;  %v6415_v11 = vld [vmem:[#allocation44_spill] sm:$0xff] }
 0x486   :  { %1742 = vmatprep.subr.bf16.mxu0 %v6318_v31  ;;  %1783 = vmatprep.subr.bf16.mxu1 %v6319_v32  ;;  %v6416_v31 = vld [vmem:[#allocation45_spill] sm:$0xff]  ;;  %v6417_v32 = vld [vmem:[#allocation46_spill] sm:$0xff] }
 0x489   :  { %1743 = vmatpush1.bf16.msra.mxu0 %v6320_v34  ;;  %1784 = vmatpush1.bf16.msra.mxu1 %v6321_v35  ;;  %v6418_v34 = vld [vmem:[#allocation47_spill] sm:$0xff]  ;;  %v6419_v35 = vld [vmem:[#allocation48_spill] sm:$0xff] }
 0x48a   :  { %1744 = vmatprep.subr.bf16.mxu0 %v6322_v36  ;;  %1785 = vmatprep.subr.bf16.mxu1 %v6323_v39  ;;  %v6420_v36 = vld [vmem:[#allocation49_spill] sm:$0xff]  ;;  %v6421_v39 = vld [vmem:[#allocation50_spill] sm:$0xff] }
 0x48d   :  { %1745 = vmatpush1.bf16.msra.mxu0 %v6324_v40  ;;  %1786 = vmatpush1.bf16.msra.mxu1 %v6325_v41  ;;  %v6422_v40 = vld [vmem:[#allocation51_spill] sm:$0xff]  ;;  %v6423_v41 = vld [vmem:[#allocation52_spill] sm:$0xff] }
 0x48e   :  { %1746 = vmatprep.subr.bf16.mxu0 %v6326_v42  ;;  %1787 = vmatprep.subr.bf16.mxu1 %v6327_v43  ;;  %v6424_v42 = vld [vmem:[#allocation53_spill] sm:$0xff]  ;;  %v6425_v43 = vld [vmem:[#allocation54_spill] sm:$0xff] }
 0x491   :  { %1747 = vmatpush1.bf16.msra.mxu0 %v4267_v5  ;;  %1788 = vmatpush1.bf16.msra.mxu1 %v6328_v44  ;;  %v6412_v5 = vld [vmem:[#allocation62_spill] sm:$0xff]  ;;  %v6426_v44 = vld [vmem:[#allocation55_spill] sm:$0xff] }
 0x492   :  { %1838 = vmatprep.subr.bf16.mxu0 %v6329_v45  ;;  %1879 = vmatprep.subr.bf16.mxu1 %v6330_v47  ;;  %v6427_v45 = vld [vmem:[#allocation56_spill] sm:$0xff]  ;;  %v6428_v47 = vld [vmem:[#allocation57_spill] sm:$0xff] }
 0x494   :  { %1765 = vmatmul.mubr.bf16.vlgmr.msra.gmra.mrb[48].mxu0 %v1626_v18  ;;  %1806 = vmatmul.mubr.bf16.vlgmr.msra.gmra.mrb[48].mxu1 %v1626_v18 }
 0x495   :  { %1839 = vmatpush1.bf16.msra.mxu0 %v6331_v49  ;;  %1880 = vmatpush1.bf16.msra.mxu1 %v6332_v50  ;;  %v6429_v49 = vld [vmem:[#allocation3_spill] sm:$0xff]  ;;  %v6430_v50 = vld [vmem:[#allocation4_spill] sm:$0xff] }
 0x496   :  { %1840 = vmatprep.subr.bf16.mxu0 %v4305_v54  ;;  %1881 = vmatprep.subr.bf16.mxu1 %v4311_v0  ;;  %v6411_v54 = vld [vmem:[#allocation61_spill] sm:$0xff]  ;;  %v6413_v0 = vld [vmem:[#allocation42_spill] sm:$0xff] }
 0x499   :  { %1841 = vmatpush1.bf16.msra.mxu0 %v4317_v10  ;;  %1882 = vmatpush1.bf16.msra.mxu1 %v4323_v60  ;;  %v6409_v10 = vld [vmem:[#allocation59_spill] sm:$0xff]  ;;  %v6410_v60 = vld [vmem:[#allocation60_spill] sm:$0xff] }
 0x49a   :  { %1842 = vmatprep.subr.bf16.mxu0 %v4443_v51  ;;  %1883 = vmatprep.subr.bf16.mxu1 %v4449_v52 }
 0x49d   :  { %1843 = vmatpush1.bf16.msra.mxu0 %v6392_v3  ;;  %1884 = vmatpush1.bf16.msra.mxu1 %v6393_v59 }
 0x49e   :  { %1844 = vmatprep.subr.bf16.mxu0 %v6394_v8  ;;  %1885 = vmatprep.subr.bf16.mxu1 %v6395_v58 }
 0x4a1   :  { %1845 = vmatpush1.bf16.msra.mxu0 %v6396_v29  ;;  %1886 = vmatpush1.bf16.msra.mxu1 %v6397_v56 }
 0x4a2   :  { %1846 = vmatprep.subr.bf16.mxu0 %v6398_v6  ;;  %1887 = vmatprep.subr.bf16.mxu1 %v6399_v2 }
 0x4a5   :  { %1847 = vmatpush1.bf16.msra.mxu0 %v6400_v38  ;;  %1888 = vmatpush1.bf16.msra.mxu1 %v6401_v57 }
 0x4a6   :  { %1848 = vmatprep.subr.bf16.mxu0 %v6402_v62  ;;  %1889 = vmatprep.subr.bf16.mxu1 %v6403_v55 }
 0x4a9   :  { %1849 = vmatpush1.bf16.msra.mxu0 %v6404_v4  ;;  %1890 = vmatpush1.bf16.msra.mxu1 %v6405_v1 }
 0x4aa   :  { %1850 = vmatprep.subr.bf16.mxu0 %v6406_v7  ;;  %1891 = vmatprep.subr.bf16.mxu1 %v6407_v9 }
 0x4ad   :  { %1851 = vmatpush1.bf16.msra.mxu0 %v6408_v63  ;;  %1892 = vmatpush1.bf16.msra.mxu1 %v6409_v10 }
 0x4ae   :  { %1852 = vmatprep.subr.bf16.mxu0 %v6410_v60  ;;  %1893 = vmatprep.subr.bf16.mxu1 %v6411_v54 }
 0x4b1   :  { %1853 = vmatpush1.bf16.msra.mxu0 %v6412_v5  ;;  %1894 = vmatpush1.bf16.msra.mxu1 %v6413_v0 }
 0x4b2   :  { %1854 = vmatprep.subr.bf16.mxu0 %v6414_v21  ;;  %1895 = vmatprep.subr.bf16.mxu1 %v6415_v11 }
 0x4b5   :  { %1855 = vmatpush1.bf16.msra.mxu0 %v6416_v31  ;;  %1896 = vmatpush1.bf16.msra.mxu1 %v6417_v32 }
 0x4b6   :  { %1856 = vmatprep.subr.bf16.mxu0 %v6418_v34  ;;  %1897 = vmatprep.subr.bf16.mxu1 %v6419_v35 }
 0x4b9   :  { %1857 = vmatpush1.bf16.msra.mxu0 %v6420_v36  ;;  %1898 = vmatpush1.bf16.msra.mxu1 %v6421_v39 }
 0x4ba   :  { %1858 = vmatprep.subr.bf16.mxu0 %v6422_v40  ;;  %1899 = vmatprep.subr.bf16.mxu1 %v6423_v41 }
 0x4bd   :  { %1859 = vmatpush1.bf16.msra.mxu0 %v6424_v42  ;;  %1900 = vmatpush1.bf16.msra.mxu1 %v6425_v43 }
 0x4be   :  { %1860 = vmatprep.subr.bf16.mxu0 %v6426_v44  ;;  %1901 = vmatprep.subr.bf16.mxu1 %v6427_v45 }
 0x4c1   :  { %1861 = vmatpush1.bf16.msra.mxu0 %v6428_v47  ;;  %1902 = vmatpush1.bf16.msra.mxu1 %v6429_v49 }
 0x4c2   :  { %1862 = vmatprep.subr.bf16.mxu0 %v6430_v50  ;;  %1903 = vmatprep.subr.bf16.mxu1 %v6431_v16 }
 0x4c5   :  { %1863 = vmatpush1.bf16.msra.mxu0 %v6432_v23  ;;  %1904 = vmatpush1.bf16.msra.mxu1 %v6433_v13 }
 0x4c6   :  { %1864 = vmatprep.subr.bf16.mxu0 %v6434_v12  ;;  %1905 = vmatprep.subr.bf16.mxu1 %v6435_v17 }
 0x4c9   :  { %1865 = vmatpush1.bf16.msra.mxu0 %v6436_v19  ;;  %1906 = vmatpush1.bf16.msra.mxu1 %v6437_v15  ;;  %v6450_v19 = vld [vmem:[#allocation7_spill] sm:$0xff] }
 0x4ca   :  { %1866 = vmatprep.subr.bf16.mxu0 %v6438_v24  ;;  %1907 = vmatprep.subr.bf16.mxu1 %v6439_v48 }
 0x4cd   :  { %1867 = vmatpush1.bf16.msra.mxu0 %v6440_v28  ;;  %1908 = vmatpush1.bf16.msra.mxu1 %v6441_v27 }
 0x4ce   :  { %1868 = vmatprep.subr.bf16.mxu0 %v6442_v30  ;;  %1909 = vmatprep.subr.bf16.mxu1 %v6443_v22  ;;  %v6449_v22 = vld [vmem:[#allocation6_spill] sm:$0xff] }
 0x4d1   :  { %1869 = vmatpush1.bf16.msra.mxu0 %v6444_v26  ;;  %1910 = vmatpush1.bf16.msra.mxu1 %v6445_v46 }
 0x4d2   :  { %1942 = vmatprep.subr.bf16.mxu0 %v4893_v37  ;;  %1983 = vmatprep.subr.bf16.mxu1 %v4899_v33  ;;  %v6451_v33 = vld [vmem:[#allocation8_spill] sm:$0xff] }
 0x547   :  { %v1662_v20 = vpop.f32.mrb[44].mxu0  ;;  %v1703_v53 = vpop.f32.mrb[44].mxu1 }
 0x548   :  { %v1663_v18 = vadd.f32 %v1662_v20, %v6448_v25  ;;  %v1664_v26 = vpop.f32.mrb[45].mxu0  ;;  %v1705_v46 = vpop.f32.mrb[45].mxu1  ;;  %v1704_v17 = vadd.f32 %v1703_v53, %v6450_v19  ;;  %v6456_v19 = vld [vmem:[#allocation73_spill] sm:$0xff] }
 0x549   :  { %v1665_v30 = vadd.f32 %v1664_v26, %v6449_v22  ;;  %v1666_v27 = vpop.f32.mrb[46].mxu0  ;;  %v1707_v28 = vpop.f32.mrb[46].mxu1  ;;  %v1706_v12 = vadd.f32 %v1705_v46, %v6451_v33  ;;  %v6455_v33 = vld [vmem:[#allocation72_spill] sm:$0xff] }
 0x54a   :  { %v1710_v48 = vmul.f32 0.5, %v1663_v18  ;;  %v1667_v24 = vpop.f32.mrb[47].mxu0  ;;  %v1708_v37 = vpop.f32.mrb[47].mxu1 }
 0x54b   :  { %v1714_v15 = vmul.f32 0.5, %v1665_v30  ;;  %v1719_v13 = vmul.f32 0.5, %v1706_v12  ;;  %v6452_v24 = vld [vmem:[#allocation20_spill] sm:$0xff]  ;;  %v6454_v12 = vld [vmem:[#allocation71_spill] sm:$0xff] }
 0x54c   :  { %2911 = vtanh.f32 %v1710_v48 }
 0x54d   :  { %2913 = vtanh.f32 %v1714_v15 }
 0x54e   :  { %2915 = vtanh.f32 %v1704_v17 }
 0x54f   :  { %2917 = vtanh.f32 %v1719_v13 }
 0x556   :  { %v2912_v23 = vpop.eup %2911 }
 0x557   :  { %v2914_v20 = vpop.eup %2913  ;;  %v1712_v25 = vadd.f32 1.0, %v2912_v23 }
 0x558   :  { %v1716_v16 = vadd.f32 1.0, %v2914_v20  ;;  %v2916_v27 = vpop.eup %2915 }
 0x559   :  { %v1713_v26 = vmul.f32 0.5, %v1712_v25  ;;  %v2918_v15 = vpop.eup %2917 }
 0x55a   :  { %v1717_v28 = vmul.f32 0.5, %v1716_v16  ;;  %v1721_v17 = vadd.f32 1.0, %v2918_v15 }
 0x55b   :  { %v1724_v18 = vmul.f32 %v2916_v27, %v1713_v26  ;;  %v6457_v26 = vld [vmem:[#allocation74_spill] sm:$0xff] }
 0x55c   :  { %v1723_v37 = vmul.f32 %v1717_v28, %v6452_v24  ;;  %v1722_v25 = vmul.f32 0.5, %v1721_v17 }
 0x55e   :  { %v4907_v30 = vadd.f32 %v1724_v18, %v1723_v37 }
 0x560   :  { %6453 = vst [vmem:[#allocation23_spill] sm:$0xff] %v4907_v30  ;;  %2919 = vtanh.f32 %v4907_v30 }
 0x567   :  { %v1766_v48 = vpop.f32.mrb[48].mxu0  ;;  %v1807_v46 = vpop.f32.mrb[48].mxu1 }
 0x568   :  { %v1814_v53 = vadd.f32 %v1766_v48, %v6454_v12  ;;  %v1816_v23 = vadd.f32 %v1807_v46, %v6455_v33  ;;  %v1768_v20 = vpop.f32.mrb[49].mxu0  ;;  %v1809_v13 = vpop.f32.mrb[49].mxu1 }
 0x569   :  { %v1815_v16 = vadd.f32 %v1768_v20, %v6456_v19  ;;  %v1817_v27 = vadd.f32 %v1809_v13, %v6457_v26  ;;  %v1770_v28 = vpop.f32.mrb[50].mxu0  ;;  %v1811_v18 = vpop.f32.mrb[50].mxu1 }
 0x56a   :  { %v2920_v24 = vpop.eup %2919  ;;  %v1818_v37 = vmul.f32 0.5, %v1814_v53  ;;  %v1771_v30 = vpop.f32.mrb[51].mxu0  ;;  %v4925_v18 = vld [vmem:[%s5741_s2] ss:$16 sps:$4 sm:$0xff]  }
 0x56b   :  { %v1812_v22 = vpop.f32.mrb[51].mxu1  ;;  %v1822_v15 = vmul.f32 0.5, %v1815_v16  ;;  %v1727_v50 = vmul.f32 %v2920_v24, %v1722_v25  ;;  %v1827_v33 = vmul.f32 0.5, %v1817_v27  ;;  %v4937_v24 = vld [vmem:[%s5741_s2 + $0x24] ss:$16 sps:$4 sm:$0xff]  }
 0x56c   :  { %2921 = vtanh.f32 %v1818_v37  ;;  %v4943_v37 = vld [vmem:[%s5741_s2 + $0x2c] ss:$16 sps:$4 sm:$0xff]  }
 0x56d   :  { %2923 = vtanh.f32 %v1822_v15  ;;  %v1837_v48 = vpack.c.bf16 %v1727_v50, %v1727_v50  ;;  %v4951_v15 = vld [vmem:[%s5741_s2 + $0x20] ss:$16 sps:$4 sm:$0xff]  }
 0x56e   :  { %2925 = vtanh.f32 %v1816_v23 }
 0x56f   :  { %1870 = vmatprep.mubr.bf16.mxu0 %v1837_v48  ;;  %1911 = vmatprep.mubr.bf16.mxu1 %v1837_v48  ;;  %2927 = vtanh.f32 %v1827_v33  ;;  %v4957_v48 = vld [vmem:[%s5741_s2 + $0x28] ss:$16 sps:$4 sm:$0xff]   ;;  %v4963_v33 = vld [vmem:[%s5741_s2 + $0x44] ss:$16 sps:$4 sm:$0xff]  }
 0x576   :  { %v2922_v17 = vpop.eup %2921 }
 0x577   :  { %v2924_v46 = vpop.eup %2923  ;;  %v1820_v19 = vadd.f32 1.0, %v2922_v17  ;;  %v4969_v17 = vld [vmem:[%s5741_s2 + $0x4c] ss:$16 sps:$4 sm:$0xff]  }
 0x578   :  { %v1824_v12 = vadd.f32 1.0, %v2924_v46  ;;  %v2926_v13 = vpop.eup %2925  ;;  %v4975_v46 = vld [vmem:[%s5741_s2 + $0x40] ss:$16 sps:$4 sm:$0xff]  }
 0x579   :  { %v1821_v20 = vmul.f32 0.5, %v1820_v19  ;;  %v2928_v50 = vpop.eup %2927  ;;  %v4981_v19 = vld [vmem:[%s5741_s2 + $0x48] ss:$16 sps:$4 sm:$0xff]  }
 0x57a   :  { %v1825_v26 = vmul.f32 0.5, %v1824_v12  ;;  %v1829_v25 = vadd.f32 1.0, %v2928_v50  ;;  %v4987_v12 = vld [vmem:[%s5741_s2 + $0x64] ss:$16 sps:$4 sm:$0xff]   ;;  %v5023_v50 = vld [vmem:[%s5741_s2 + $0x80] ss:$16 sps:$4 sm:$0xff]  }
 0x57b   :  { %v1832_v53 = vmul.f32 %v2926_v13, %v1821_v20  ;;  %v4993_v20 = vld [vmem:[%s5741_s2 + $0x6c] ss:$16 sps:$4 sm:$0xff]   ;;  %v4999_v13 = vld [vmem:[%s5741_s2 + $0x60] ss:$16 sps:$4 sm:$0xff]  }
 0x57c   :  { %v1831_v22 = vmul.f32 %v1825_v26, %v4791_v14  ;;  %v1830_v16 = vmul.f32 0.5, %v1829_v25  ;;  %v4931_v14 = vld [vmem:[%s5741_s2 + $0x8] ss:$16 sps:$4 sm:$0xff]  }
 0x57d   :  { %v5005_v26 = vld [vmem:[%s5741_s2 + $0x68] ss:$16 sps:$4 sm:$0xff]  }
 0x57e   :  { %v4915_v30 = vadd.f32 %v1832_v53, %v1831_v22  ;;  %v5011_v53 = vld [vmem:[%s5741_s2 + $0x84] ss:$16 sps:$4 sm:$0xff]   ;;  %v5017_v22 = vld [vmem:[%s5741_s2 + $0x8c] ss:$16 sps:$4 sm:$0xff]   ;;  %v5029_v25 = vld [vmem:[%s5741_s2 + $0x88] ss:$16 sps:$4 sm:$0xff]  }
 0x57f   :  { %6458 = vst [vmem:[#allocation24_spill] sm:$0xff] %v5029_v25 }
 0x580   :  { %2929 = vtanh.f32 %v4915_v30 }
 0x58a   :  { %v2930_v23 = vpop.eup %2929 }
 0x58b   :  { %v1835_v27 = vmul.f32 %v2930_v23, %v1830_v16  ;;  %v5035_v16 = vld [vmem:[%s5741_s2 + $0xa4] ss:$16 sps:$4 sm:$0xff]   ;;  %v5041_v23 = vld [vmem:[%s5741_s2 + $0xac] ss:$16 sps:$4 sm:$0xff]  }
 0x58c   :  { %6459 = vst [vmem:[#allocation25_spill] sm:$0xff] %v5035_v16  ;;  %6460 = vst [vmem:[#allocation67_spill] sm:$0xff] %v5041_v23 }
 0x58d   :  { %v4918_v28 = vpack.c.bf16 %v1835_v27, %v1835_v27  ;;  %v5047_v27 = vld [vmem:[%s5741_s2 + $0xa0] ss:$16 sps:$4 sm:$0xff]  }
 0x58e   :  { %6461 = vst [vmem:[#allocation68_spill] sm:$0xff] %v5047_v27 }
 0x58f   :  { %1871 = vmatmul.mubr.bf16.vlgmr.msra.gmra.mrb[52].mxu0 %v4918_v28  ;;  %1912 = vmatmul.mubr.bf16.vlgmr.msra.gmra.mrb[52].mxu1 %v4918_v28 }
 0x590   :  { %1943 = vmatpush1.bf16.msra.mxu0 %v4925_v18  ;;  %1984 = vmatpush1.bf16.msra.mxu1 %v4931_v14 }
 0x591   :  { %1944 = vmatprep.subr.bf16.mxu0 %v4937_v24  ;;  %1985 = vmatprep.subr.bf16.mxu1 %v4943_v37 }
 0x592   :  { %1974 = vmatprep.mubr.bf16.mxu0 %v6202_v61  ;;  %2015 = vmatprep.mubr.bf16.mxu1 %v6202_v61 }
 0x594   :  { %1945 = vmatpush1.bf16.msra.mxu0 %v4951_v15  ;;  %1986 = vmatpush1.bf16.msra.mxu1 %v4957_v48 }
 0x595   :  { %1946 = vmatprep.subr.bf16.mxu0 %v4963_v33  ;;  %1987 = vmatprep.subr.bf16.mxu1 %v4969_v17 }
 0x598   :  { %1947 = vmatpush1.bf16.msra.mxu0 %v4975_v46  ;;  %1988 = vmatpush1.bf16.msra.mxu1 %v4981_v19 }
 0x599   :  { %1948 = vmatprep.subr.bf16.mxu0 %v4987_v12  ;;  %1989 = vmatprep.subr.bf16.mxu1 %v4993_v20 }
 0x59c   :  { %1949 = vmatpush1.bf16.msra.mxu0 %v4999_v13  ;;  %1990 = vmatpush1.bf16.msra.mxu1 %v5005_v26 }
 0x59d   :  { %1950 = vmatprep.subr.bf16.mxu0 %v5011_v53  ;;  %1991 = vmatprep.subr.bf16.mxu1 %v5017_v22 }
 0x5a0   :  { %1951 = vmatpush1.bf16.msra.mxu0 %v5023_v50  ;;  %1992 = vmatpush1.bf16.msra.mxu1 %v5029_v25  ;;  %v5053_v25 = vld [vmem:[%s5741_s2 + $0xa8] ss:$16 sps:$4 sm:$0xff]  }
 0x5a1   :  { %1952 = vmatprep.subr.bf16.mxu0 %v5035_v16  ;;  %1993 = vmatprep.subr.bf16.mxu1 %v5041_v23  ;;  %6462 = vst [vmem:[#allocation69_spill] sm:$0xff] %v5053_v25  ;;  %v5059_v16 = vld [vmem:[%s5741_s2 + $0xc4] ss:$16 sps:$4 sm:$0xff]   ;;  %v5065_v23 = vld [vmem:[%s5741_s2 + $0xcc] ss:$16 sps:$4 sm:$0xff]  }
 0x5a2   :  { %6463 = vst [vmem:[#allocation70_spill] sm:$0xff] %v5059_v16  ;;  %6464 = vst [vmem:[#allocation26_spill] sm:$0xff] %v5065_v23 }
 0x5a4   :  { %1953 = vmatpush1.bf16.msra.mxu0 %v5047_v27  ;;  %1994 = vmatpush1.bf16.msra.mxu1 %v5053_v25  ;;  %v5071_v27 = vld [vmem:[%s5741_s2 + $0xc0] ss:$16 sps:$4 sm:$0xff]   ;;  %v5077_v25 = vld [vmem:[%s5741_s2 + $0xc8] ss:$16 sps:$4 sm:$0xff]  }
 0x5a5   :  { %1954 = vmatprep.subr.bf16.mxu0 %v5059_v16  ;;  %1995 = vmatprep.subr.bf16.mxu1 %v5065_v23  ;;  %6465 = vst [vmem:[#allocation27_spill] sm:$0xff] %v5071_v27  ;;  %6466 = vst [vmem:[#allocation28_spill] sm:$0xff] %v5077_v25  ;;  %v5083_v16 = vld [vmem:[%s5741_s2 + $0xe4] ss:$16 sps:$4 sm:$0xff]   ;;  %v5089_v23 = vld [vmem:[%s5741_s2 + $0xec] ss:$16 sps:$4 sm:$0xff]  }
 0x5a6   :  { %6467 = vst [vmem:[#allocation29_spill] sm:$0xff] %v5083_v16  ;;  %6468 = vst [vmem:[#allocation30_spill] sm:$0xff] %v5089_v23 }
 0x5a8   :  { %1955 = vmatpush1.bf16.msra.mxu0 %v5071_v27  ;;  %1996 = vmatpush1.bf16.msra.mxu1 %v5077_v25  ;;  %v5095_v27 = vld [vmem:[%s5741_s2 + $0xe0] ss:$16 sps:$4 sm:$0xff]   ;;  %v5101_v25 = vld [vmem:[%s5741_s2 + $0xe8] ss:$16 sps:$4 sm:$0xff]  }
 0x5a9   :  { %1956 = vmatprep.subr.bf16.mxu0 %v5083_v16  ;;  %1997 = vmatprep.subr.bf16.mxu1 %v5089_v23  ;;  %6469 = vst [vmem:[#allocation31_spill] sm:$0xff] %v5101_v25  ;;  %v5107_v16 = vld [vmem:[%s5742_s4 + $0x4] ss:$16 sps:$4 sm:$0xff]   ;;  %v5113_v23 = vld [vmem:[%s5742_s4 + $0xc] ss:$16 sps:$4 sm:$0xff]  }
 0x5aa   :  { %6470 = vst [vmem:[#allocation32_spill] sm:$0xff] %v5107_v16  ;;  %6471 = vst [vmem:[#allocation33_spill] sm:$0xff] %v5113_v23 }
 0x5ac   :  { %1957 = vmatpush1.bf16.msra.mxu0 %v5095_v27  ;;  %1998 = vmatpush1.bf16.msra.mxu1 %v5101_v25  ;;  %v5121_v25 = vld [vmem:[%s5742_s4] ss:$16 sps:$4 sm:$0xff]  }
 0x5ad   :  { %2048 = vmatprep.subr.bf16.mxu0 %v5107_v16  ;;  %2089 = vmatprep.subr.bf16.mxu1 %v5113_v23  ;;  %6472 = vst [vmem:[#allocation34_spill] sm:$0xff] %v5121_v25  ;;  %v5127_v16 = vld [vmem:[%s5742_s4 + $0x8] ss:$16 sps:$4 sm:$0xff]   ;;  %v5133_v23 = vld [vmem:[%s5742_s4 + $0x24] ss:$16 sps:$4 sm:$0xff]  }
 0x5ae   :  { %6473 = vst [vmem:[#allocation35_spill] sm:$0xff] %v5127_v16 }
 0x5af   :  { %1975 = vmatmul.mubr.bf16.vlgmr.msra.gmra.mrb[56].mxu0 %v4918_v28  ;;  %2016 = vmatmul.mubr.bf16.vlgmr.msra.gmra.mrb[56].mxu1 %v4918_v28  ;;  %v5139_v28 = vld [vmem:[%s5742_s4 + $0x2c] ss:$16 sps:$4 sm:$0xff]  }
 0x5b0   :  { %2049 = vmatpush1.bf16.msra.mxu0 %v5121_v25  ;;  %2090 = vmatpush1.bf16.msra.mxu1 %v5127_v16  ;;  %v5145_v25 = vld [vmem:[%s5742_s4 + $0x20] ss:$16 sps:$4 sm:$0xff]   ;;  %v5151_v16 = vld [vmem:[%s5742_s4 + $0x28] ss:$16 sps:$4 sm:$0xff]  }
 0x5b1   :  { %2050 = vmatprep.subr.bf16.mxu0 %v5133_v23  ;;  %2091 = vmatprep.subr.bf16.mxu1 %v5139_v28 }
 0x5b4   :  { %2051 = vmatpush1.bf16.msra.mxu0 %v5145_v25  ;;  %2092 = vmatpush1.bf16.msra.mxu1 %v5151_v16 }
 0x5b5   :  { %2052 = vmatprep.subr.bf16.mxu0 %v4443_v51  ;;  %2093 = vmatprep.subr.bf16.mxu1 %v4449_v52  ;;  %v6474_v51 = vld [vmem:[#allocation4_spill] sm:$0xff]  ;;  %v6475_v52 = vld [vmem:[#allocation9_spill] sm:$0xff] }
 0x5b8   :  { %2053 = vmatpush1.bf16.msra.mxu0 %v6392_v3  ;;  %2094 = vmatpush1.bf16.msra.mxu1 %v6393_v59  ;;  %v6476_v3 = vld [vmem:[#allocation63_spill] sm:$0xff]  ;;  %v6477_v59 = vld [vmem:[#allocation64_spill] sm:$0xff] }
 0x5b9   :  { %2054 = vmatprep.subr.bf16.mxu0 %v6394_v8  ;;  %2095 = vmatprep.subr.bf16.mxu1 %v6395_v58  ;;  %v6478_v8 = vld [vmem:[#allocation65_spill] sm:$0xff]  ;;  %v6479_v58 = vld [vmem:[#allocation66_spill] sm:$0xff] }
 0x5bc   :  { %2055 = vmatpush1.bf16.msra.mxu0 %v6396_v29  ;;  %2096 = vmatpush1.bf16.msra.mxu1 %v6397_v56  ;;  %v6480_v29 = vld [vmem:[#allocation10_spill] sm:$0xff]  ;;  %v6481_v56 = vld [vmem:[#allocation11_spill] sm:$0xff] }
 0x5bd   :  { %2056 = vmatprep.subr.bf16.mxu0 %v6398_v6  ;;  %2097 = vmatprep.subr.bf16.mxu1 %v6399_v2  ;;  %v6482_v6 = vld [vmem:[#allocation12_spill] sm:$0xff]  ;;  %v6483_v2 = vld [vmem:[#allocation13_spill] sm:$0xff] }
 0x5c0   :  { %2057 = vmatpush1.bf16.msra.mxu0 %v6400_v38  ;;  %2098 = vmatpush1.bf16.msra.mxu1 %v6401_v57  ;;  %v6484_v38 = vld [vmem:[#allocation14_spill] sm:$0xff]  ;;  %v6485_v57 = vld [vmem:[#allocation15_spill] sm:$0xff] }
 0x5c1   :  { %2058 = vmatprep.subr.bf16.mxu0 %v6402_v62  ;;  %2099 = vmatprep.subr.bf16.mxu1 %v6403_v55  ;;  %v6486_v62 = vld [vmem:[#allocation16_spill] sm:$0xff]  ;;  %v6487_v55 = vld [vmem:[#allocation17_spill] sm:$0xff] }
 0x5c4   :  { %2059 = vmatpush1.bf16.msra.mxu0 %v6404_v4  ;;  %2100 = vmatpush1.bf16.msra.mxu1 %v6405_v1  ;;  %v6488_v4 = vld [vmem:[#allocation18_spill] sm:$0xff]  ;;  %v6489_v1 = vld [vmem:[#allocation19_spill] sm:$0xff] }
 0x5c5   :  { %2060 = vmatprep.subr.bf16.mxu0 %v6406_v7  ;;  %2101 = vmatprep.subr.bf16.mxu1 %v6407_v9  ;;  %v6490_v7 = vld [vmem:[#allocation21_spill] sm:$0xff]  ;;  %v6491_v9 = vld [vmem:[#allocation22_spill] sm:$0xff] }
 0x5c8   :  { %2061 = vmatpush1.bf16.msra.mxu0 %v6408_v63  ;;  %2102 = vmatpush1.bf16.msra.mxu1 %v6409_v10 }
 0x5c9   :  { %2062 = vmatprep.subr.bf16.mxu0 %v6410_v60  ;;  %2103 = vmatprep.subr.bf16.mxu1 %v6411_v54  ;;  %v6492_v60 = vld [vmem:[#allocation5_spill] sm:$0xff] }
 0x5cc   :  { %2063 = vmatpush1.bf16.msra.mxu0 %v6412_v5  ;;  %2104 = vmatpush1.bf16.msra.mxu1 %v6413_v0 }
 0x5cd   :  { %2064 = vmatprep.subr.bf16.mxu0 %v6414_v21  ;;  %2105 = vmatprep.subr.bf16.mxu1 %v6415_v11  ;;  %v6493_v21 = vld [vmem:[#allocation6_spill] sm:$0xff] }
 0x5d0   :  { %2065 = vmatpush1.bf16.msra.mxu0 %v6416_v31  ;;  %2106 = vmatpush1.bf16.msra.mxu1 %v6417_v32 }
 0x5d1   :  { %2066 = vmatprep.subr.bf16.mxu0 %v6418_v34  ;;  %2107 = vmatprep.subr.bf16.mxu1 %v6419_v35 }
 0x5d4   :  { %2067 = vmatpush1.bf16.msra.mxu0 %v6420_v36  ;;  %2108 = vmatpush1.bf16.msra.mxu1 %v6421_v39 }
 0x5d5   :  { %2068 = vmatprep.subr.bf16.mxu0 %v6422_v40  ;;  %2109 = vmatprep.subr.bf16.mxu1 %v6423_v41  ;;  %v6494_v40 = vld [vmem:[#allocation7_spill] sm:$0xff] }
 0x5d8   :  { %2069 = vmatpush1.bf16.msra.mxu0 %v6424_v42  ;;  %2110 = vmatpush1.bf16.msra.mxu1 %v6425_v43  ;;  %v6495_v42 = vld [vmem:[#allocation8_spill] sm:$0xff] }
 0x5d9   :  { %2070 = vmatprep.subr.bf16.mxu0 %v6426_v44  ;;  %2111 = vmatprep.subr.bf16.mxu1 %v6427_v45 }
 0x5dc   :  { %2071 = vmatpush1.bf16.msra.mxu0 %v6428_v47  ;;  %2112 = vmatpush1.bf16.msra.mxu1 %v6429_v49 }
 0x5dd   :  { %2072 = vmatprep.subr.bf16.mxu0 %v6474_v51  ;;  %2113 = vmatprep.subr.bf16.mxu1 %v6475_v52 }
 0x5e0   :  { %2073 = vmatpush1.bf16.msra.mxu0 %v6476_v3  ;;  %2114 = vmatpush1.bf16.msra.mxu1 %v6477_v59 }
 0x5e1   :  { %2074 = vmatprep.subr.bf16.mxu0 %v6478_v8  ;;  %2115 = vmatprep.subr.bf16.mxu1 %v6479_v58  ;;  %v6496_v58 = vld [vmem:[#allocation23_spill] sm:$0xff] }
 0x5e4   :  { %2075 = vmatpush1.bf16.msra.mxu0 %v6480_v29  ;;  %2116 = vmatpush1.bf16.msra.mxu1 %v6481_v56 }
 0x5e5   :  { %2076 = vmatprep.subr.bf16.mxu0 %v6482_v6  ;;  %2117 = vmatprep.subr.bf16.mxu1 %v6483_v2 }
 0x5e8   :  { %2077 = vmatpush1.bf16.msra.mxu0 %v6484_v38  ;;  %2118 = vmatpush1.bf16.msra.mxu1 %v6485_v57 }
 0x5e9   :  { %2078 = vmatprep.subr.bf16.mxu0 %v6486_v62  ;;  %2119 = vmatprep.subr.bf16.mxu1 %v6487_v55  ;;  %v6497_v62 = vld [vmem:[#allocation75_spill] sm:$0xff] }
 0x5ec   :  { %2079 = vmatpush1.bf16.msra.mxu0 %v6488_v4  ;;  %2120 = vmatpush1.bf16.msra.mxu1 %v6489_v1  ;;  %v6498_v4 = vld [vmem:[#allocation76_spill] sm:$0xff] }
 0x5ed   :  { %2152 = vmatprep.subr.bf16.mxu0 %v6490_v7  ;;  %2193 = vmatprep.subr.bf16.mxu1 %v6491_v9 }
 0x662   :  { %v1872_v63 = vpop.f32.mrb[52].mxu0  ;;  %v1913_v10 = vpop.f32.mrb[52].mxu1 }
 0x663   :  { %v1873_v54 = vadd.f32 %v1872_v63, %v6492_v60  ;;  %v1874_v5 = vpop.f32.mrb[53].mxu0  ;;  %v1915_v0 = vpop.f32.mrb[53].mxu1  ;;  %v1914_v41 = vadd.f32 %v1913_v10, %v6494_v40 }
 0x664   :  { %v1875_v11 = vadd.f32 %v1874_v5, %v6493_v21  ;;  %v1876_v31 = vpop.f32.mrb[54].mxu0  ;;  %v1917_v32 = vpop.f32.mrb[54].mxu1  ;;  %v1916_v43 = vadd.f32 %v1915_v0, %v6495_v42  ;;  %v6499_v5 = vld [vmem:[#allocation77_spill] sm:$0xff] }
 0x665   :  { %v1920_v34 = vmul.f32 0.5, %v1873_v54  ;;  %v1877_v35 = vpop.f32.mrb[55].mxu0  ;;  %v1918_v36 = vpop.f32.mrb[55].mxu1 }
 0x666   :  { %v1924_v39 = vmul.f32 0.5, %v1875_v11  ;;  %v1929_v44 = vmul.f32 0.5, %v1916_v43  ;;  %v6500_v11 = vld [vmem:[#allocation78_spill] sm:$0xff] }
 0x667   :  { %2931 = vtanh.f32 %v1920_v34 }
 0x668   :  { %2933 = vtanh.f32 %v1924_v39 }
 0x669   :  { %2935 = vtanh.f32 %v1914_v41 }
 0x66a   :  { %2937 = vtanh.f32 %v1929_v44 }
 0x671   :  { %v2932_v45 = vpop.eup %2931 }
 0x672   :  { %v2934_v47 = vpop.eup %2933  ;;  %v1922_v49 = vadd.f32 1.0, %v2932_v45 }
 0x673   :  { %v1926_v51 = vadd.f32 1.0, %v2934_v47  ;;  %v2936_v3 = vpop.eup %2935 }
 0x674   :  { %v1923_v52 = vmul.f32 0.5, %v1922_v49  ;;  %v2938_v6 = vpop.eup %2937 }
 0x675   :  { %v1927_v59 = vmul.f32 0.5, %v1926_v51  ;;  %v1931_v2 = vadd.f32 1.0, %v2938_v6 }
 0x676   :  { %v1934_v8 = vmul.f32 %v2936_v3, %v1923_v52 }
 0x677   :  { %v1933_v29 = vmul.f32 %v1927_v59, %v6496_v58  ;;  %v1932_v54 = vmul.f32 0.5, %v1931_v2 }
 0x679   :  { %v5217_v56 = vadd.f32 %v1934_v8, %v1933_v29 }
 0x67b   :  { %2939 = vtanh.f32 %v5217_v56 }
 0x682   :  { %v1976_v38 = vpop.f32.mrb[56].mxu0  ;;  %v2017_v57 = vpop.f32.mrb[56].mxu1 }
 0x683   :  { %v2024_v55 = vadd.f32 %v1976_v38, %v6497_v62  ;;  %v2026_v1 = vadd.f32 %v2017_v57, %v6498_v4  ;;  %v1978_v63 = vpop.f32.mrb[57].mxu0  ;;  %v2019_v10 = vpop.f32.mrb[57].mxu1 }
 0x684   :  { %v2025_v0 = vadd.f32 %v1978_v63, %v6499_v5  ;;  %v2027_v31 = vadd.f32 %v2019_v10, %v6500_v11  ;;  %v1980_v32 = vpop.f32.mrb[58].mxu0  ;;  %v2021_v34 = vpop.f32.mrb[58].mxu1  ;;  %v6502_v63 = vld [vmem:[#allocation25_spill] sm:$0xff]  ;;  %v6503_v10 = vld [vmem:[#allocation67_spill] sm:$0xff]  ;;  %v6507_v11 = vld [vmem:[#allocation26_spill] sm:$0xff] }
 0x685   :  { %v2940_v35 = vpop.eup %2939  ;;  %v2028_v36 = vmul.f32 0.5, %v2024_v55  ;;  %v1981_v39 = vpop.f32.mrb[59].mxu0  ;;  %v6505_v5 = vld [vmem:[#allocation69_spill] sm:$0xff]  ;;  %v6509_v32 = vld [vmem:[#allocation28_spill] sm:$0xff] }
 0x686   :  { %v2022_v41 = vpop.f32.mrb[59].mxu1  ;;  %v2032_v43 = vmul.f32 0.5, %v2025_v0  ;;  %v1937_v44 = vmul.f32 %v2940_v35, %v1932_v54  ;;  %v2037_v47 = vmul.f32 0.5, %v2027_v31  ;;  %v6504_v54 = vld [vmem:[#allocation68_spill] sm:$0xff]  ;;  %v6506_v0 = vld [vmem:[#allocation70_spill] sm:$0xff]  ;;  %v6508_v31 = vld [vmem:[#allocation27_spill] sm:$0xff] }
 0x687   :  { %2941 = vtanh.f32 %v2028_v36  ;;  %v6510_v34 = vld [vmem:[#allocation29_spill] sm:$0xff]  ;;  %v6511_v35 = vld [vmem:[#allocation30_spill] sm:$0xff]  ;;  %v6512_v36 = vld [vmem:[#allocation31_spill] sm:$0xff] }
 0x688   :  { %2943 = vtanh.f32 %v2032_v43  ;;  %v2047_v45 = vpack.c.bf16 %v1937_v44, %v1937_v44  ;;  %v6513_v39 = vld [vmem:[#allocation32_spill] sm:$0xff]  ;;  %v6514_v41 = vld [vmem:[#allocation33_spill] sm:$0xff]  ;;  %v6515_v43 = vld [vmem:[#allocation34_spill] sm:$0xff] }
 0x689   :  { %2945 = vtanh.f32 %v2026_v1  ;;  %v6516_v44 = vld [vmem:[#allocation35_spill] sm:$0xff] }
 0x68a   :  { %2080 = vmatprep.mubr.bf16.mxu0 %v2047_v45  ;;  %2121 = vmatprep.mubr.bf16.mxu1 %v2047_v45  ;;  %2947 = vtanh.f32 %v2037_v47  ;;  %v5271_v45 = vld [vmem:[%s5742_s4 + $0x44] ss:$16 sps:$4 sm:$0xff]   ;;  %v5277_v47 = vld [vmem:[%s5742_s4 + $0x4c] ss:$16 sps:$4 sm:$0xff]  }
 0x691   :  { %v2942_v49 = vpop.eup %2941 }
 0x692   :  { %v2944_v51 = vpop.eup %2943  ;;  %v2030_v52 = vadd.f32 1.0, %v2942_v49  ;;  %v5283_v49 = vld [vmem:[%s5742_s4 + $0x40] ss:$16 sps:$4 sm:$0xff]  }
 0x693   :  { %v2034_v3 = vadd.f32 1.0, %v2944_v51  ;;  %v2946_v8 = vpop.eup %2945  ;;  %6517 = vst [vmem:[#allocation36_spill] sm:$0xff] %v5283_v49  ;;  %v5289_v51 = vld [vmem:[%s5742_s4 + $0x48] ss:$16 sps:$4 sm:$0xff]  }
 0x694   :  { %v2031_v59 = vmul.f32 0.5, %v2030_v52  ;;  %v2948_v38 = vpop.eup %2947  ;;  %6518 = vst [vmem:[#allocation37_spill] sm:$0xff] %v5289_v51  ;;  %v5295_v52 = vld [vmem:[%s5742_s4 + $0x64] ss:$16 sps:$4 sm:$0xff]  }
 0x695   :  { %v2035_v58 = vmul.f32 0.5, %v2034_v3  ;;  %v2039_v57 = vadd.f32 1.0, %v2948_v38  ;;  %6519 = vst [vmem:[#allocation38_spill] sm:$0xff] %v5295_v52  ;;  %v5301_v3 = vld [vmem:[%s5742_s4 + $0x6c] ss:$16 sps:$4 sm:$0xff]  }
 0x696   :  { %v2042_v29 = vmul.f32 %v2946_v8, %v2031_v59  ;;  %6520 = vst [vmem:[#allocation39_spill] sm:$0xff] %v5301_v3  ;;  %v5307_v59 = vld [vmem:[%s5742_s4 + $0x60] ss:$16 sps:$4 sm:$0xff]   ;;  %v5313_v8 = vld [vmem:[%s5742_s4 + $0x68] ss:$16 sps:$4 sm:$0xff]  }
 0x697   :  { %v2041_v6 = vmul.f32 %v2035_v58, %v4915_v30  ;;  %v2040_v62 = vmul.f32 0.5, %v2039_v57  ;;  %v6501_v30 = vld [vmem:[#allocation24_spill] sm:$0xff]  ;;  %6521 = vst [vmem:[#allocation40_spill] sm:$0xff] %v5307_v59  ;;  %6522 = vst [vmem:[#allocation41_spill] sm:$0xff] %v5313_v8  ;;  %v5319_v58 = vld [vmem:[%s5742_s4 + $0x84] ss:$16 sps:$4 sm:$0xff]  }
 0x698   :  { %6523 = vst [vmem:[#allocation58_spill] sm:$0xff] %v5319_v58  ;;  %v5337_v38 = vld [vmem:[%s5742_s4 + $0x88] ss:$16 sps:$4 sm:$0xff]   ;;  %v5343_v57 = vld [vmem:[%s5742_s4 + $0xa4] ss:$16 sps:$4 sm:$0xff]  }
 0x699   :  { %v5225_v2 = vadd.f32 %v2042_v29, %v2041_v6  ;;  %v5325_v29 = vld [vmem:[%s5742_s4 + $0x8c] ss:$16 sps:$4 sm:$0xff]   ;;  %v5331_v6 = vld [vmem:[%s5742_s4 + $0x80] ss:$16 sps:$4 sm:$0xff]   ;;  %6526 = vst [vmem:[#allocation61_spill] sm:$0xff] %v5337_v38  ;;  %6527 = vst [vmem:[#allocation62_spill] sm:$0xff] %v5343_v57 }
 0x69a   :  { %6524 = vst [vmem:[#allocation59_spill] sm:$0xff] %v5325_v29  ;;  %6525 = vst [vmem:[#allocation60_spill] sm:$0xff] %v5331_v6 }
 0x69b   :  { %2949 = vtanh.f32 %v5225_v2 }
 0x6a5   :  { %v2950_v55 = vpop.eup %2949 }
 0x6a6   :  { %v2045_v4 = vmul.f32 %v2950_v55, %v2040_v62  ;;  %v5349_v62 = vld [vmem:[%s5742_s4 + $0xac] ss:$16 sps:$4 sm:$0xff]   ;;  %v5355_v55 = vld [vmem:[%s5742_s4 + $0xa0] ss:$16 sps:$4 sm:$0xff]  }
 0x6a7   :  { %6528 = vst [vmem:[#allocation42_spill] sm:$0xff] %v5349_v62  ;;  %6529 = vst [vmem:[#allocation43_spill] sm:$0xff] %v5355_v55 }
 0x6a8   :  { %v2046_v1 = vpack.c.bf16 %v2045_v4, %v2045_v4  ;;  %v5361_v4 = vld [vmem:[%s5742_s4 + $0xa8] ss:$16 sps:$4 sm:$0xff]  }
 0x6a9   :  { %6530 = vst [vmem:[#allocation44_spill] sm:$0xff] %v5361_v4 }
 0x6aa   :  { %2081 = vmatmul.mubr.bf16.vlgmr.msra.gmra.mrb[60].mxu0 %v2046_v1  ;;  %2122 = vmatmul.mubr.bf16.vlgmr.msra.gmra.mrb[60].mxu1 %v2046_v1 }
 0x6ab   :  { %2153 = vmatpush1.bf16.msra.mxu0 %v4925_v18  ;;  %2194 = vmatpush1.bf16.msra.mxu1 %v4931_v14 }
 0x6ac   :  { %2154 = vmatprep.subr.bf16.mxu0 %v4937_v24  ;;  %2195 = vmatprep.subr.bf16.mxu1 %v4943_v37 }
 0x6ad   :  { %2184 = vmatprep.mubr.bf16.mxu0 %v6202_v61  ;;  %2225 = vmatprep.mubr.bf16.mxu1 %v6202_v61 }
 0x6af   :  { %2155 = vmatpush1.bf16.msra.mxu0 %v4951_v15  ;;  %2196 = vmatpush1.bf16.msra.mxu1 %v4957_v48 }
 0x6b0   :  { %2156 = vmatprep.subr.bf16.mxu0 %v4963_v33  ;;  %2197 = vmatprep.subr.bf16.mxu1 %v4969_v17 }
 0x6b3   :  { %2157 = vmatpush1.bf16.msra.mxu0 %v4975_v46  ;;  %2198 = vmatpush1.bf16.msra.mxu1 %v4981_v19 }
 0x6b4   :  { %2158 = vmatprep.subr.bf16.mxu0 %v4987_v12  ;;  %2199 = vmatprep.subr.bf16.mxu1 %v4993_v20 }
 0x6b7   :  { %2159 = vmatpush1.bf16.msra.mxu0 %v4999_v13  ;;  %2200 = vmatpush1.bf16.msra.mxu1 %v5005_v26 }
 0x6b8   :  { %2160 = vmatprep.subr.bf16.mxu0 %v5011_v53  ;;  %2201 = vmatprep.subr.bf16.mxu1 %v5017_v22 }
 0x6bb   :  { %2161 = vmatpush1.bf16.msra.mxu0 %v5023_v50  ;;  %2202 = vmatpush1.bf16.msra.mxu1 %v6501_v30 }
 0x6bc   :  { %2162 = vmatprep.subr.bf16.mxu0 %v6502_v63  ;;  %2203 = vmatprep.subr.bf16.mxu1 %v6503_v10 }
 0x6bf   :  { %2163 = vmatpush1.bf16.msra.mxu0 %v6504_v54  ;;  %2204 = vmatpush1.bf16.msra.mxu1 %v6505_v5 }
 0x6c0   :  { %2164 = vmatprep.subr.bf16.mxu0 %v6506_v0  ;;  %2205 = vmatprep.subr.bf16.mxu1 %v6507_v11 }
 0x6c3   :  { %2165 = vmatpush1.bf16.msra.mxu0 %v6508_v31  ;;  %2206 = vmatpush1.bf16.msra.mxu1 %v6509_v32 }
 0x6c4   :  { %2166 = vmatprep.subr.bf16.mxu0 %v6510_v34  ;;  %2207 = vmatprep.subr.bf16.mxu1 %v6511_v35 }
 0x6c7   :  { %2167 = vmatpush1.bf16.msra.mxu0 %v5095_v27  ;;  %2208 = vmatpush1.bf16.msra.mxu1 %v6512_v36 }
 0x6c8   :  { %2258 = vmatprep.subr.bf16.mxu0 %v6513_v39  ;;  %2299 = vmatprep.subr.bf16.mxu1 %v6514_v41 }
 0x6ca   :  { %2185 = vmatmul.mubr.bf16.vlgmr.msra.gmra.mrb[64].mxu0 %v2046_v1  ;;  %2226 = vmatmul.mubr.bf16.vlgmr.msra.gmra.mrb[64].mxu1 %v2046_v1  ;;  %v5367_v1 = vld [vmem:[%s5742_s4 + $0xc4] ss:$16 sps:$4 sm:$0xff]  }
 0x6cb   :  { %2259 = vmatpush1.bf16.msra.mxu0 %v6515_v43  ;;  %2300 = vmatpush1.bf16.msra.mxu1 %v6516_v44  ;;  %6531 = vst [vmem:[#allocation45_spill] sm:$0xff] %v5367_v1 }
 0x6cc   :  { %2260 = vmatprep.subr.bf16.mxu0 %v5133_v23  ;;  %2301 = vmatprep.subr.bf16.mxu1 %v5139_v28 }
 0x6cf   :  { %2261 = vmatpush1.bf16.msra.mxu0 %v5145_v25  ;;  %2302 = vmatpush1.bf16.msra.mxu1 %v5151_v16 }
 0x6d0   :  { %2262 = vmatprep.subr.bf16.mxu0 %v5271_v45  ;;  %2303 = vmatprep.subr.bf16.mxu1 %v5277_v47 }
 0x6d3   :  { %2263 = vmatpush1.bf16.msra.mxu0 %v5283_v49  ;;  %2304 = vmatpush1.bf16.msra.mxu1 %v5289_v51 }
 0x6d4   :  { %2264 = vmatprep.subr.bf16.mxu0 %v5295_v52  ;;  %2305 = vmatprep.subr.bf16.mxu1 %v5301_v3 }
 0x6d7   :  { %2265 = vmatpush1.bf16.msra.mxu0 %v5307_v59  ;;  %2306 = vmatpush1.bf16.msra.mxu1 %v5313_v8 }
 0x6d8   :  { %2266 = vmatprep.subr.bf16.mxu0 %v5319_v58  ;;  %2307 = vmatprep.subr.bf16.mxu1 %v5325_v29 }
 0x6db   :  { %2267 = vmatpush1.bf16.msra.mxu0 %v5331_v6  ;;  %2308 = vmatpush1.bf16.msra.mxu1 %v5337_v38 }
 0x6dc   :  { %2268 = vmatprep.subr.bf16.mxu0 %v5343_v57  ;;  %2309 = vmatprep.subr.bf16.mxu1 %v5349_v62  ;;  %v5373_v62 = vld [vmem:[%s5742_s4 + $0xcc] ss:$16 sps:$4 sm:$0xff]  }
 0x6dd   :  { %6532 = vst [vmem:[#allocation46_spill] sm:$0xff] %v5373_v62 }
 0x6df   :  { %2269 = vmatpush1.bf16.msra.mxu0 %v5355_v55  ;;  %2310 = vmatpush1.bf16.msra.mxu1 %v5361_v4  ;;  %v5379_v55 = vld [vmem:[%s5742_s4 + $0xc0] ss:$16 sps:$4 sm:$0xff]   ;;  %v5385_v4 = vld [vmem:[%s5742_s4 + $0xc8] ss:$16 sps:$4 sm:$0xff]  }
 0x6e0   :  { %2270 = vmatprep.subr.bf16.mxu0 %v5367_v1  ;;  %2311 = vmatprep.subr.bf16.mxu1 %v5373_v62  ;;  %6533 = vst [vmem:[#allocation47_spill] sm:$0xff] %v5379_v55  ;;  %6534 = vst [vmem:[#allocation48_spill] sm:$0xff] %v5385_v4  ;;  %v5391_v1 = vld [vmem:[%s5742_s4 + $0xe4] ss:$16 sps:$4 sm:$0xff]   ;;  %v5397_v62 = vld [vmem:[%s5742_s4 + $0xec] ss:$16 sps:$4 sm:$0xff]  }
 0x6e1   :  { %6535 = vst [vmem:[#allocation49_spill] sm:$0xff] %v5391_v1  ;;  %6536 = vst [vmem:[#allocation50_spill] sm:$0xff] %v5397_v62 }
 0x6e3   :  { %2271 = vmatpush1.bf16.msra.mxu0 %v5379_v55  ;;  %2312 = vmatpush1.bf16.msra.mxu1 %v5385_v4  ;;  %v5403_v55 = vld [vmem:[%s5742_s4 + $0xe0] ss:$16 sps:$4 sm:$0xff]   ;;  %v5409_v4 = vld [vmem:[%s5742_s4 + $0xe8] ss:$16 sps:$4 sm:$0xff]  }
 0x6e4   :  { %2272 = vmatprep.subr.bf16.mxu0 %v5391_v1  ;;  %2313 = vmatprep.subr.bf16.mxu1 %v5397_v62  ;;  %6537 = vst [vmem:[#allocation51_spill] sm:$0xff] %v5403_v55  ;;  %6538 = vst [vmem:[#allocation52_spill] sm:$0xff] %v5409_v4  ;;  %v5415_v1 = vld [vmem:[%s5742_s4 + $0x104] ss:$16 sps:$4 sm:$0xff]   ;;  %v5421_v62 = vld [vmem:[%s5742_s4 + $0x10c] ss:$16 sps:$4 sm:$0xff]  }
 0x6e5   :  { %6539 = vst [vmem:[#allocation53_spill] sm:$0xff] %v5415_v1  ;;  %6540 = vst [vmem:[#allocation54_spill] sm:$0xff] %v5421_v62 }
 0x6e7   :  { %2273 = vmatpush1.bf16.msra.mxu0 %v5403_v55  ;;  %2314 = vmatpush1.bf16.msra.mxu1 %v5409_v4  ;;  %v5427_v55 = vld [vmem:[%s5742_s4 + $0x100] ss:$16 sps:$4 sm:$0xff]   ;;  %v5433_v4 = vld [vmem:[%s5742_s4 + $0x108] ss:$16 sps:$4 sm:$0xff]  }
 0x6e8   :  { %2274 = vmatprep.subr.bf16.mxu0 %v5415_v1  ;;  %2315 = vmatprep.subr.bf16.mxu1 %v5421_v62  ;;  %6541 = vst [vmem:[#allocation55_spill] sm:$0xff] %v5427_v55  ;;  %6542 = vst [vmem:[#allocation56_spill] sm:$0xff] %v5433_v4  ;;  %v5439_v1 = vld [vmem:[%s5742_s4 + $0x124] ss:$16 sps:$4 sm:$0xff]   ;;  %v5445_v62 = vld [vmem:[%s5742_s4 + $0x12c] ss:$16 sps:$4 sm:$0xff]  }
 0x6e9   :  { %6543 = vst [vmem:[#allocation57_spill] sm:$0xff] %v5439_v1  ;;  %6544 = vst [vmem:[#allocation3_spill] sm:$0xff] %v5445_v62 }
 0x6eb   :  { %2275 = vmatpush1.bf16.msra.mxu0 %v5427_v55  ;;  %2316 = vmatpush1.bf16.msra.mxu1 %v5433_v4  ;;  %v5451_v55 = vld [vmem:[%s5742_s4 + $0x120] ss:$16 sps:$4 sm:$0xff]   ;;  %v5457_v4 = vld [vmem:[%s5742_s4 + $0x128] ss:$16 sps:$4 sm:$0xff]  }
 0x6ec   :  { %2276 = vmatprep.subr.bf16.mxu0 %v5439_v1  ;;  %2317 = vmatprep.subr.bf16.mxu1 %v5445_v62  ;;  %6545 = vst [vmem:[#allocation20_spill] sm:$0xff] %v5451_v55  ;;  %6546 = vst [vmem:[#allocation71_spill] sm:$0xff] %v5457_v4  ;;  %v5463_v1 = vld [vmem:[%s5742_s4 + $0x144] ss:$16 sps:$4 sm:$0xff]   ;;  %v5469_v62 = vld [vmem:[%s5742_s4 + $0x14c] ss:$16 sps:$4 sm:$0xff]  }
 0x6ed   :  { %6547 = vst [vmem:[#allocation72_spill] sm:$0xff] %v5463_v1  ;;  %6548 = vst [vmem:[#allocation73_spill] sm:$0xff] %v5469_v62 }
 0x6ef   :  { %2277 = vmatpush1.bf16.msra.mxu0 %v5451_v55  ;;  %2318 = vmatpush1.bf16.msra.mxu1 %v5457_v4  ;;  %v5475_v55 = vld [vmem:[%s5742_s4 + $0x140] ss:$16 sps:$4 sm:$0xff]   ;;  %v5481_v4 = vld [vmem:[%s5742_s4 + $0x148] ss:$16 sps:$4 sm:$0xff]  }
 0x6f0   :  { %2278 = vmatprep.subr.bf16.mxu0 %v5463_v1  ;;  %2319 = vmatprep.subr.bf16.mxu1 %v5469_v62  ;;  %6549 = vst [vmem:[#allocation74_spill] sm:$0xff] %v5475_v55  ;;  %6550 = vst [vmem:[#allocation4_spill] sm:$0xff] %v5481_v4  ;;  %v5487_v1 = vld [vmem:[%s5742_s4 + $0x164] ss:$16 sps:$4 sm:$0xff]   ;;  %v5493_v62 = vld [vmem:[%s5742_s4 + $0x16c] ss:$16 sps:$4 sm:$0xff]  }
 0x6f1   :  { %6551 = vst [vmem:[#allocation9_spill] sm:$0xff] %v5487_v1  ;;  %6552 = vst [vmem:[#allocation63_spill] sm:$0xff] %v5493_v62 }
 0x6f3   :  { %2279 = vmatpush1.bf16.msra.mxu0 %v5475_v55  ;;  %2320 = vmatpush1.bf16.msra.mxu1 %v5481_v4  ;;  %v5499_v55 = vld [vmem:[%s5742_s4 + $0x160] ss:$16 sps:$4 sm:$0xff]   ;;  %v5505_v4 = vld [vmem:[%s5742_s4 + $0x168] ss:$16 sps:$4 sm:$0xff]  }
 0x6f4   :  { %2280 = vmatprep.subr.bf16.mxu0 %v5487_v1  ;;  %2321 = vmatprep.subr.bf16.mxu1 %v5493_v62  ;;  %6553 = vst [vmem:[#allocation64_spill] sm:$0xff] %v5499_v55  ;;  %6554 = vst [vmem:[#allocation65_spill] sm:$0xff] %v5505_v4  ;;  %v5511_v1 = vld [vmem:[%s5742_s4 + $0x184] ss:$16 sps:$4 sm:$0xff]   ;;  %v5517_v62 = vld [vmem:[%s5742_s4 + $0x18c] ss:$16 sps:$4 sm:$0xff]  }
 0x6f5   :  { %6555 = vst [vmem:[#allocation66_spill] sm:$0xff] %v5511_v1  ;;  %6556 = vst [vmem:[#allocation10_spill] sm:$0xff] %v5517_v62 }
 0x6f7   :  { %2281 = vmatpush1.bf16.msra.mxu0 %v5499_v55  ;;  %2322 = vmatpush1.bf16.msra.mxu1 %v5505_v4  ;;  %v5523_v55 = vld [vmem:[%s5742_s4 + $0x180] ss:$16 sps:$4 sm:$0xff]   ;;  %v5529_v4 = vld [vmem:[%s5742_s4 + $0x188] ss:$16 sps:$4 sm:$0xff]  }
 0x6f8   :  { %2282 = vmatprep.subr.bf16.mxu0 %v5511_v1  ;;  %2323 = vmatprep.subr.bf16.mxu1 %v5517_v62  ;;  %6557 = vst [vmem:[#allocation11_spill] sm:$0xff] %v5523_v55  ;;  %6558 = vst [vmem:[#allocation12_spill] sm:$0xff] %v5529_v4  ;;  %v5535_v1 = vld [vmem:[%s5742_s4 + $0x1a4] ss:$16 sps:$4 sm:$0xff]   ;;  %v5541_v62 = vld [vmem:[%s5742_s4 + $0x1ac] ss:$16 sps:$4 sm:$0xff]  }
 0x6f9   :  { %6559 = vst [vmem:[#allocation13_spill] sm:$0xff] %v5535_v1  ;;  %6560 = vst [vmem:[#allocation14_spill] sm:$0xff] %v5541_v62 }
 0x6fb   :  { %2283 = vmatpush1.bf16.msra.mxu0 %v5523_v55  ;;  %2324 = vmatpush1.bf16.msra.mxu1 %v5529_v4  ;;  %v5547_v55 = vld [vmem:[%s5742_s4 + $0x1a0] ss:$16 sps:$4 sm:$0xff]   ;;  %v5553_v4 = vld [vmem:[%s5742_s4 + $0x1a8] ss:$16 sps:$4 sm:$0xff]  }
 0x6fc   :  { %2284 = vmatprep.subr.bf16.mxu0 %v5535_v1  ;;  %2325 = vmatprep.subr.bf16.mxu1 %v5541_v62  ;;  %6561 = vst [vmem:[#allocation15_spill] sm:$0xff] %v5547_v55  ;;  %6562 = vst [vmem:[#allocation16_spill] sm:$0xff] %v5553_v4  ;;  %v5559_v1 = vld [vmem:[%s5742_s4 + $0x1c4] ss:$16 sps:$4 sm:$0xff]   ;;  %v5565_v62 = vld [vmem:[%s5742_s4 + $0x1cc] ss:$16 sps:$4 sm:$0xff]  }
 0x6fd   :  { %6563 = vst [vmem:[#allocation17_spill] sm:$0xff] %v5559_v1  ;;  %6564 = vst [vmem:[#allocation18_spill] sm:$0xff] %v5565_v62 }
 0x6ff   :  { %2285 = vmatpush1.bf16.msra.mxu0 %v5547_v55  ;;  %2326 = vmatpush1.bf16.msra.mxu1 %v5553_v4  ;;  %v5571_v55 = vld [vmem:[%s5742_s4 + $0x1c0] ss:$16 sps:$4 sm:$0xff]   ;;  %v5577_v4 = vld [vmem:[%s5742_s4 + $0x1c8] ss:$16 sps:$4 sm:$0xff]  }
 0x700   :  { %2286 = vmatprep.subr.bf16.mxu0 %v5559_v1  ;;  %2327 = vmatprep.subr.bf16.mxu1 %v5565_v62  ;;  %6565 = vst [vmem:[#allocation19_spill] sm:$0xff] %v5571_v55  ;;  %6566 = vst [vmem:[#allocation21_spill] sm:$0xff] %v5577_v4  ;;  %v5583_v1 = vld [vmem:[%s5742_s4 + $0x1e4] ss:$16 sps:$4 sm:$0xff]   ;;  %v5589_v62 = vld [vmem:[%s5742_s4 + $0x1ec] ss:$16 sps:$4 sm:$0xff]  }
 0x701   :  { %6567 = vst [vmem:[#allocation22_spill] sm:$0xff] %v5583_v1  ;;  %6568 = vst [vmem:[#allocation23_spill] sm:$0xff] %v5589_v62 }
 0x703   :  { %2287 = vmatpush1.bf16.msra.mxu0 %v5571_v55  ;;  %2328 = vmatpush1.bf16.msra.mxu1 %v5577_v4  ;;  %v5595_v55 = vld [vmem:[%s5742_s4 + $0x1e0] ss:$16 sps:$4 sm:$0xff]   ;;  %v5601_v4 = vld [vmem:[%s5742_s4 + $0x1e8] ss:$16 sps:$4 sm:$0xff]  }
 0x704   :  { %2288 = vmatprep.subr.bf16.mxu0 %v5583_v1  ;;  %2329 = vmatprep.subr.bf16.mxu1 %v5589_v62  ;;  %6569 = vst [vmem:[#allocation75_spill] sm:$0xff] %v5595_v55  ;;  %6570 = vst [vmem:[#allocation76_spill] sm:$0xff] %v5601_v4 }
 0x707   :  { %2289 = vmatpush1.bf16.msra.mxu0 %v5595_v55  ;;  %2330 = vmatpush1.bf16.msra.mxu1 %v5601_v4 }
 0x708   :  { %2362 = vmatprep.subr.bf16.mxu0 %v6490_v7  ;;  %2403 = vmatprep.subr.bf16.mxu1 %v6491_v9 }
 0x77d   :  { %v2082_v1 = vpop.f32.mrb[60].mxu0  ;;  %v2123_v62 = vpop.f32.mrb[60].mxu1 }
 0x77e   :  { %v2083_v57 = vadd.f32 %v2082_v1, %v6492_v60  ;;  %v2084_v38 = vpop.f32.mrb[61].mxu0  ;;  %v2125_v6 = vpop.f32.mrb[61].mxu1  ;;  %v2124_v4 = vadd.f32 %v2123_v62, %v6494_v40  ;;  %v6572_v62 = vld [vmem:[#allocation79_spill] sm:$0xff] }
 0x77f   :  { %v2085_v29 = vadd.f32 %v2084_v38, %v6493_v21  ;;  %v2086_v55 = vpop.f32.mrb[62].mxu0  ;;  %v2127_v58 = vpop.f32.mrb[62].mxu1  ;;  %v2126_v7 = vadd.f32 %v2125_v6, %v6495_v42  ;;  %v6574_v42 = vld [vmem:[#allocation81_spill] sm:$0xff] }
 0x780   :  { %v2130_v8 = vmul.f32 0.5, %v2083_v57  ;;  %v2087_v59 = vpop.f32.mrb[63].mxu0  ;;  %v2128_v3 = vpop.f32.mrb[63].mxu1 }
 0x781   :  { %v2134_v52 = vmul.f32 0.5, %v2085_v29  ;;  %v2139_v9 = vmul.f32 0.5, %v2126_v7  ;;  %v6573_v7 = vld [vmem:[#allocation80_spill] sm:$0xff] }
 0x782   :  { %2951 = vtanh.f32 %v2130_v8 }
 0x783   :  { %2953 = vtanh.f32 %v2134_v52 }
 0x784   :  { %2955 = vtanh.f32 %v2124_v4 }
 0x785   :  { %2957 = vtanh.f32 %v2139_v9 }
 0x78c   :  { %v2952_v51 = vpop.eup %2951 }
 0x78d   :  { %v2954_v1 = vpop.eup %2953  ;;  %v2132_v60 = vadd.f32 1.0, %v2952_v51 }
 0x78e   :  { %v2136_v49 = vadd.f32 1.0, %v2954_v1  ;;  %v2956_v55 = vpop.eup %2955 }
 0x78f   :  { %v2133_v38 = vmul.f32 0.5, %v2132_v60  ;;  %v2958_v52 = vpop.eup %2957 }
 0x790   :  { %v2137_v58 = vmul.f32 0.5, %v2136_v49  ;;  %v2141_v8 = vadd.f32 1.0, %v2958_v52 }
 0x791   :  { %v2144_v57 = vmul.f32 %v2956_v55, %v2133_v38  ;;  %v6575_v38 = vld [vmem:[#allocation82_spill] sm:$0xff] }
 0x792   :  { %v2143_v3 = vmul.f32 %v2137_v58, %v5217_v56  ;;  %v2142_v60 = vmul.f32 0.5, %v2141_v8 }
 0x794   :  { %v5611_v59 = vadd.f32 %v2144_v57, %v2143_v3 }
 0x796   :  { %6571 = vst [vmem:[#allocation77_spill] sm:$0xff] %v5611_v59  ;;  %2959 = vtanh.f32 %v5611_v59 }
 0x79d   :  { %v2186_v29 = vpop.f32.mrb[64].mxu0  ;;  %v2227_v6 = vpop.f32.mrb[64].mxu1 }
 0x79e   :  { %v2234_v4 = vadd.f32 %v2186_v29, %v6572_v62  ;;  %v2236_v51 = vadd.f32 %v2227_v6, %v6573_v7  ;;  %v2188_v1 = vpop.f32.mrb[65].mxu0  ;;  %v2229_v9 = vpop.f32.mrb[65].mxu1 }
 0x79f   :  { %v2235_v49 = vadd.f32 %v2188_v1, %v6574_v42  ;;  %v2237_v55 = vadd.f32 %v2229_v9, %v6575_v38  ;;  %v2190_v56 = vpop.f32.mrb[66].mxu0  ;;  %v2231_v58 = vpop.f32.mrb[66].mxu1 }
 0x7a0   :  { %v2960_v57 = vpop.eup %2959  ;;  %v2238_v3 = vmul.f32 0.5, %v2234_v4  ;;  %v2191_v59 = vpop.f32.mrb[67].mxu0  ;;  %v6618_v58 = vld [vmem:[#allocation13_spill] sm:$0xff] }
 0x7a1   :  { %v2232_v40 = vpop.f32.mrb[67].mxu1  ;;  %v2242_v52 = vmul.f32 0.5, %v2235_v49  ;;  %v2147_v21 = vmul.f32 %v2960_v57, %v2142_v60  ;;  %v2247_v6 = vmul.f32 0.5, %v2237_v55  ;;  %v6619_v57 = vld [vmem:[#allocation14_spill] sm:$0xff] }
 0x7a2   :  { %2961 = vtanh.f32 %v2238_v3  ;;  %v6620_v3 = vld [vmem:[#allocation15_spill] sm:$0xff] }
 0x7a3   :  { %2963 = vtanh.f32 %v2242_v52  ;;  %v2257_v29 = vpack.c.bf16 %v2147_v21, %v2147_v21  ;;  %v6621_v52 = vld [vmem:[#allocation16_spill] sm:$0xff] }
 0x7a4   :  { %2965 = vtanh.f32 %v2236_v51 }
 0x7a5   :  { %2290 = vmatprep.mubr.bf16.mxu0 %v2257_v29  ;;  %2331 = vmatprep.mubr.bf16.mxu1 %v2257_v29  ;;  %2967 = vtanh.f32 %v2247_v6  ;;  %v6622_v29 = vld [vmem:[#allocation17_spill] sm:$0xff]  ;;  %v6623_v6 = vld [vmem:[#allocation18_spill] sm:$0xff] }
 0x7ac   :  { %v2962_v8 = vpop.eup %2961 }
 0x7ad   :  { %v2964_v62 = vpop.eup %2963  ;;  %v2240_v42 = vadd.f32 1.0, %v2962_v8  ;;  %v6624_v8 = vld [vmem:[#allocation19_spill] sm:$0xff] }
 0x7ae   :  { %v2244_v7 = vadd.f32 1.0, %v2964_v62  ;;  %v2966_v9 = vpop.eup %2965  ;;  %v6625_v62 = vld [vmem:[#allocation21_spill] sm:$0xff] }
 0x7af   :  { %v2241_v1 = vmul.f32 0.5, %v2240_v42  ;;  %v2968_v21 = vpop.eup %2967  ;;  %v6626_v42 = vld [vmem:[#allocation22_spill] sm:$0xff] }
 0x7b0   :  { %v2245_v38 = vmul.f32 0.5, %v2244_v7  ;;  %v2249_v60 = vadd.f32 1.0, %v2968_v21  ;;  %v6627_v7 = vld [vmem:[#allocation23_spill] sm:$0xff] }
 0x7b1   :  { %v2252_v4 = vmul.f32 %v2966_v9, %v2241_v1  ;;  %v6628_v1 = vld [vmem:[#allocation75_spill] sm:$0xff]  ;;  %v6629_v9 = vld [vmem:[#allocation76_spill] sm:$0xff] }
 0x7b2   :  { %v2251_v40 = vmul.f32 %v2245_v38, %v5225_v2  ;;  %v2250_v49 = vmul.f32 0.5, %v2249_v60  ;;  %v6599_v2 = vld [vmem:[#allocation54_spill] sm:$0xff] }
 0x7b4   :  { %v5619_v59 = vadd.f32 %v2252_v4, %v2251_v40  ;;  %v6630_v40 = vld [vmem:[#allocation5_spill] sm:$0xff] }
 0x7b6   :  { %2969 = vtanh.f32 %v5619_v59 }
 0x7c0   :  { %v2970_v51 = vpop.eup %2969 }
 0x7c1   :  { %v2255_v55 = vmul.f32 %v2970_v51, %v2250_v49  ;;  %v6631_v51 = vld [vmem:[#allocation6_spill] sm:$0xff] }
 0x7c3   :  { %v2256_v56 = vpack.c.bf16 %v2255_v55, %v2255_v55 }
 0x7c5   :  { %2291 = vmatmul.mubr.bf16.vlgmr.msra.gmra.mrb[68].mxu0 %v2256_v56  ;;  %2332 = vmatmul.mubr.bf16.vlgmr.msra.gmra.mrb[68].mxu1 %v2256_v56 }
 0x7c6   :  { %2363 = vmatpush1.bf16.msra.mxu0 %v4925_v18  ;;  %2404 = vmatpush1.bf16.msra.mxu1 %v4931_v14  ;;  %v6577_v18 = vld [vmem:[#allocation37_spill] sm:$0xff]  ;;  %v6578_v14 = vld [vmem:[#allocation38_spill] sm:$0xff] }
 0x7c7   :  { %2364 = vmatprep.subr.bf16.mxu0 %v4937_v24  ;;  %2405 = vmatprep.subr.bf16.mxu1 %v4943_v37  ;;  %v6579_v24 = vld [vmem:[#allocation39_spill] sm:$0xff]  ;;  %v6580_v37 = vld [vmem:[#allocation40_spill] sm:$0xff] }
 0x7c8   :  { %2394 = vmatprep.mubr.bf16.mxu0 %v6202_v61  ;;  %2435 = vmatprep.mubr.bf16.mxu1 %v6202_v61  ;;  %v6576_v61 = vld [vmem:[#allocation36_spill] sm:$0xff] }
 0x7ca   :  { %2365 = vmatpush1.bf16.msra.mxu0 %v4951_v15  ;;  %2406 = vmatpush1.bf16.msra.mxu1 %v4957_v48  ;;  %v6581_v15 = vld [vmem:[#allocation41_spill] sm:$0xff]  ;;  %v6582_v48 = vld [vmem:[#allocation58_spill] sm:$0xff] }
 0x7cb   :  { %2366 = vmatprep.subr.bf16.mxu0 %v4963_v33  ;;  %2407 = vmatprep.subr.bf16.mxu1 %v4969_v17  ;;  %v6583_v33 = vld [vmem:[#allocation59_spill] sm:$0xff]  ;;  %v6584_v17 = vld [vmem:[#allocation60_spill] sm:$0xff] }
 0x7ce   :  { %2367 = vmatpush1.bf16.msra.mxu0 %v4975_v46  ;;  %2408 = vmatpush1.bf16.msra.mxu1 %v4981_v19  ;;  %v6585_v46 = vld [vmem:[#allocation61_spill] sm:$0xff]  ;;  %v6586_v19 = vld [vmem:[#allocation62_spill] sm:$0xff] }
 0x7cf   :  { %2368 = vmatprep.subr.bf16.mxu0 %v4987_v12  ;;  %2409 = vmatprep.subr.bf16.mxu1 %v4993_v20  ;;  %v6587_v12 = vld [vmem:[#allocation42_spill] sm:$0xff]  ;;  %v6588_v20 = vld [vmem:[#allocation43_spill] sm:$0xff] }
 0x7d2   :  { %2369 = vmatpush1.bf16.msra.mxu0 %v4999_v13  ;;  %2410 = vmatpush1.bf16.msra.mxu1 %v5005_v26  ;;  %v6589_v13 = vld [vmem:[#allocation44_spill] sm:$0xff]  ;;  %v6590_v26 = vld [vmem:[#allocation45_spill] sm:$0xff] }
 0x7d3   :  { %2370 = vmatprep.subr.bf16.mxu0 %v5011_v53  ;;  %2411 = vmatprep.subr.bf16.mxu1 %v5017_v22  ;;  %v6591_v53 = vld [vmem:[#allocation46_spill] sm:$0xff]  ;;  %v6592_v22 = vld [vmem:[#allocation47_spill] sm:$0xff] }
 0x7d6   :  { %2371 = vmatpush1.bf16.msra.mxu0 %v5023_v50  ;;  %2412 = vmatpush1.bf16.msra.mxu1 %v6501_v30  ;;  %v6593_v50 = vld [vmem:[#allocation48_spill] sm:$0xff]  ;;  %v6600_v30 = vld [vmem:[#allocation55_spill] sm:$0xff] }
 0x7d7   :  { %2372 = vmatprep.subr.bf16.mxu0 %v6502_v63  ;;  %2413 = vmatprep.subr.bf16.mxu1 %v6503_v10  ;;  %v6601_v63 = vld [vmem:[#allocation56_spill] sm:$0xff]  ;;  %v6602_v10 = vld [vmem:[#allocation57_spill] sm:$0xff] }
 0x7da   :  { %2373 = vmatpush1.bf16.msra.mxu0 %v6504_v54  ;;  %2414 = vmatpush1.bf16.msra.mxu1 %v6505_v5  ;;  %v6603_v54 = vld [vmem:[#allocation3_spill] sm:$0xff]  ;;  %v6604_v5 = vld [vmem:[#allocation20_spill] sm:$0xff] }
 0x7db   :  { %2374 = vmatprep.subr.bf16.mxu0 %v6506_v0  ;;  %2415 = vmatprep.subr.bf16.mxu1 %v6507_v11  ;;  %v6605_v0 = vld [vmem:[#allocation71_spill] sm:$0xff]  ;;  %v6606_v11 = vld [vmem:[#allocation72_spill] sm:$0xff] }
 0x7de   :  { %2375 = vmatpush1.bf16.msra.mxu0 %v6508_v31  ;;  %2416 = vmatpush1.bf16.msra.mxu1 %v6509_v32  ;;  %v6607_v31 = vld [vmem:[#allocation73_spill] sm:$0xff]  ;;  %v6608_v32 = vld [vmem:[#allocation74_spill] sm:$0xff] }
 0x7df   :  { %2376 = vmatprep.subr.bf16.mxu0 %v6510_v34  ;;  %2417 = vmatprep.subr.bf16.mxu1 %v6511_v35  ;;  %v6609_v34 = vld [vmem:[#allocation4_spill] sm:$0xff]  ;;  %v6610_v35 = vld [vmem:[#allocation9_spill] sm:$0xff] }
 0x7e2   :  { %2377 = vmatpush1.bf16.msra.mxu0 %v5095_v27  ;;  %2418 = vmatpush1.bf16.msra.mxu1 %v6512_v36  ;;  %v6597_v27 = vld [vmem:[#allocation52_spill] sm:$0xff]  ;;  %v6611_v36 = vld [vmem:[#allocation63_spill] sm:$0xff] }
 0x7e3   :  { %2468 = vmatprep.subr.bf16.mxu0 %v6513_v39  ;;  %2509 = vmatprep.subr.bf16.mxu1 %v6514_v41  ;;  %v6612_v39 = vld [vmem:[#allocation64_spill] sm:$0xff]  ;;  %v6613_v41 = vld [vmem:[#allocation65_spill] sm:$0xff] }
 0x7e5   :  { %2395 = vmatmul.mubr.bf16.vlgmr.msra.gmra.mrb[72].mxu0 %v2256_v56  ;;  %2436 = vmatmul.mubr.bf16.vlgmr.msra.gmra.mrb[72].mxu1 %v2256_v56 }
 0x7e6   :  { %2469 = vmatpush1.bf16.msra.mxu0 %v6515_v43  ;;  %2510 = vmatpush1.bf16.msra.mxu1 %v6516_v44  ;;  %v6614_v43 = vld [vmem:[#allocation66_spill] sm:$0xff] }
 0x7e7   :  { %2470 = vmatprep.subr.bf16.mxu0 %v5133_v23  ;;  %2511 = vmatprep.subr.bf16.mxu1 %v5139_v28  ;;  %v6596_v23 = vld [vmem:[#allocation51_spill] sm:$0xff]  ;;  %v6598_v28 = vld [vmem:[#allocation53_spill] sm:$0xff]  ;;  %v6615_v44 = vld [vmem:[#allocation10_spill] sm:$0xff] }
 0x7ea   :  { %2471 = vmatpush1.bf16.msra.mxu0 %v5145_v25  ;;  %2512 = vmatpush1.bf16.msra.mxu1 %v5151_v16  ;;  %v6594_v25 = vld [vmem:[#allocation49_spill] sm:$0xff]  ;;  %v6595_v16 = vld [vmem:[#allocation50_spill] sm:$0xff] }
 0x7eb   :  { %2472 = vmatprep.subr.bf16.mxu0 %v5271_v45  ;;  %2513 = vmatprep.subr.bf16.mxu1 %v5277_v47  ;;  %v6616_v45 = vld [vmem:[#allocation11_spill] sm:$0xff]  ;;  %v6617_v47 = vld [vmem:[#allocation12_spill] sm:$0xff] }
 0x7ee   :  { %2473 = vmatpush1.bf16.msra.mxu0 %v6576_v61  ;;  %2514 = vmatpush1.bf16.msra.mxu1 %v6577_v18 }
 0x7ef   :  { %2474 = vmatprep.subr.bf16.mxu0 %v6578_v14  ;;  %2515 = vmatprep.subr.bf16.mxu1 %v6579_v24 }
 0x7f2   :  { %2475 = vmatpush1.bf16.msra.mxu0 %v6580_v37  ;;  %2516 = vmatpush1.bf16.msra.mxu1 %v6581_v15  ;;  %v6632_v15 = vld [vmem:[#allocation7_spill] sm:$0xff] }
 0x7f3   :  { %2476 = vmatprep.subr.bf16.mxu0 %v6582_v48  ;;  %2517 = vmatprep.subr.bf16.mxu1 %v6583_v33  ;;  %v6633_v33 = vld [vmem:[#allocation8_spill] sm:$0xff] }
 0x7f6   :  { %2477 = vmatpush1.bf16.msra.mxu0 %v6584_v17  ;;  %2518 = vmatpush1.bf16.msra.mxu1 %v6585_v46 }
 0x7f7   :  { %2478 = vmatprep.subr.bf16.mxu0 %v6586_v19  ;;  %2519 = vmatprep.subr.bf16.mxu1 %v6587_v12 }
 0x7fa   :  { %2479 = vmatpush1.bf16.msra.mxu0 %v6588_v20  ;;  %2520 = vmatpush1.bf16.msra.mxu1 %v6589_v13 }
 0x7fb   :  { %2480 = vmatprep.subr.bf16.mxu0 %v6590_v26  ;;  %2521 = vmatprep.subr.bf16.mxu1 %v6591_v53 }
 0x7fe   :  { %2481 = vmatpush1.bf16.msra.mxu0 %v6592_v22  ;;  %2522 = vmatpush1.bf16.msra.mxu1 %v6593_v50 }
 0x7ff   :  { %2482 = vmatprep.subr.bf16.mxu0 %v6594_v25  ;;  %2523 = vmatprep.subr.bf16.mxu1 %v6595_v16  ;;  %v6634_v25 = vld [vmem:[#allocation77_spill] sm:$0xff] }
 0x802   :  { %2483 = vmatpush1.bf16.msra.mxu0 %v6596_v23  ;;  %2524 = vmatpush1.bf16.msra.mxu1 %v6597_v27 }
 0x803   :  { %2484 = vmatprep.subr.bf16.mxu0 %v6598_v28  ;;  %2525 = vmatprep.subr.bf16.mxu1 %v6599_v2 }
 0x806   :  { %2485 = vmatpush1.bf16.msra.mxu0 %v6600_v30  ;;  %2526 = vmatpush1.bf16.msra.mxu1 %v6601_v63  ;;  %v6635_v63 = vld [vmem:[#allocation83_spill] sm:$0xff] }
 0x807   :  { %2486 = vmatprep.subr.bf16.mxu0 %v6602_v10  ;;  %2527 = vmatprep.subr.bf16.mxu1 %v6603_v54  ;;  %v6636_v54 = vld [vmem:[#allocation84_spill] sm:$0xff] }
 0x80a   :  { %2487 = vmatpush1.bf16.msra.mxu0 %v6604_v5  ;;  %2528 = vmatpush1.bf16.msra.mxu1 %v6605_v0 }
 0x80b   :  { %2488 = vmatprep.subr.bf16.mxu0 %v6606_v11  ;;  %2529 = vmatprep.subr.bf16.mxu1 %v6607_v31 }
 0x80e   :  { %2489 = vmatpush1.bf16.msra.mxu0 %v6608_v32  ;;  %2530 = vmatpush1.bf16.msra.mxu1 %v6609_v34  ;;  %v6637_v32 = vld [vmem:[#allocation85_spill] sm:$0xff] }
 0x80f   :  { %2490 = vmatprep.subr.bf16.mxu0 %v6610_v35  ;;  %2531 = vmatprep.subr.bf16.mxu1 %v6611_v36  ;;  %v6638_v35 = vld [vmem:[#allocation86_spill] sm:$0xff] }
 0x812   :  { %2491 = vmatpush1.bf16.msra.mxu0 %v6612_v39  ;;  %2532 = vmatpush1.bf16.msra.mxu1 %v6613_v41 }
 0x813   :  { %2492 = vmatprep.subr.bf16.mxu0 %v6614_v43  ;;  %2533 = vmatprep.subr.bf16.mxu1 %v6615_v44 }
 0x816   :  { %2493 = vmatpush1.bf16.msra.mxu0 %v6616_v45  ;;  %2534 = vmatpush1.bf16.msra.mxu1 %v6617_v47 }
 0x817   :  { %2494 = vmatprep.subr.bf16.mxu0 %v6618_v58  ;;  %2535 = vmatprep.subr.bf16.mxu1 %v6619_v57 }
 0x81a   :  { %2495 = vmatpush1.bf16.msra.mxu0 %v6620_v3  ;;  %2536 = vmatpush1.bf16.msra.mxu1 %v6621_v52 }
 0x81b   :  { %2496 = vmatprep.subr.bf16.mxu0 %v6622_v29  ;;  %2537 = vmatprep.subr.bf16.mxu1 %v6623_v6 }
 0x81e   :  { %2497 = vmatpush1.bf16.msra.mxu0 %v6624_v8  ;;  %2538 = vmatpush1.bf16.msra.mxu1 %v6625_v62 }
 0x81f   :  { %2498 = vmatprep.subr.bf16.mxu0 %v6626_v42  ;;  %2539 = vmatprep.subr.bf16.mxu1 %v6627_v7 }
 0x822   :  { %2499 = vmatpush1.bf16.msra.mxu0 %v6628_v1  ;;  %2540 = vmatpush1.bf16.msra.mxu1 %v6629_v9 }
 0x898   :  { %v2292_v38 = vpop.f32.mrb[68].mxu0  ;;  %v2333_v4 = vpop.f32.mrb[68].mxu1 }
 0x899   :  { %v2293_v21 = vadd.f32 %v2292_v38, %v6630_v40  ;;  %v2294_v60 = vpop.f32.mrb[69].mxu0  ;;  %v2335_v49 = vpop.f32.mrb[69].mxu1  ;;  %v2334_v48 = vadd.f32 %v2333_v4, %v6632_v15 }
 0x89a   :  { %v2295_v55 = vadd.f32 %v2294_v60, %v6631_v51  ;;  %v2296_v56 = vpop.f32.mrb[70].mxu0  ;;  %v2337_v61 = vpop.f32.mrb[70].mxu1  ;;  %v2336_v17 = vadd.f32 %v2335_v49, %v6633_v33 }
 0x89b   :  { %v2340_v18 = vmul.f32 0.5, %v2293_v21  ;;  %v2297_v14 = vpop.f32.mrb[71].mxu0  ;;  %v2338_v24 = vpop.f32.mrb[71].mxu1 }
 0x89c   :  { %v2344_v37 = vmul.f32 0.5, %v2295_v55  ;;  %v2349_v46 = vmul.f32 0.5, %v2336_v17 }
 0x89d   :  { %2971 = vtanh.f32 %v2340_v18 }
 0x89e   :  { %2973 = vtanh.f32 %v2344_v37 }
 0x89f   :  { %2975 = vtanh.f32 %v2334_v48 }
 0x8a0   :  { %2977 = vtanh.f32 %v2349_v46 }
 0x8a7   :  { %v2972_v19 = vpop.eup %2971 }
 0x8a8   :  { %v2974_v12 = vpop.eup %2973  ;;  %v2342_v20 = vadd.f32 1.0, %v2972_v19 }
 0x8a9   :  { %v2346_v13 = vadd.f32 1.0, %v2974_v12  ;;  %v2976_v53 = vpop.eup %2975 }
 0x8aa   :  { %v2343_v26 = vmul.f32 0.5, %v2342_v20  ;;  %v2978_v27 = vpop.eup %2977 }
 0x8ab   :  { %v2347_v22 = vmul.f32 0.5, %v2346_v13  ;;  %v2351_v28 = vadd.f32 1.0, %v2978_v27 }
 0x8ac   :  { %v2354_v50 = vmul.f32 %v2976_v53, %v2343_v26 }
 0x8ad   :  { %v2353_v16 = vmul.f32 %v2347_v22, %v6634_v25  ;;  %v2352_v31 = vmul.f32 0.5, %v2351_v28 }
 0x8af   :  { %v5723_v23 = vadd.f32 %v2354_v50, %v2353_v16 }
 0x8b1   :  { %2979 = vtanh.f32 %v5723_v23 }
 0x8b8   :  { %v2396_v2 = vpop.f32.mrb[72].mxu0  ;;  %v2437_v30 = vpop.f32.mrb[72].mxu1 }
 0x8b9   :  { %v2444_v10 = vadd.f32 %v2396_v2, %v6635_v63  ;;  %v2446_v5 = vadd.f32 %v2437_v30, %v6636_v54  ;;  %v2398_v0 = vpop.f32.mrb[73].mxu0  ;;  %v2439_v11 = vpop.f32.mrb[73].mxu1 }
 0x8ba   :  { %v2445_v34 = vadd.f32 %v2398_v0, %v6637_v32  ;;  %v2447_v36 = vadd.f32 %v2439_v11, %v6638_v35  ;;  %v2400_v39 = vpop.f32.mrb[74].mxu0  ;;  %v2441_v41 = vpop.f32.mrb[74].mxu1 }
 0x8bb   :  { %v2980_v43 = vpop.eup %2979  ;;  %v2448_v44 = vmul.f32 0.5, %v2444_v10  ;;  %v2401_v45 = vpop.f32.mrb[75].mxu0 }
 0x8bc   :  { %v2442_v47 = vpop.f32.mrb[75].mxu1  ;;  %v2452_v58 = vmul.f32 0.5, %v2445_v34  ;;  %v2357_v57 = vmul.f32 %v2980_v43, %v2352_v31  ;;  %v2457_v52 = vmul.f32 0.5, %v2447_v36 }
 0x8bd   :  { %2981 = vtanh.f32 %v2448_v44 }
 0x8be   :  { %2983 = vtanh.f32 %v2452_v58  ;;  %v2467_v3 = vpack.c.bf16 %v2357_v57, %v2357_v57 }
 0x8bf   :  { %2985 = vtanh.f32 %v2446_v5 }
 0x8c0   :  { %2500 = vmatprep.mubr.bf16.mxu0 %v2467_v3  ;;  %2541 = vmatprep.mubr.bf16.mxu1 %v2467_v3  ;;  %2987 = vtanh.f32 %v2457_v52 }
 0x8c7   :  { %v2982_v29 = vpop.eup %2981 }
 0x8c8   :  { %v2984_v6 = vpop.eup %2983  ;;  %v2450_v8 = vadd.f32 1.0, %v2982_v29 }
 0x8c9   :  { %v2454_v62 = vadd.f32 1.0, %v2984_v6  ;;  %v2986_v7 = vpop.eup %2985 }
 0x8ca   :  { %v2451_v42 = vmul.f32 0.5, %v2450_v8  ;;  %v2988_v21 = vpop.eup %2987 }
 0x8cb   :  { %v2455_v1 = vmul.f32 0.5, %v2454_v62  ;;  %v2459_v60 = vadd.f32 1.0, %v2988_v21 }
 0x8cc   :  { %v2462_v9 = vmul.f32 %v2986_v7, %v2451_v42 }
 0x8cd   :  { %v2461_v38 = vmul.f32 %v2455_v1, %v5619_v59  ;;  %v2460_v49 = vmul.f32 0.5, %v2459_v60 }
 0x8cf   :  { %v2463_v4 = vadd.f32 %v2462_v9, %v2461_v38 }
 0x8d1   :  { %2989 = vtanh.f32 %v2463_v4 }
 0x8db   :  { %v2990_v55 = vpop.eup %2989 }
 0x8dc   :  { %v2465_v56 = vmul.f32 %v2990_v55, %v2460_v49 }
 0x8de   :  { %v2466_v61 = vpack.c.bf16 %v2465_v56, %v2465_v56 }
 0x8e0   :  { %2501 = vmatmul.mubr.bf16.vlgmr.msra.gmra.mrb[76].mxu0 %v2466_v61  ;;  %2542 = vmatmul.mubr.bf16.vlgmr.msra.gmra.mrb[76].mxu1 %v2466_v61 }
 0x9b3   :  { %v2502_v18 = vpop.f32.mrb[76].mxu0  ;;  %v2543_v14 = vpop.f32.mrb[76].mxu1 }
 0x9b4   :  { %v2503_v24 = vadd.f32 %v2502_v18, %v6630_v40  ;;  %v2504_v37 = vpop.f32.mrb[77].mxu0  ;;  %v2545_v48 = vpop.f32.mrb[77].mxu1  ;;  %v2544_v26 = vadd.f32 %v2543_v14, %v6632_v15 }
 0x9b5   :  { %v2505_v17 = vadd.f32 %v2504_v37, %v6631_v51  ;;  %v2506_v46 = vpop.f32.mrb[78].mxu0  ;;  %v2547_v59 = vpop.f32.mrb[78].mxu1  ;;  %v2546_v53 = vadd.f32 %v2545_v48, %v6633_v33 }
 0x9b6   :  { %v2550_v19 = vmul.f32 0.5, %v2503_v24  ;;  %v2507_v12 = vpop.f32.mrb[79].mxu0  ;;  %v2548_v20 = vpop.f32.mrb[79].mxu1 }
 0x9b7   :  { %v2554_v13 = vmul.f32 0.5, %v2505_v17  ;;  %v2559_v22 = vmul.f32 0.5, %v2546_v53 }
 0x9b8   :  { %2991 = vtanh.f32 %v2550_v19 }
 0x9b9   :  { %2993 = vtanh.f32 %v2554_v13 }
 0x9ba   :  { %2995 = vtanh.f32 %v2544_v26 }
 0x9bb   :  { %2997 = vtanh.f32 %v2559_v22 }
 0x9c2   :  { %v2992_v50 = vpop.eup %2991 }
 0x9c3   :  { %v2994_v40 = vpop.eup %2993  ;;  %v2552_v25 = vadd.f32 1.0, %v2992_v50 }
 0x9c4   :  { %v2556_v16 = vadd.f32 1.0, %v2994_v40  ;;  %v2996_v27 = vpop.eup %2995 }
 0x9c5   :  { %v2553_v51 = vmul.f32 0.5, %v2552_v25  ;;  %v2998_v10 = vpop.eup %2997 }
 0x9c6   :  { %v2557_v28 = vmul.f32 0.5, %v2556_v16  ;;  %v2561_v15 = vadd.f32 1.0, %v2998_v10 }
 0x9c7   :  { %v2564_v2 = vmul.f32 %v2996_v27, %v2553_v51 }
 0x9c8   :  { %v2563_v30 = vmul.f32 %v2557_v28, %v5723_v23  ;;  %v2562_v54 = vmul.f32 0.5, %v2561_v15 }
 0x9ca   :  { %v2565_v63 = vadd.f32 %v2564_v2, %v2563_v30 }
 0x9cc   :  { %2999 = vtanh.f32 %v2565_v63 }
 0x9d6   :  { %v3000_v5 = vpop.eup %2999 }
 0x9d7   :  { %v2567_v0 = vmul.f32 %v3000_v5, %v2562_v54 }
 0x9d9   :  { %2568 = vst [vmem:[%s5745_s6] sm:$0xff] %v2567_v0 }

</bundles_post_ra>
